<compile_context>
chip_gen: v7x
topology: tpu7x:2x2x1
jax: 0.10.0
libtpu: 0.0.40
codegen_flags: <defaults>
</compile_context>

<pallas_src>
import math
import functools

import jax
import jax.numpy as jnp
from jax.experimental import pallas as pl
from jax.experimental.pallas import tpu as pltpu


# ----------------------------------------------------------------------------
# Pallas kernel (one batch element per grid step)
# ----------------------------------------------------------------------------
def _deform_decoder_kernel(
    tgt_ref, qpos_ref, src_ref, rp_ref,                      # per-batch blocks
    wqk_ref, wv_ref, wo_ref,                                 # self-attn weights (pre-T)
    wval_ref, woff_ref, watt_ref, wdo_ref,                   # deform-attn weights (pre-T)
    w1_ref, w2_ref,                                          # FFN weights (pre-T)
    vecs_ref, b1_ref, boff_ref, batt_ref, grid_ref,          # packed vectors / grids
    o_ref,
    *, nhead: int, n_levels: int, n_points: int,
    spatial_shapes, eps: float = 1e-5,
):
    f32 = jnp.float32
    tgt = tgt_ref[0].astype(f32)      # (Lq, D)
    qpos = qpos_ref[0].astype(f32)    # (Lq, D)
    src = src_ref[0].astype(f32)      # (S,  D)
    rp = rp_ref[0].astype(f32)        # (Lq, 2*L)  columns: level*2 + {x,y}

    Lq, D = tgt.shape
    hd = D // nhead
    LP = n_levels * n_points

    # packed bias / layernorm vectors, rows fixed by the wrapper
    bq    = vecs_ref[0:1, :]
    bk    = vecs_ref[1:2, :]
    bv    = vecs_ref[2:3, :]
    bo    = vecs_ref[3:4, :]
    g2    = vecs_ref[4:5, :]
    be2   = vecs_ref[5:6, :]
    bval  = vecs_ref[6:7, :]
    bdo   = vecs_ref[7:8, :]
    g1    = vecs_ref[8:9, :]
    be1   = vecs_ref[9:10, :]
    blin2 = vecs_ref[10:11, :]
    g3    = vecs_ref[11:12, :]
    be3   = vecs_ref[12:13, :]

    def layer_norm(x, g, b):
        mu = jnp.mean(x, axis=-1, keepdims=True)
        xc = x - mu
        var = jnp.mean(xc * xc, axis=-1, keepdims=True)
        return xc * jax.lax.rsqrt(var + eps) * g + b

    def softmax(x):
        m = jnp.max(x, axis=-1, keepdims=True)
        e = jnp.exp(x - m)
        return e / jnp.sum(e, axis=-1, keepdims=True)

    # contract last dim of both operands (i.e. a @ b.T without materializing b.T)
    dn_rhs_t = (((1,), (1,)), ((), ()))

    # -------------------- 1. self-attention + norm2 --------------------------
    qk_in = tgt + qpos
    qk = jnp.dot(qk_in, wqk_ref[...], preferred_element_type=f32)     # (Lq, 2D)
    q = qk[:, :D] + bq            # 1/sqrt(hd) already folded into Wq / bq
    k = qk[:, D:] + bk
    v = jnp.dot(tgt, wv_ref[...], preferred_element_type=f32) + bv    # (Lq, D)

    sa = jnp.zeros((Lq, D), f32)
    for m in range(nhead):
        sl = slice(m * hd, (m + 1) * hd)
        s = jax.lax.dot_general(q[:, sl], k[:, sl], dn_rhs_t,
                                preferred_element_type=f32)            # (Lq, Lq)
        p = softmax(s)
        om = jnp.dot(p, v[:, sl], preferred_element_type=f32)          # (Lq, hd)
        # fold head output directly through its out-proj row block (no concat)
        sa = sa + jnp.dot(om, wo_ref[sl, :], preferred_element_type=f32)
    sa = sa + bo

    x = layer_norm(tgt + sa, g2, be2)                                  # norm2

    # -------------------- 2. deformable cross-attention + norm1 --------------
    q2 = x + qpos
    value = jnp.dot(src, wval_ref[...], preferred_element_type=f32) + bval   # (S, D)
    off = jnp.dot(q2, woff_ref[...], preferred_element_type=f32) + boff_ref[...]   # (Lq, 2*M*L*P)
    aw_all = jnp.dot(q2, watt_ref[...], preferred_element_type=f32) + batt_ref[...]  # (Lq, M*L*P)

    gx = grid_ref[0:1, :]      # (1, S)  pixel x (=w) coordinate of each flattened src token
    gy = grid_ref[1:2, :]      # (1, S)  pixel y (=h) coordinate

    starts = []
    s0 = 0
    for (H, W) in spatial_shapes:
        starts.append(s0)
        s0 += H * W

    # per-level reference points (hoisted out of the head loop)
    ref_xy = [(rp[:, 2 * l:2 * l + 1], rp[:, 2 * l + 1:2 * l + 2])
              for l in range(n_levels)]

    cross = jnp.zeros((Lq, D), f32)
    for m in range(nhead):
        aw_m = softmax(aw_all[:, m * LP:(m + 1) * LP])                  # (Lq, L*P)
        head_acc = jnp.zeros((Lq, hd), f32)
        for l, (H, W) in enumerate(spatial_shapes):
            st = starts[l]
            HW = H * W
            gxl = gx[:, st:st + HW]                                     # (1, HW)
            gyl = gy[:, st:st + HW]
            ref_x, ref_y = ref_xy[l]                                    # (Lq, 1) each
            A = jnp.zeros((Lq, HW), f32)
            for p_i in range(n_points):
                col = ((m * n_levels + l) * n_points + p_i) * 2
                off_x = off[:, col:col + 1]                             # (Lq, 1)
                off_y = off[:, col + 1:col + 2]
                # grid_sample(align_corners=False) pixel coordinates
                xi = ref_x * float(W) + off_x - 0.5
                yi = ref_y * float(H) + off_y - 0.5
                # exact bilinear weights over the level grid (zeros padding)
                wgt = (jnp.maximum(1.0 - jnp.abs(xi - gxl), 0.0)
                       * jnp.maximum(1.0 - jnp.abs(yi - gyl), 0.0))     # (Lq, HW)
                a_col = aw_m[:, l * n_points + p_i:l * n_points + p_i + 1]
                A = A + a_col * wgt
            head_acc = head_acc + jnp.dot(
                A, value[st:st + HW, m * hd:(m + 1) * hd],
                preferred_element_type=f32)                             # (Lq, hd)
        cross = cross + jnp.dot(head_acc, wdo_ref[m * hd:(m + 1) * hd, :],
                                preferred_element_type=f32)
    cross = cross + bdo

    x = layer_norm(x + cross, g1, be1)                                  # norm1

    # -------------------- 3. FFN + norm3 --------------------------------------
    h1 = jnp.maximum(jnp.dot(x, w1_ref[...], preferred_element_type=f32)
                     + b1_ref[...], 0.0)
    ffn = jnp.dot(h1, w2_ref[...], preferred_element_type=f32) + blin2
    y = layer_norm(x + ffn, g3, be3)                                    # norm3

    o_ref[0] = y.astype(o_ref.dtype)


# ----------------------------------------------------------------------------
# wrapper
# ----------------------------------------------------------------------------
def deformable_decoder_layer(tgt, query_pos, reference_points, src,
                             spatial_shapes, params, *,
                             n_heads, n_levels, n_points):
    """tgt/query_pos: (B, Lq, D); src: (B, S, D);
    reference_points: (B, Lq, n_levels, 2) in [0,1]; spatial_shapes: ((H,W),...)."""
    B, Lq, D = tgt.shape
    S = src.shape[1]
    F = params["lin1_w"].shape[0]
    hd = D // n_heads
    MLP = n_heads * n_levels * n_points
    scale = 1.0 / math.sqrt(hd)

    # --- pre-transpose all weights to (in, out); fold attention scale into Wq/bq
    in_w, in_b = params["sa_in_proj_w"], params["sa_in_proj_b"]
    wqk_t = jnp.concatenate([(in_w[0:D] * scale).T, in_w[D:2 * D].T], axis=1)  # (D, 2D)
    wv_t = in_w[2 * D:3 * D].T
    bq = in_b[0:D] * scale
    bk = in_b[D:2 * D]
    bv = in_b[2 * D:3 * D]

    wo_t = params["sa_out_w"].T
    wval_t = params["val_proj_w"].T
    woff_t = params["samp_off_w"].T      # (D, 2*M*L*P)
    watt_t = params["attn_w_w"].T        # (D, M*L*P)
    wdo_t = params["out_proj_w"].T
    w1_t = params["lin1_w"].T            # (D, F)
    w2_t = params["lin2_w"].T            # (F, D)

    # --- pack all (D,)-sized vectors into a single (16, D) tile
    vec_rows = [bq, bk, bv, params["sa_out_b"],
                params["norm2_g"], params["norm2_b"],
                params["val_proj_b"], params["out_proj_b"],
                params["norm1_g"], params["norm1_b"],
                params["lin2_b"], params["norm3_g"], params["norm3_b"]]
    pad = (-len(vec_rows)) % 8
    vecs = jnp.stack(vec_rows + [jnp.zeros((D,), jnp.float32)] * pad)  # (16, D)

    b1 = params["lin1_b"].reshape(1, F)
    boff = params["samp_off_b"].reshape(1, 2 * MLP)
    batt = params["attn_w_b"].reshape(1, MLP)

    # --- per-source-token pixel coordinates (x=w, y=h), flattened over levels
    coords = []
    for (H, W) in spatial_shapes:
        ww = jnp.tile(jnp.arange(W, dtype=jnp.float32), H)
        hh = jnp.repeat(jnp.arange(H, dtype=jnp.float32), W)
        coords.append(jnp.stack([ww, hh]))
    grid_coords = jnp.concatenate(coords, axis=1)                      # (2, S)

    rp = reference_points.reshape(B, Lq, 2 * n_levels)                 # col = l*2 + {x,y}

    def per_b(r, c):
        return pl.BlockSpec((1, r, c), lambda b: (b, 0, 0))

    def full2(shape):
        return pl.BlockSpec(shape, lambda b: (0, 0))

    batch_in = [(tgt, per_b(Lq, D)), (query_pos, per_b(Lq, D)),
                (src, per_b(S, D)), (rp, per_b(Lq, 2 * n_levels))]
    const_in = [
        (wqk_t, full2((D, 2 * D))), (wv_t, full2((D, D))), (wo_t, full2((D, D))),
        (wval_t, full2((D, D))), (woff_t, full2((D, 2 * MLP))),
        (watt_t, full2((D, MLP))), (wdo_t, full2((D, D))),
        (w1_t, full2((D, F))), (w2_t, full2((F, D))),
        (vecs, full2((vecs.shape[0], D))), (b1, full2((1, F))),
        (boff, full2((1, 2 * MLP))), (batt, full2((1, MLP))),
        (grid_coords, full2((2, S))),
    ]

    kernel = functools.partial(
        _deform_decoder_kernel, nhead=n_heads, n_levels=n_levels,
        n_points=n_points,
        spatial_shapes=tuple((int(h), int(w)) for (h, w) in spatial_shapes))

    out = pl.pallas_call(
        kernel,
        out_shape=jax.ShapeDtypeStruct((B, Lq, D), tgt.dtype),
        grid_spec=pltpu.PrefetchScalarGridSpec(
            num_scalar_prefetch=0,
            grid=(B,),
            in_specs=[s for _, s in batch_in] + [s for _, s in const_in],
            out_specs=per_b(Lq, D)),
        compiler_params=pltpu.CompilerParams(
            dimension_semantics=("parallel",)),
    )(*[a for a, _ in batch_in], *[a for a, _ in const_in])
    return out


# ----------------------------------------------------------------------------
# pure-JAX reference (independent path: explicit bilinear gather, like grid_sample)
# ----------------------------------------------------------------------------
def _reference(tgt, query_pos, reference_points, src, spatial_shapes, params, *,
               n_heads, n_levels, n_points, eps=1e-5):
    B, Lq, D = tgt.shape
    S = src.shape[1]
    hd = D // n_heads

    def ln(x, g, b):
        mu = x.mean(-1, keepdims=True)
        xc = x - mu
        var = (xc * xc).mean(-1, keepdims=True)
        return xc / jnp.sqrt(var + eps) * g + b

    # self-attention
    in_w, in_b = params["sa_in_proj_w"], params["sa_in_proj_b"]
    qk_in = tgt + query_pos
    q = qk_in @ in_w[0:D].T + in_b[0:D]
    k = qk_in @ in_w[D:2 * D].T + in_b[D:2 * D]
    v = tgt @ in_w[2 * D:3 * D].T + in_b[2 * D:3 * D]

    def split(x):
        return x.reshape(B, -1, n_heads, hd).transpose(0, 2, 1, 3)
    qh, kh, vh = split(q), split(k), split(v)
    s = jnp.einsum('bhqd,bhkd->bhqk', qh, kh) / math.sqrt(hd)
    p = jax.nn.softmax(s, -1)
    a = jnp.einsum('bhqk,bhkd->bhqd', p, vh).transpose(0, 2, 1, 3).reshape(B, Lq, D)
    sa = a @ params["sa_out_w"].T + params["sa_out_b"]
    x = ln(tgt + sa, params["norm2_g"], params["norm2_b"])

    # deformable cross-attention
    q2 = x + query_pos
    value = (src @ params["val_proj_w"].T + params["val_proj_b"]).reshape(B, S, n_heads, hd)
    off = (q2 @ params["samp_off_w"].T + params["samp_off_b"]).reshape(
        B, Lq, n_heads, n_levels, n_points, 2)
    aw = (q2 @ params["attn_w_w"].T + params["attn_w_b"]).reshape(
        B, Lq, n_heads, n_levels * n_points)
    aw = jax.nn.softmax(aw, -1).reshape(B, Lq, n_heads, n_levels, n_points)
    normalizer = jnp.array([[W, H] for (H, W) in spatial_shapes], jnp.float32)
    loc = (reference_points[:, :, None, :, None, :]
           + off / normalizer[None, None, None, :, None, :])

    out = jnp.zeros((B, Lq, n_heads, hd), jnp.float32)
    start = 0
    for l, (H, W) in enumerate(spatial_shapes):
        HW = H * W
        val_l = value[:, start:start + HW]                   # (B, HW, M, hd)
        start += HW
        xi = loc[:, :, :, l, :, 0] * W - 0.5                 # (B, Lq, M, P)
        yi = loc[:, :, :, l, :, 1] * H - 0.5
        x0 = jnp.floor(xi)
        y0 = jnp.floor(yi)
        lx = xi - x0
        ly = yi - y0
        for dy in (0, 1):
            for dx in (0, 1):
                xx = x0 + dx
                yy = y0 + dy
                w_bil = (lx if dx else 1.0 - lx) * (ly if dy else 1.0 - ly)
                valid = ((xx >= 0) & (xx < W) & (yy >= 0) & (yy < H)).astype(jnp.float32)
                idx = (jnp.clip(yy, 0, H - 1) * W + jnp.clip(xx, 0, W - 1)).astype(jnp.int32)
                val_b = jnp.broadcast_to(val_l[:, :, :, None, :],
                                         (B, HW, n_heads, n_points, hd))
                idx_b = jnp.broadcast_to(idx[:, :, :, :, None],
                                         (B, Lq, n_heads, n_points, hd))
                g = jnp.take_along_axis(val_b, idx_b, axis=1)      # (B, Lq, M, P, hd)
                out = out + jnp.sum(
                    (aw[:, :, :, l, :] * w_bil * valid)[..., None] * g, axis=3)

    cross = out.reshape(B, Lq, D) @ params["out_proj_w"].T + params["out_proj_b"]
    x = ln(x + cross, params["norm1_g"], params["norm1_b"])

    h1 = jnp.maximum(x @ params["lin1_w"].T + params["lin1_b"], 0.0)
    y = ln(x + h1 @ params["lin2_w"].T + params["lin2_b"],
           params["norm3_g"], params["norm3_b"])
    return y


def _init_params(key, d_model, d_ffn, n_heads, n_levels, n_points):
    MLP = n_heads * n_levels * n_points
    ks = jax.random.split(key, 20)
    s = 0.05

    def nrm(k, shape, scale=s):
        return scale * jax.random.normal(k, shape, jnp.float32)

    return {
        "sa_in_proj_w": nrm(ks[0], (3 * d_model, d_model)),
        "sa_in_proj_b": nrm(ks[1], (3 * d_model,)),
        "sa_out_w": nrm(ks[2], (d_model, d_model)),
        "sa_out_b": nrm(ks[3], (d_model,)),
        "val_proj_w": nrm(ks[4], (d_model, d_model)),
        "val_proj_b": nrm(ks[5], (d_model,)),
        "samp_off_w": nrm(ks[6], (MLP * 2, d_model)),
        "samp_off_b": nrm(ks[7], (MLP * 2,), 0.5),
        "attn_w_w": nrm(ks[8], (MLP, d_model)),
        "attn_w_b": nrm(ks[9], (MLP,)),
        "out_proj_w": nrm(ks[10], (d_model, d_model)),
        "out_proj_b": nrm(ks[11], (d_model,)),
        "lin1_w": nrm(ks[12], (d_ffn, d_model)),
        "lin1_b": nrm(ks[13], (d_ffn,)),
        "lin2_w": nrm(ks[14], (d_model, d_ffn)),
        "lin2_b": nrm(ks[15], (d_model,)),
        "norm1_g": 1.0 + nrm(ks[16], (d_model,), 0.1),
        "norm1_b": nrm(ks[17], (d_model,), 0.1),
        "norm2_g": 1.0 + nrm(ks[18], (d_model,), 0.05),
        "norm2_b": nrm(ks[19], (d_model,), 0.05),
        "norm3_g": jnp.full((d_model,), 1.1, jnp.float32),
        "norm3_b": jnp.full((d_model,), 0.02, jnp.float32),
    }


if __name__ == "__main__":
    d_model, n_heads, d_ffn = 32, 4, 64
    n_levels, n_points = 2, 2
    spatial_shapes = ((4, 4), (2, 4))
    B, Lq = 2, 8
    S = sum(h * w for h, w in spatial_shapes)   # 24

    key = jax.random.PRNGKey(0)
    k1, k2, k3, k4, kp = jax.random.split(key, 5)
    tgt = jax.random.normal(k1, (B, Lq, d_model), jnp.float32)
    query_pos = 0.1 * jax.random.normal(k2, (B, Lq, d_model), jnp.float32)
    src = jax.random.normal(k3, (B, S, d_model), jnp.float32)
    reference_points = jax.random.uniform(k4, (B, Lq, n_levels, 2), jnp.float32,
                                          minval=0.15, maxval=0.85)
    params = _init_params(kp, d_model, d_ffn, n_heads, n_levels, n_points)

    out = deformable_decoder_layer(
        tgt, query_pos, reference_points, src, spatial_shapes, params,
        n_heads=n_heads, n_levels=n_levels, n_points=n_points)
    out = jax.block_until_ready(out)

    ref = _reference(tgt, query_pos, reference_points, src, spatial_shapes, params,
                     n_heads=n_heads, n_levels=n_levels, n_points=n_points)

    assert out.shape == (B, Lq, d_model)
    max_err = float(jnp.max(jnp.abs(out - ref)))
    assert jnp.allclose(out, ref, atol=2e-4, rtol=2e-4), \
        f"mismatch vs reference, max abs err {max_err}"

    print("KERNEL_OK")
</pallas_src>

<mosaic_0001>
module attributes {stable_mosaic.version = 11 : i64} {
  func.func @_deform_decoder_kernel(%arg0: i32, %arg1: memref<1x8x32xf32, #tpu.memory_space<vmem>>, %arg2: memref<1x8x32xf32, #tpu.memory_space<vmem>>, %arg3: memref<1x24x32xf32, #tpu.memory_space<vmem>>, %arg4: memref<1x8x4xf32, #tpu.memory_space<vmem>>, %arg5: memref<32x64xf32, #tpu.memory_space<vmem>>, %arg6: memref<32x32xf32, #tpu.memory_space<vmem>>, %arg7: memref<32x32xf32, #tpu.memory_space<vmem>>, %arg8: memref<32x32xf32, #tpu.memory_space<vmem>>, %arg9: memref<32x32xf32, #tpu.memory_space<vmem>>, %arg10: memref<32x16xf32, #tpu.memory_space<vmem>>, %arg11: memref<32x32xf32, #tpu.memory_space<vmem>>, %arg12: memref<32x64xf32, #tpu.memory_space<vmem>>, %arg13: memref<64x32xf32, #tpu.memory_space<vmem>>, %arg14: memref<16x32xf32, #tpu.memory_space<vmem>>, %arg15: memref<1x64xf32, #tpu.memory_space<vmem>>, %arg16: memref<1x32xf32, #tpu.memory_space<vmem>>, %arg17: memref<1x16xf32, #tpu.memory_space<vmem>>, %arg18: memref<2x24xf32, #tpu.memory_space<vmem>>, %arg19: memref<1x8x32xf32, #tpu.memory_space<vmem>>) attributes {dimension_semantics = [#tpu.dimension_semantics<parallel>], iteration_bounds = array<i64: 2>, scalar_prefetch = 0 : i64, scratch_operands = 0 : i64, tpu.core_type = #tpu.core_type<tc>, window_params = [{transform_indices = @transform_0, window_bounds = array<i64: 1, 8, 32>}, {transform_indices = @transform_1, window_bounds = array<i64: 1, 8, 32>}, {transform_indices = @transform_2, window_bounds = array<i64: 1, 24, 32>}, {transform_indices = @transform_3, window_bounds = array<i64: 1, 8, 4>}, {pipeline_mode = #tpu.pipeline_mode<synchronous>, transform_indices = @transform_4, window_bounds = array<i64: 32, 64>}, {pipeline_mode = #tpu.pipeline_mode<synchronous>, transform_indices = @transform_5, window_bounds = array<i64: 32, 32>}, {pipeline_mode = #tpu.pipeline_mode<synchronous>, transform_indices = @transform_6, window_bounds = array<i64: 32, 32>}, {pipeline_mode = #tpu.pipeline_mode<synchronous>, transform_indices = @transform_7, window_bounds = array<i64: 32, 32>}, {pipeline_mode = #tpu.pipeline_mode<synchronous>, transform_indices = @transform_8, window_bounds = array<i64: 32, 32>}, {pipeline_mode = #tpu.pipeline_mode<synchronous>, transform_indices = @transform_9, window_bounds = array<i64: 32, 16>}, {pipeline_mode = #tpu.pipeline_mode<synchronous>, transform_indices = @transform_10, window_bounds = array<i64: 32, 32>}, {pipeline_mode = #tpu.pipeline_mode<synchronous>, transform_indices = @transform_11, window_bounds = array<i64: 32, 64>}, {pipeline_mode = #tpu.pipeline_mode<synchronous>, transform_indices = @transform_12, window_bounds = array<i64: 64, 32>}, {pipeline_mode = #tpu.pipeline_mode<synchronous>, transform_indices = @transform_13, window_bounds = array<i64: 16, 32>}, {pipeline_mode = #tpu.pipeline_mode<synchronous>, transform_indices = @transform_14, window_bounds = array<i64: 1, 64>}, {pipeline_mode = #tpu.pipeline_mode<synchronous>, transform_indices = @transform_15, window_bounds = array<i64: 1, 32>}, {pipeline_mode = #tpu.pipeline_mode<synchronous>, transform_indices = @transform_16, window_bounds = array<i64: 1, 16>}, {pipeline_mode = #tpu.pipeline_mode<synchronous>, transform_indices = @transform_17, window_bounds = array<i64: 2, 24>}, {transform_indices = @transform_18, window_bounds = array<i64: 1, 8, 32>}]} {
    %c0 = arith.constant 0 : index
    %c0_0 = arith.constant 0 : index
    %c0_1 = arith.constant 0 : index
    %0 = vector.load %arg1[%c0, %c0_0, %c0_1] : memref<1x8x32xf32, #tpu.memory_space<vmem>>, vector<1x8x32xf32>
    %1 = vector.shape_cast %0 : vector<1x8x32xf32> to vector<8x32xf32>
    %c0_2 = arith.constant 0 : index
    %c0_3 = arith.constant 0 : index
    %c0_4 = arith.constant 0 : index
    %2 = vector.load %arg2[%c0_2, %c0_3, %c0_4] : memref<1x8x32xf32, #tpu.memory_space<vmem>>, vector<1x8x32xf32>
    %3 = vector.shape_cast %2 : vector<1x8x32xf32> to vector<8x32xf32>
    %c0_5 = arith.constant 0 : index
    %c0_6 = arith.constant 0 : index
    %c0_7 = arith.constant 0 : index
    %4 = vector.load %arg3[%c0_5, %c0_6, %c0_7] : memref<1x24x32xf32, #tpu.memory_space<vmem>>, vector<1x24x32xf32>
    %5 = vector.shape_cast %4 : vector<1x24x32xf32> to vector<24x32xf32>
    %c0_8 = arith.constant 0 : index
    %c0_9 = arith.constant 0 : index
    %c0_10 = arith.constant 0 : index
    %6 = vector.load %arg4[%c0_8, %c0_9, %c0_10] : memref<1x8x4xf32, #tpu.memory_space<vmem>>, vector<1x8x4xf32>
    %7 = vector.shape_cast %6 : vector<1x8x4xf32> to vector<8x4xf32>
    %c0_11 = arith.constant 0 : index
    %c0_12 = arith.constant 0 : index
    %8 = vector.load %arg14[%c0_11, %c0_12] : memref<16x32xf32, #tpu.memory_space<vmem>>, vector<1x32xf32>
    %c1 = arith.constant 1 : index
    %c0_13 = arith.constant 0 : index
    %9 = vector.load %arg14[%c1, %c0_13] : memref<16x32xf32, #tpu.memory_space<vmem>>, vector<1x32xf32>
    %c2 = arith.constant 2 : index
    %c0_14 = arith.constant 0 : index
    %10 = vector.load %arg14[%c2, %c0_14] : memref<16x32xf32, #tpu.memory_space<vmem>>, vector<1x32xf32>
    %c3 = arith.constant 3 : index
    %c0_15 = arith.constant 0 : index
    %11 = vector.load %arg14[%c3, %c0_15] : memref<16x32xf32, #tpu.memory_space<vmem>>, vector<1x32xf32>
    %c4 = arith.constant 4 : index
    %c0_16 = arith.constant 0 : index
    %12 = vector.load %arg14[%c4, %c0_16] : memref<16x32xf32, #tpu.memory_space<vmem>>, vector<1x32xf32>
    %c5 = arith.constant 5 : index
    %c0_17 = arith.constant 0 : index
    %13 = vector.load %arg14[%c5, %c0_17] : memref<16x32xf32, #tpu.memory_space<vmem>>, vector<1x32xf32>
    %c6 = arith.constant 6 : index
    %c0_18 = arith.constant 0 : index
    %14 = vector.load %arg14[%c6, %c0_18] : memref<16x32xf32, #tpu.memory_space<vmem>>, vector<1x32xf32>
    %c7 = arith.constant 7 : index
    %c0_19 = arith.constant 0 : index
    %15 = vector.load %arg14[%c7, %c0_19] : memref<16x32xf32, #tpu.memory_space<vmem>>, vector<1x32xf32>
    %c8 = arith.constant 8 : index
    %c0_20 = arith.constant 0 : index
    %16 = vector.load %arg14[%c8, %c0_20] : memref<16x32xf32, #tpu.memory_space<vmem>>, vector<1x32xf32>
    %c9 = arith.constant 9 : index
    %c0_21 = arith.constant 0 : index
    %17 = vector.load %arg14[%c9, %c0_21] : memref<16x32xf32, #tpu.memory_space<vmem>>, vector<1x32xf32>
    %c10 = arith.constant 10 : index
    %c0_22 = arith.constant 0 : index
    %18 = vector.load %arg14[%c10, %c0_22] : memref<16x32xf32, #tpu.memory_space<vmem>>, vector<1x32xf32>
    %c11 = arith.constant 11 : index
    %c0_23 = arith.constant 0 : index
    %19 = vector.load %arg14[%c11, %c0_23] : memref<16x32xf32, #tpu.memory_space<vmem>>, vector<1x32xf32>
    %c12 = arith.constant 12 : index
    %c0_24 = arith.constant 0 : index
    %20 = vector.load %arg14[%c12, %c0_24] : memref<16x32xf32, #tpu.memory_space<vmem>>, vector<1x32xf32>
    %21 = arith.addf %1, %3 : vector<8x32xf32>
    %c0_25 = arith.constant 0 : index
    %c0_26 = arith.constant 0 : index
    %22 = vector.load %arg5[%c0_25, %c0_26] : memref<32x64xf32, #tpu.memory_space<vmem>>, vector<32x64xf32>
    %cst = arith.constant dense<0.000000e+00> : vector<8x64xf32>
    %23 = tpu.matmul %21, %22, %cst {dimension_numbers = #tpu.dot_dimension_numbers<[1], [0], [0], [1], [0, 0, 1, 1], [], []>} : vector<8x32xf32>, vector<32x64xf32>, vector<8x64xf32> -> vector<8x64xf32>
    %24 = vector.extract_strided_slice %23 {offsets = [0, 0], sizes = [8, 32], strides = [1, 1]} : vector<8x64xf32> to vector<8x32xf32>
    %25 = vector.broadcast %8 : vector<1x32xf32> to vector<8x32xf32>
    %26 = arith.addf %24, %25 : vector<8x32xf32>
    %27 = vector.extract_strided_slice %23 {offsets = [0, 32], sizes = [8, 32], strides = [1, 1]} : vector<8x64xf32> to vector<8x32xf32>
    %28 = vector.broadcast %9 : vector<1x32xf32> to vector<8x32xf32>
    %29 = arith.addf %27, %28 : vector<8x32xf32>
    %c0_27 = arith.constant 0 : index
    %c0_28 = arith.constant 0 : index
    %30 = vector.load %arg6[%c0_27, %c0_28] : memref<32x32xf32, #tpu.memory_space<vmem>>, vector<32x32xf32>
    %cst_29 = arith.constant dense<0.000000e+00> : vector<8x32xf32>
    %31 = tpu.matmul %1, %30, %cst_29 {dimension_numbers = #tpu.dot_dimension_numbers<[1], [0], [0], [1], [0, 0, 1, 1], [], []>} : vector<8x32xf32>, vector<32x32xf32>, vector<8x32xf32> -> vector<8x32xf32>
    %32 = vector.broadcast %10 : vector<1x32xf32> to vector<8x32xf32>
    %33 = arith.addf %31, %32 : vector<8x32xf32>
    %cst_30 = arith.constant 0.000000e+00 : f32
    %34 = vector.broadcast %cst_30 : f32 to vector<8x32xf32>
    %35 = vector.extract_strided_slice %26 {offsets = [0, 0], sizes = [8, 8], strides = [1, 1]} : vector<8x32xf32> to vector<8x8xf32>
    %36 = vector.extract_strided_slice %29 {offsets = [0, 0], sizes = [8, 8], strides = [1, 1]} : vector<8x32xf32> to vector<8x8xf32>
    %cst_31 = arith.constant dense<0.000000e+00> : vector<8x8xf32>
    %37 = tpu.matmul %35, %36, %cst_31 {dimension_numbers = #tpu.dot_dimension_numbers<[1], [1], [0], [0], [0, 0, 1, 0], [], []>} : vector<8x8xf32>, vector<8x8xf32>, vector<8x8xf32> -> vector<8x8xf32>
    %cst_32 = arith.constant dense<0xFF800000> : vector<8xf32>
    %38 = vector.multi_reduction <maximumf>, %37, %cst_32 [1] : vector<8x8xf32> to vector<8xf32>
    %39 = vector.shape_cast %38 : vector<8xf32> to vector<8x1xf32>
    %40 = vector.broadcast %39 : vector<8x1xf32> to vector<8x8xf32>
    %41 = arith.subf %37, %40 : vector<8x8xf32>
    %42 = math.exp %41 : vector<8x8xf32>
    %cst_33 = arith.constant dense<0.000000e+00> : vector<8xf32>
    %43 = vector.multi_reduction <add>, %42, %cst_33 [1] : vector<8x8xf32> to vector<8xf32>
    %44 = vector.shape_cast %43 : vector<8xf32> to vector<8x1xf32>
    %45 = vector.broadcast %44 : vector<8x1xf32> to vector<8x8xf32>
    %46 = arith.divf %42, %45 : vector<8x8xf32>
    %47 = vector.extract_strided_slice %33 {offsets = [0, 0], sizes = [8, 8], strides = [1, 1]} : vector<8x32xf32> to vector<8x8xf32>
    %cst_34 = arith.constant dense<0.000000e+00> : vector<8x8xf32>
    %48 = tpu.matmul %46, %47, %cst_34 {dimension_numbers = #tpu.dot_dimension_numbers<[1], [0], [0], [1], [0, 0, 1, 1], [], []>} : vector<8x8xf32>, vector<8x8xf32>, vector<8x8xf32> -> vector<8x8xf32>
    %c0_35 = arith.constant 0 : index
    %c0_36 = arith.constant 0 : index
    %49 = vector.load %arg7[%c0_35, %c0_36] : memref<32x32xf32, #tpu.memory_space<vmem>>, vector<8x32xf32>
    %cst_37 = arith.constant dense<0.000000e+00> : vector<8x32xf32>
    %50 = tpu.matmul %48, %49, %cst_37 {dimension_numbers = #tpu.dot_dimension_numbers<[1], [0], [0], [1], [0, 0, 1, 1], [], []>} : vector<8x8xf32>, vector<8x32xf32>, vector<8x32xf32> -> vector<8x32xf32>
    %51 = arith.addf %34, %50 : vector<8x32xf32>
    %52 = vector.extract_strided_slice %26 {offsets = [0, 8], sizes = [8, 8], strides = [1, 1]} : vector<8x32xf32> to vector<8x8xf32>
    %53 = vector.extract_strided_slice %29 {offsets = [0, 8], sizes = [8, 8], strides = [1, 1]} : vector<8x32xf32> to vector<8x8xf32>
    %cst_38 = arith.constant dense<0.000000e+00> : vector<8x8xf32>
    %54 = tpu.matmul %52, %53, %cst_38 {dimension_numbers = #tpu.dot_dimension_numbers<[1], [1], [0], [0], [0, 0, 1, 0], [], []>} : vector<8x8xf32>, vector<8x8xf32>, vector<8x8xf32> -> vector<8x8xf32>
    %cst_39 = arith.constant dense<0xFF800000> : vector<8xf32>
    %55 = vector.multi_reduction <maximumf>, %54, %cst_39 [1] : vector<8x8xf32> to vector<8xf32>
    %56 = vector.shape_cast %55 : vector<8xf32> to vector<8x1xf32>
    %57 = vector.broadcast %56 : vector<8x1xf32> to vector<8x8xf32>
    %58 = arith.subf %54, %57 : vector<8x8xf32>
    %59 = math.exp %58 : vector<8x8xf32>
    %cst_40 = arith.constant dense<0.000000e+00> : vector<8xf32>
    %60 = vector.multi_reduction <add>, %59, %cst_40 [1] : vector<8x8xf32> to vector<8xf32>
    %61 = vector.shape_cast %60 : vector<8xf32> to vector<8x1xf32>
    %62 = vector.broadcast %61 : vector<8x1xf32> to vector<8x8xf32>
    %63 = arith.divf %59, %62 : vector<8x8xf32>
    %64 = vector.extract_strided_slice %33 {offsets = [0, 8], sizes = [8, 8], strides = [1, 1]} : vector<8x32xf32> to vector<8x8xf32>
    %cst_41 = arith.constant dense<0.000000e+00> : vector<8x8xf32>
    %65 = tpu.matmul %63, %64, %cst_41 {dimension_numbers = #tpu.dot_dimension_numbers<[1], [0], [0], [1], [0, 0, 1, 1], [], []>} : vector<8x8xf32>, vector<8x8xf32>, vector<8x8xf32> -> vector<8x8xf32>
    %c8_42 = arith.constant 8 : index
    %c0_43 = arith.constant 0 : index
    %66 = vector.load %arg7[%c8_42, %c0_43] : memref<32x32xf32, #tpu.memory_space<vmem>>, vector<8x32xf32>
    %cst_44 = arith.constant dense<0.000000e+00> : vector<8x32xf32>
    %67 = tpu.matmul %65, %66, %cst_44 {dimension_numbers = #tpu.dot_dimension_numbers<[1], [0], [0], [1], [0, 0, 1, 1], [], []>} : vector<8x8xf32>, vector<8x32xf32>, vector<8x32xf32> -> vector<8x32xf32>
    %68 = arith.addf %51, %67 : vector<8x32xf32>
    %69 = vector.extract_strided_slice %26 {offsets = [0, 16], sizes = [8, 8], strides = [1, 1]} : vector<8x32xf32> to vector<8x8xf32>
    %70 = vector.extract_strided_slice %29 {offsets = [0, 16], sizes = [8, 8], strides = [1, 1]} : vector<8x32xf32> to vector<8x8xf32>
    %cst_45 = arith.constant dense<0.000000e+00> : vector<8x8xf32>
    %71 = tpu.matmul %69, %70, %cst_45 {dimension_numbers = #tpu.dot_dimension_numbers<[1], [1], [0], [0], [0, 0, 1, 0], [], []>} : vector<8x8xf32>, vector<8x8xf32>, vector<8x8xf32> -> vector<8x8xf32>
    %cst_46 = arith.constant dense<0xFF800000> : vector<8xf32>
    %72 = vector.multi_reduction <maximumf>, %71, %cst_46 [1] : vector<8x8xf32> to vector<8xf32>
    %73 = vector.shape_cast %72 : vector<8xf32> to vector<8x1xf32>
    %74 = vector.broadcast %73 : vector<8x1xf32> to vector<8x8xf32>
    %75 = arith.subf %71, %74 : vector<8x8xf32>
    %76 = math.exp %75 : vector<8x8xf32>
    %cst_47 = arith.constant dense<0.000000e+00> : vector<8xf32>
    %77 = vector.multi_reduction <add>, %76, %cst_47 [1] : vector<8x8xf32> to vector<8xf32>
    %78 = vector.shape_cast %77 : vector<8xf32> to vector<8x1xf32>
    %79 = vector.broadcast %78 : vector<8x1xf32> to vector<8x8xf32>
    %80 = arith.divf %76, %79 : vector<8x8xf32>
    %81 = vector.extract_strided_slice %33 {offsets = [0, 16], sizes = [8, 8], strides = [1, 1]} : vector<8x32xf32> to vector<8x8xf32>
    %cst_48 = arith.constant dense<0.000000e+00> : vector<8x8xf32>
    %82 = tpu.matmul %80, %81, %cst_48 {dimension_numbers = #tpu.dot_dimension_numbers<[1], [0], [0], [1], [0, 0, 1, 1], [], []>} : vector<8x8xf32>, vector<8x8xf32>, vector<8x8xf32> -> vector<8x8xf32>
    %c16 = arith.constant 16 : index
    %c0_49 = arith.constant 0 : index
    %83 = vector.load %arg7[%c16, %c0_49] : memref<32x32xf32, #tpu.memory_space<vmem>>, vector<8x32xf32>
    %cst_50 = arith.constant dense<0.000000e+00> : vector<8x32xf32>
    %84 = tpu.matmul %82, %83, %cst_50 {dimension_numbers = #tpu.dot_dimension_numbers<[1], [0], [0], [1], [0, 0, 1, 1], [], []>} : vector<8x8xf32>, vector<8x32xf32>, vector<8x32xf32> -> vector<8x32xf32>
    %85 = arith.addf %68, %84 : vector<8x32xf32>
    %86 = vector.extract_strided_slice %26 {offsets = [0, 24], sizes = [8, 8], strides = [1, 1]} : vector<8x32xf32> to vector<8x8xf32>
    %87 = vector.extract_strided_slice %29 {offsets = [0, 24], sizes = [8, 8], strides = [1, 1]} : vector<8x32xf32> to vector<8x8xf32>
    %cst_51 = arith.constant dense<0.000000e+00> : vector<8x8xf32>
    %88 = tpu.matmul %86, %87, %cst_51 {dimension_numbers = #tpu.dot_dimension_numbers<[1], [1], [0], [0], [0, 0, 1, 0], [], []>} : vector<8x8xf32>, vector<8x8xf32>, vector<8x8xf32> -> vector<8x8xf32>
    %cst_52 = arith.constant dense<0xFF800000> : vector<8xf32>
    %89 = vector.multi_reduction <maximumf>, %88, %cst_52 [1] : vector<8x8xf32> to vector<8xf32>
    %90 = vector.shape_cast %89 : vector<8xf32> to vector<8x1xf32>
    %91 = vector.broadcast %90 : vector<8x1xf32> to vector<8x8xf32>
    %92 = arith.subf %88, %91 : vector<8x8xf32>
    %93 = math.exp %92 : vector<8x8xf32>
    %cst_53 = arith.constant dense<0.000000e+00> : vector<8xf32>
    %94 = vector.multi_reduction <add>, %93, %cst_53 [1] : vector<8x8xf32> to vector<8xf32>
    %95 = vector.shape_cast %94 : vector<8xf32> to vector<8x1xf32>
    %96 = vector.broadcast %95 : vector<8x1xf32> to vector<8x8xf32>
    %97 = arith.divf %93, %96 : vector<8x8xf32>
    %98 = vector.extract_strided_slice %33 {offsets = [0, 24], sizes = [8, 8], strides = [1, 1]} : vector<8x32xf32> to vector<8x8xf32>
    %cst_54 = arith.constant dense<0.000000e+00> : vector<8x8xf32>
    %99 = tpu.matmul %97, %98, %cst_54 {dimension_numbers = #tpu.dot_dimension_numbers<[1], [0], [0], [1], [0, 0, 1, 1], [], []>} : vector<8x8xf32>, vector<8x8xf32>, vector<8x8xf32> -> vector<8x8xf32>
    %c24 = arith.constant 24 : index
    %c0_55 = arith.constant 0 : index
    %100 = vector.load %arg7[%c24, %c0_55] : memref<32x32xf32, #tpu.memory_space<vmem>>, vector<8x32xf32>
    %cst_56 = arith.constant dense<0.000000e+00> : vector<8x32xf32>
    %101 = tpu.matmul %99, %100, %cst_56 {dimension_numbers = #tpu.dot_dimension_numbers<[1], [0], [0], [1], [0, 0, 1, 1], [], []>} : vector<8x8xf32>, vector<8x32xf32>, vector<8x32xf32> -> vector<8x32xf32>
    %102 = arith.addf %85, %101 : vector<8x32xf32>
    %103 = vector.broadcast %11 : vector<1x32xf32> to vector<8x32xf32>
    %104 = arith.addf %102, %103 : vector<8x32xf32>
    %105 = arith.addf %1, %104 : vector<8x32xf32>
    %cst_57 = arith.constant dense<0.000000e+00> : vector<8xf32>
    %106 = vector.multi_reduction <add>, %105, %cst_57 [1] : vector<8x32xf32> to vector<8xf32>
    %107 = vector.shape_cast %106 : vector<8xf32> to vector<8x1xf32>
    %cst_58 = arith.constant 3.200000e+01 : f32
    %108 = vector.broadcast %cst_58 : f32 to vector<8x1xf32>
    %109 = arith.divf %107, %108 : vector<8x1xf32>
    %110 = vector.broadcast %109 : vector<8x1xf32> to vector<8x32xf32>
    %111 = arith.subf %105, %110 : vector<8x32xf32>
    %112 = arith.mulf %111, %111 : vector<8x32xf32>
    %cst_59 = arith.constant dense<0.000000e+00> : vector<8xf32>
    %113 = vector.multi_reduction <add>, %112, %cst_59 [1] : vector<8x32xf32> to vector<8xf32>
    %114 = vector.shape_cast %113 : vector<8xf32> to vector<8x1xf32>
    %cst_60 = arith.constant 3.200000e+01 : f32
    %115 = vector.broadcast %cst_60 : f32 to vector<8x1xf32>
    %116 = arith.divf %114, %115 : vector<8x1xf32>
    %cst_61 = arith.constant 9.99999974E-6 : f32
    %117 = vector.broadcast %cst_61 : f32 to vector<8x1xf32>
    %118 = arith.addf %116, %117 : vector<8x1xf32>
    %119 = math.rsqrt %118 : vector<8x1xf32>
    %120 = vector.broadcast %119 : vector<8x1xf32> to vector<8x32xf32>
    %121 = arith.mulf %111, %120 : vector<8x32xf32>
    %122 = vector.broadcast %12 : vector<1x32xf32> to vector<8x32xf32>
    %123 = arith.mulf %121, %122 : vector<8x32xf32>
    %124 = vector.broadcast %13 : vector<1x32xf32> to vector<8x32xf32>
    %125 = arith.addf %123, %124 : vector<8x32xf32>
    %126 = arith.addf %125, %3 : vector<8x32xf32>
    %c0_62 = arith.constant 0 : index
    %c0_63 = arith.constant 0 : index
    %127 = vector.load %arg8[%c0_62, %c0_63] : memref<32x32xf32, #tpu.memory_space<vmem>>, vector<32x32xf32>
    %cst_64 = arith.constant dense<0.000000e+00> : vector<24x32xf32>
    %128 = tpu.matmul %5, %127, %cst_64 {dimension_numbers = #tpu.dot_dimension_numbers<[1], [0], [0], [1], [0, 0, 1, 1], [], []>} : vector<24x32xf32>, vector<32x32xf32>, vector<24x32xf32> -> vector<24x32xf32>
    %129 = vector.broadcast %14 : vector<1x32xf32> to vector<24x32xf32>
    %130 = arith.addf %128, %129 : vector<24x32xf32>
    %c0_65 = arith.constant 0 : index
    %c0_66 = arith.constant 0 : index
    %131 = vector.load %arg9[%c0_65, %c0_66] : memref<32x32xf32, #tpu.memory_space<vmem>>, vector<32x32xf32>
    %cst_67 = arith.constant dense<0.000000e+00> : vector<8x32xf32>
    %132 = tpu.matmul %126, %131, %cst_67 {dimension_numbers = #tpu.dot_dimension_numbers<[1], [0], [0], [1], [0, 0, 1, 1], [], []>} : vector<8x32xf32>, vector<32x32xf32>, vector<8x32xf32> -> vector<8x32xf32>
    %c0_68 = arith.constant 0 : index
    %c0_69 = arith.constant 0 : index
    %133 = vector.load %arg16[%c0_68, %c0_69] : memref<1x32xf32, #tpu.memory_space<vmem>>, vector<1x32xf32>
    %134 = vector.broadcast %133 : vector<1x32xf32> to vector<8x32xf32>
    %135 = arith.addf %132, %134 : vector<8x32xf32>
    %c0_70 = arith.constant 0 : index
    %c0_71 = arith.constant 0 : index
    %136 = vector.load %arg10[%c0_70, %c0_71] : memref<32x16xf32, #tpu.memory_space<vmem>>, vector<32x16xf32>
    %cst_72 = arith.constant dense<0.000000e+00> : vector<8x16xf32>
    %137 = tpu.matmul %126, %136, %cst_72 {dimension_numbers = #tpu.dot_dimension_numbers<[1], [0], [0], [1], [0, 0, 1, 1], [], []>} : vector<8x32xf32>, vector<32x16xf32>, vector<8x16xf32> -> vector<8x16xf32>
    %c0_73 = arith.constant 0 : index
    %c0_74 = arith.constant 0 : index
    %138 = vector.load %arg17[%c0_73, %c0_74] : memref<1x16xf32, #tpu.memory_space<vmem>>, vector<1x16xf32>
    %139 = vector.broadcast %138 : vector<1x16xf32> to vector<8x16xf32>
    %140 = arith.addf %137, %139 : vector<8x16xf32>
    %c0_75 = arith.constant 0 : index
    %c0_76 = arith.constant 0 : index
    %141 = vector.load %arg18[%c0_75, %c0_76] : memref<2x24xf32, #tpu.memory_space<vmem>>, vector<1x24xf32>
    %c1_77 = arith.constant 1 : index
    %c0_78 = arith.constant 0 : index
    %142 = vector.load %arg18[%c1_77, %c0_78] : memref<2x24xf32, #tpu.memory_space<vmem>>, vector<1x24xf32>
    %143 = vector.extract_strided_slice %7 {offsets = [0, 0], sizes = [8, 1], strides = [1, 1]} : vector<8x4xf32> to vector<8x1xf32>
    %144 = vector.extract_strided_slice %7 {offsets = [0, 1], sizes = [8, 1], strides = [1, 1]} : vector<8x4xf32> to vector<8x1xf32>
    %145 = vector.extract_strided_slice %7 {offsets = [0, 2], sizes = [8, 1], strides = [1, 1]} : vector<8x4xf32> to vector<8x1xf32>
    %146 = vector.extract_strided_slice %7 {offsets = [0, 3], sizes = [8, 1], strides = [1, 1]} : vector<8x4xf32> to vector<8x1xf32>
    %cst_79 = arith.constant 0.000000e+00 : f32
    %147 = vector.broadcast %cst_79 : f32 to vector<8x32xf32>
    %148 = vector.extract_strided_slice %140 {offsets = [0, 0], sizes = [8, 4], strides = [1, 1]} : vector<8x16xf32> to vector<8x4xf32>
    %cst_80 = arith.constant dense<0xFF800000> : vector<8xf32>
    %149 = vector.multi_reduction <maximumf>, %148, %cst_80 [1] : vector<8x4xf32> to vector<8xf32>
    %150 = vector.shape_cast %149 : vector<8xf32> to vector<8x1xf32>
    %151 = vector.broadcast %150 : vector<8x1xf32> to vector<8x4xf32>
    %152 = arith.subf %148, %151 : vector<8x4xf32>
    %153 = math.exp %152 : vector<8x4xf32>
    %cst_81 = arith.constant dense<0.000000e+00> : vector<8xf32>
    %154 = vector.multi_reduction <add>, %153, %cst_81 [1] : vector<8x4xf32> to vector<8xf32>
    %155 = vector.shape_cast %154 : vector<8xf32> to vector<8x1xf32>
    %156 = vector.broadcast %155 : vector<8x1xf32> to vector<8x4xf32>
    %157 = arith.divf %153, %156 : vector<8x4xf32>
    %cst_82 = arith.constant 0.000000e+00 : f32
    %158 = vector.broadcast %cst_82 : f32 to vector<8x8xf32>
    %159 = vector.extract_strided_slice %141 {offsets = [0, 0], sizes = [1, 16], strides = [1, 1]} : vector<1x24xf32> to vector<1x16xf32>
    %160 = vector.extract_strided_slice %142 {offsets = [0, 0], sizes = [1, 16], strides = [1, 1]} : vector<1x24xf32> to vector<1x16xf32>
    %cst_83 = arith.constant 0.000000e+00 : f32
    %161 = vector.broadcast %cst_83 : f32 to vector<8x16xf32>
    %162 = vector.extract_strided_slice %135 {offsets = [0, 0], sizes = [8, 1], strides = [1, 1]} : vector<8x32xf32> to vector<8x1xf32>
    %163 = vector.extract_strided_slice %135 {offsets = [0, 1], sizes = [8, 1], strides = [1, 1]} : vector<8x32xf32> to vector<8x1xf32>
    %cst_84 = arith.constant 4.000000e+00 : f32
    %164 = vector.broadcast %cst_84 : f32 to vector<8x1xf32>
    %165 = arith.mulf %143, %164 : vector<8x1xf32>
    %166 = arith.addf %165, %162 : vector<8x1xf32>
    %cst_85 = arith.constant 5.000000e-01 : f32
    %167 = vector.broadcast %cst_85 : f32 to vector<8x1xf32>
    %168 = arith.subf %166, %167 : vector<8x1xf32>
    %cst_86 = arith.constant 4.000000e+00 : f32
    %169 = vector.broadcast %cst_86 : f32 to vector<8x1xf32>
    %170 = arith.mulf %144, %169 : vector<8x1xf32>
    %171 = arith.addf %170, %163 : vector<8x1xf32>
    %cst_87 = arith.constant 5.000000e-01 : f32
    %172 = vector.broadcast %cst_87 : f32 to vector<8x1xf32>
    %173 = arith.subf %171, %172 : vector<8x1xf32>
    %174 = vector.broadcast %168 : vector<8x1xf32> to vector<8x16xf32>
    %175 = vector.broadcast %159 : vector<1x16xf32> to vector<8x16xf32>
    %176 = arith.subf %174, %175 : vector<8x16xf32>
    %177 = math.absf %176 : vector<8x16xf32>
    %cst_88 = arith.constant 1.000000e+00 : f32
    %178 = vector.broadcast %cst_88 : f32 to vector<8x16xf32>
    %179 = arith.subf %178, %177 : vector<8x16xf32>
    %cst_89 = arith.constant 0.000000e+00 : f32
    %180 = vector.broadcast %cst_89 : f32 to vector<8x16xf32>
    %181 = arith.maximumf %179, %180 : vector<8x16xf32>
    %182 = vector.broadcast %173 : vector<8x1xf32> to vector<8x16xf32>
    %183 = vector.broadcast %160 : vector<1x16xf32> to vector<8x16xf32>
    %184 = arith.subf %182, %183 : vector<8x16xf32>
    %185 = math.absf %184 : vector<8x16xf32>
    %cst_90 = arith.constant 1.000000e+00 : f32
    %186 = vector.broadcast %cst_90 : f32 to vector<8x16xf32>
    %187 = arith.subf %186, %185 : vector<8x16xf32>
    %cst_91 = arith.constant 0.000000e+00 : f32
    %188 = vector.broadcast %cst_91 : f32 to vector<8x16xf32>
    %189 = arith.maximumf %187, %188 : vector<8x16xf32>
    %190 = arith.mulf %181, %189 : vector<8x16xf32>
    %191 = vector.extract_strided_slice %157 {offsets = [0, 0], sizes = [8, 1], strides = [1, 1]} : vector<8x4xf32> to vector<8x1xf32>
    %192 = vector.broadcast %191 : vector<8x1xf32> to vector<8x16xf32>
    %193 = arith.mulf %192, %190 : vector<8x16xf32>
    %194 = arith.addf %161, %193 : vector<8x16xf32>
    %195 = vector.extract_strided_slice %135 {offsets = [0, 2], sizes = [8, 1], strides = [1, 1]} : vector<8x32xf32> to vector<8x1xf32>
    %196 = vector.extract_strided_slice %135 {offsets = [0, 3], sizes = [8, 1], strides = [1, 1]} : vector<8x32xf32> to vector<8x1xf32>
    %cst_92 = arith.constant 4.000000e+00 : f32
    %197 = vector.broadcast %cst_92 : f32 to vector<8x1xf32>
    %198 = arith.mulf %143, %197 : vector<8x1xf32>
    %199 = arith.addf %198, %195 : vector<8x1xf32>
    %cst_93 = arith.constant 5.000000e-01 : f32
    %200 = vector.broadcast %cst_93 : f32 to vector<8x1xf32>
    %201 = arith.subf %199, %200 : vector<8x1xf32>
    %cst_94 = arith.constant 4.000000e+00 : f32
    %202 = vector.broadcast %cst_94 : f32 to vector<8x1xf32>
    %203 = arith.mulf %144, %202 : vector<8x1xf32>
    %204 = arith.addf %203, %196 : vector<8x1xf32>
    %cst_95 = arith.constant 5.000000e-01 : f32
    %205 = vector.broadcast %cst_95 : f32 to vector<8x1xf32>
    %206 = arith.subf %204, %205 : vector<8x1xf32>
    %207 = vector.broadcast %201 : vector<8x1xf32> to vector<8x16xf32>
    %208 = vector.broadcast %159 : vector<1x16xf32> to vector<8x16xf32>
    %209 = arith.subf %207, %208 : vector<8x16xf32>
    %210 = math.absf %209 : vector<8x16xf32>
    %cst_96 = arith.constant 1.000000e+00 : f32
    %211 = vector.broadcast %cst_96 : f32 to vector<8x16xf32>
    %212 = arith.subf %211, %210 : vector<8x16xf32>
    %cst_97 = arith.constant 0.000000e+00 : f32
    %213 = vector.broadcast %cst_97 : f32 to vector<8x16xf32>
    %214 = arith.maximumf %212, %213 : vector<8x16xf32>
    %215 = vector.broadcast %206 : vector<8x1xf32> to vector<8x16xf32>
    %216 = vector.broadcast %160 : vector<1x16xf32> to vector<8x16xf32>
    %217 = arith.subf %215, %216 : vector<8x16xf32>
    %218 = math.absf %217 : vector<8x16xf32>
    %cst_98 = arith.constant 1.000000e+00 : f32
    %219 = vector.broadcast %cst_98 : f32 to vector<8x16xf32>
    %220 = arith.subf %219, %218 : vector<8x16xf32>
    %cst_99 = arith.constant 0.000000e+00 : f32
    %221 = vector.broadcast %cst_99 : f32 to vector<8x16xf32>
    %222 = arith.maximumf %220, %221 : vector<8x16xf32>
    %223 = arith.mulf %214, %222 : vector<8x16xf32>
    %224 = vector.extract_strided_slice %157 {offsets = [0, 1], sizes = [8, 1], strides = [1, 1]} : vector<8x4xf32> to vector<8x1xf32>
    %225 = vector.broadcast %224 : vector<8x1xf32> to vector<8x16xf32>
    %226 = arith.mulf %225, %223 : vector<8x16xf32>
    %227 = arith.addf %194, %226 : vector<8x16xf32>
    %228 = vector.extract_strided_slice %130 {offsets = [0, 0], sizes = [16, 8], strides = [1, 1]} : vector<24x32xf32> to vector<16x8xf32>
    %cst_100 = arith.constant dense<0.000000e+00> : vector<8x8xf32>
    %229 = tpu.matmul %227, %228, %cst_100 {dimension_numbers = #tpu.dot_dimension_numbers<[1], [0], [0], [1], [0, 0, 1, 1], [], []>} : vector<8x16xf32>, vector<16x8xf32>, vector<8x8xf32> -> vector<8x8xf32>
    %230 = arith.addf %158, %229 : vector<8x8xf32>
    %231 = vector.extract_strided_slice %141 {offsets = [0, 16], sizes = [1, 8], strides = [1, 1]} : vector<1x24xf32> to vector<1x8xf32>
    %232 = vector.extract_strided_slice %142 {offsets = [0, 16], sizes = [1, 8], strides = [1, 1]} : vector<1x24xf32> to vector<1x8xf32>
    %cst_101 = arith.constant 0.000000e+00 : f32
    %233 = vector.broadcast %cst_101 : f32 to vector<8x8xf32>
    %234 = vector.extract_strided_slice %135 {offsets = [0, 4], sizes = [8, 1], strides = [1, 1]} : vector<8x32xf32> to vector<8x1xf32>
    %235 = vector.extract_strided_slice %135 {offsets = [0, 5], sizes = [8, 1], strides = [1, 1]} : vector<8x32xf32> to vector<8x1xf32>
    %cst_102 = arith.constant 4.000000e+00 : f32
    %236 = vector.broadcast %cst_102 : f32 to vector<8x1xf32>
    %237 = arith.mulf %145, %236 : vector<8x1xf32>
    %238 = arith.addf %237, %234 : vector<8x1xf32>
    %cst_103 = arith.constant 5.000000e-01 : f32
    %239 = vector.broadcast %cst_103 : f32 to vector<8x1xf32>
    %240 = arith.subf %238, %239 : vector<8x1xf32>
    %cst_104 = arith.constant 2.000000e+00 : f32
    %241 = vector.broadcast %cst_104 : f32 to vector<8x1xf32>
    %242 = arith.mulf %146, %241 : vector<8x1xf32>
    %243 = arith.addf %242, %235 : vector<8x1xf32>
    %cst_105 = arith.constant 5.000000e-01 : f32
    %244 = vector.broadcast %cst_105 : f32 to vector<8x1xf32>
    %245 = arith.subf %243, %244 : vector<8x1xf32>
    %246 = vector.broadcast %240 : vector<8x1xf32> to vector<8x8xf32>
    %247 = vector.broadcast %231 : vector<1x8xf32> to vector<8x8xf32>
    %248 = arith.subf %246, %247 : vector<8x8xf32>
    %249 = math.absf %248 : vector<8x8xf32>
    %cst_106 = arith.constant 1.000000e+00 : f32
    %250 = vector.broadcast %cst_106 : f32 to vector<8x8xf32>
    %251 = arith.subf %250, %249 : vector<8x8xf32>
    %cst_107 = arith.constant 0.000000e+00 : f32
    %252 = vector.broadcast %cst_107 : f32 to vector<8x8xf32>
    %253 = arith.maximumf %251, %252 : vector<8x8xf32>
    %254 = vector.broadcast %245 : vector<8x1xf32> to vector<8x8xf32>
    %255 = vector.broadcast %232 : vector<1x8xf32> to vector<8x8xf32>
    %256 = arith.subf %254, %255 : vector<8x8xf32>
    %257 = math.absf %256 : vector<8x8xf32>
    %cst_108 = arith.constant 1.000000e+00 : f32
    %258 = vector.broadcast %cst_108 : f32 to vector<8x8xf32>
    %259 = arith.subf %258, %257 : vector<8x8xf32>
    %cst_109 = arith.constant 0.000000e+00 : f32
    %260 = vector.broadcast %cst_109 : f32 to vector<8x8xf32>
    %261 = arith.maximumf %259, %260 : vector<8x8xf32>
    %262 = arith.mulf %253, %261 : vector<8x8xf32>
    %263 = vector.extract_strided_slice %157 {offsets = [0, 2], sizes = [8, 1], strides = [1, 1]} : vector<8x4xf32> to vector<8x1xf32>
    %264 = vector.broadcast %263 : vector<8x1xf32> to vector<8x8xf32>
    %265 = arith.mulf %264, %262 : vector<8x8xf32>
    %266 = arith.addf %233, %265 : vector<8x8xf32>
    %267 = vector.extract_strided_slice %135 {offsets = [0, 6], sizes = [8, 1], strides = [1, 1]} : vector<8x32xf32> to vector<8x1xf32>
    %268 = vector.extract_strided_slice %135 {offsets = [0, 7], sizes = [8, 1], strides = [1, 1]} : vector<8x32xf32> to vector<8x1xf32>
    %cst_110 = arith.constant 4.000000e+00 : f32
    %269 = vector.broadcast %cst_110 : f32 to vector<8x1xf32>
    %270 = arith.mulf %145, %269 : vector<8x1xf32>
    %271 = arith.addf %270, %267 : vector<8x1xf32>
    %cst_111 = arith.constant 5.000000e-01 : f32
    %272 = vector.broadcast %cst_111 : f32 to vector<8x1xf32>
    %273 = arith.subf %271, %272 : vector<8x1xf32>
    %cst_112 = arith.constant 2.000000e+00 : f32
    %274 = vector.broadcast %cst_112 : f32 to vector<8x1xf32>
    %275 = arith.mulf %146, %274 : vector<8x1xf32>
    %276 = arith.addf %275, %268 : vector<8x1xf32>
    %cst_113 = arith.constant 5.000000e-01 : f32
    %277 = vector.broadcast %cst_113 : f32 to vector<8x1xf32>
    %278 = arith.subf %276, %277 : vector<8x1xf32>
    %279 = vector.broadcast %273 : vector<8x1xf32> to vector<8x8xf32>
    %280 = vector.broadcast %231 : vector<1x8xf32> to vector<8x8xf32>
    %281 = arith.subf %279, %280 : vector<8x8xf32>
    %282 = math.absf %281 : vector<8x8xf32>
    %cst_114 = arith.constant 1.000000e+00 : f32
    %283 = vector.broadcast %cst_114 : f32 to vector<8x8xf32>
    %284 = arith.subf %283, %282 : vector<8x8xf32>
    %cst_115 = arith.constant 0.000000e+00 : f32
    %285 = vector.broadcast %cst_115 : f32 to vector<8x8xf32>
    %286 = arith.maximumf %284, %285 : vector<8x8xf32>
    %287 = vector.broadcast %278 : vector<8x1xf32> to vector<8x8xf32>
    %288 = vector.broadcast %232 : vector<1x8xf32> to vector<8x8xf32>
    %289 = arith.subf %287, %288 : vector<8x8xf32>
    %290 = math.absf %289 : vector<8x8xf32>
    %cst_116 = arith.constant 1.000000e+00 : f32
    %291 = vector.broadcast %cst_116 : f32 to vector<8x8xf32>
    %292 = arith.subf %291, %290 : vector<8x8xf32>
    %cst_117 = arith.constant 0.000000e+00 : f32
    %293 = vector.broadcast %cst_117 : f32 to vector<8x8xf32>
    %294 = arith.maximumf %292, %293 : vector<8x8xf32>
    %295 = arith.mulf %286, %294 : vector<8x8xf32>
    %296 = vector.extract_strided_slice %157 {offsets = [0, 3], sizes = [8, 1], strides = [1, 1]} : vector<8x4xf32> to vector<8x1xf32>
    %297 = vector.broadcast %296 : vector<8x1xf32> to vector<8x8xf32>
    %298 = arith.mulf %297, %295 : vector<8x8xf32>
    %299 = arith.addf %266, %298 : vector<8x8xf32>
    %300 = vector.extract_strided_slice %130 {offsets = [16, 0], sizes = [8, 8], strides = [1, 1]} : vector<24x32xf32> to vector<8x8xf32>
    %cst_118 = arith.constant dense<0.000000e+00> : vector<8x8xf32>
    %301 = tpu.matmul %299, %300, %cst_118 {dimension_numbers = #tpu.dot_dimension_numbers<[1], [0], [0], [1], [0, 0, 1, 1], [], []>} : vector<8x8xf32>, vector<8x8xf32>, vector<8x8xf32> -> vector<8x8xf32>
    %302 = arith.addf %230, %301 : vector<8x8xf32>
    %c0_119 = arith.constant 0 : index
    %c0_120 = arith.constant 0 : index
    %303 = vector.load %arg11[%c0_119, %c0_120] : memref<32x32xf32, #tpu.memory_space<vmem>>, vector<8x32xf32>
    %cst_121 = arith.constant dense<0.000000e+00> : vector<8x32xf32>
    %304 = tpu.matmul %302, %303, %cst_121 {dimension_numbers = #tpu.dot_dimension_numbers<[1], [0], [0], [1], [0, 0, 1, 1], [], []>} : vector<8x8xf32>, vector<8x32xf32>, vector<8x32xf32> -> vector<8x32xf32>
    %305 = arith.addf %147, %304 : vector<8x32xf32>
    %306 = vector.extract_strided_slice %140 {offsets = [0, 4], sizes = [8, 4], strides = [1, 1]} : vector<8x16xf32> to vector<8x4xf32>
    %cst_122 = arith.constant dense<0xFF800000> : vector<8xf32>
    %307 = vector.multi_reduction <maximumf>, %306, %cst_122 [1] : vector<8x4xf32> to vector<8xf32>
    %308 = vector.shape_cast %307 : vector<8xf32> to vector<8x1xf32>
    %309 = vector.broadcast %308 : vector<8x1xf32> to vector<8x4xf32>
    %310 = arith.subf %306, %309 : vector<8x4xf32>
    %311 = math.exp %310 : vector<8x4xf32>
    %cst_123 = arith.constant dense<0.000000e+00> : vector<8xf32>
    %312 = vector.multi_reduction <add>, %311, %cst_123 [1] : vector<8x4xf32> to vector<8xf32>
    %313 = vector.shape_cast %312 : vector<8xf32> to vector<8x1xf32>
    %314 = vector.broadcast %313 : vector<8x1xf32> to vector<8x4xf32>
    %315 = arith.divf %311, %314 : vector<8x4xf32>
    %cst_124 = arith.constant 0.000000e+00 : f32
    %316 = vector.broadcast %cst_124 : f32 to vector<8x8xf32>
    %317 = vector.extract_strided_slice %141 {offsets = [0, 0], sizes = [1, 16], strides = [1, 1]} : vector<1x24xf32> to vector<1x16xf32>
    %318 = vector.extract_strided_slice %142 {offsets = [0, 0], sizes = [1, 16], strides = [1, 1]} : vector<1x24xf32> to vector<1x16xf32>
    %cst_125 = arith.constant 0.000000e+00 : f32
    %319 = vector.broadcast %cst_125 : f32 to vector<8x16xf32>
    %320 = vector.extract_strided_slice %135 {offsets = [0, 8], sizes = [8, 1], strides = [1, 1]} : vector<8x32xf32> to vector<8x1xf32>
    %321 = vector.extract_strided_slice %135 {offsets = [0, 9], sizes = [8, 1], strides = [1, 1]} : vector<8x32xf32> to vector<8x1xf32>
    %cst_126 = arith.constant 4.000000e+00 : f32
    %322 = vector.broadcast %cst_126 : f32 to vector<8x1xf32>
    %323 = arith.mulf %143, %322 : vector<8x1xf32>
    %324 = arith.addf %323, %320 : vector<8x1xf32>
    %cst_127 = arith.constant 5.000000e-01 : f32
    %325 = vector.broadcast %cst_127 : f32 to vector<8x1xf32>
    %326 = arith.subf %324, %325 : vector<8x1xf32>
    %cst_128 = arith.constant 4.000000e+00 : f32
    %327 = vector.broadcast %cst_128 : f32 to vector<8x1xf32>
    %328 = arith.mulf %144, %327 : vector<8x1xf32>
    %329 = arith.addf %328, %321 : vector<8x1xf32>
    %cst_129 = arith.constant 5.000000e-01 : f32
    %330 = vector.broadcast %cst_129 : f32 to vector<8x1xf32>
    %331 = arith.subf %329, %330 : vector<8x1xf32>
    %332 = vector.broadcast %326 : vector<8x1xf32> to vector<8x16xf32>
    %333 = vector.broadcast %317 : vector<1x16xf32> to vector<8x16xf32>
    %334 = arith.subf %332, %333 : vector<8x16xf32>
    %335 = math.absf %334 : vector<8x16xf32>
    %cst_130 = arith.constant 1.000000e+00 : f32
    %336 = vector.broadcast %cst_130 : f32 to vector<8x16xf32>
    %337 = arith.subf %336, %335 : vector<8x16xf32>
    %cst_131 = arith.constant 0.000000e+00 : f32
    %338 = vector.broadcast %cst_131 : f32 to vector<8x16xf32>
    %339 = arith.maximumf %337, %338 : vector<8x16xf32>
    %340 = vector.broadcast %331 : vector<8x1xf32> to vector<8x16xf32>
    %341 = vector.broadcast %318 : vector<1x16xf32> to vector<8x16xf32>
    %342 = arith.subf %340, %341 : vector<8x16xf32>
    %343 = math.absf %342 : vector<8x16xf32>
    %cst_132 = arith.constant 1.000000e+00 : f32
    %344 = vector.broadcast %cst_132 : f32 to vector<8x16xf32>
    %345 = arith.subf %344, %343 : vector<8x16xf32>
    %cst_133 = arith.constant 0.000000e+00 : f32
    %346 = vector.broadcast %cst_133 : f32 to vector<8x16xf32>
    %347 = arith.maximumf %345, %346 : vector<8x16xf32>
    %348 = arith.mulf %339, %347 : vector<8x16xf32>
    %349 = vector.extract_strided_slice %315 {offsets = [0, 0], sizes = [8, 1], strides = [1, 1]} : vector<8x4xf32> to vector<8x1xf32>
    %350 = vector.broadcast %349 : vector<8x1xf32> to vector<8x16xf32>
    %351 = arith.mulf %350, %348 : vector<8x16xf32>
    %352 = arith.addf %319, %351 : vector<8x16xf32>
    %353 = vector.extract_strided_slice %135 {offsets = [0, 10], sizes = [8, 1], strides = [1, 1]} : vector<8x32xf32> to vector<8x1xf32>
    %354 = vector.extract_strided_slice %135 {offsets = [0, 11], sizes = [8, 1], strides = [1, 1]} : vector<8x32xf32> to vector<8x1xf32>
    %cst_134 = arith.constant 4.000000e+00 : f32
    %355 = vector.broadcast %cst_134 : f32 to vector<8x1xf32>
    %356 = arith.mulf %143, %355 : vector<8x1xf32>
    %357 = arith.addf %356, %353 : vector<8x1xf32>
    %cst_135 = arith.constant 5.000000e-01 : f32
    %358 = vector.broadcast %cst_135 : f32 to vector<8x1xf32>
    %359 = arith.subf %357, %358 : vector<8x1xf32>
    %cst_136 = arith.constant 4.000000e+00 : f32
    %360 = vector.broadcast %cst_136 : f32 to vector<8x1xf32>
    %361 = arith.mulf %144, %360 : vector<8x1xf32>
    %362 = arith.addf %361, %354 : vector<8x1xf32>
    %cst_137 = arith.constant 5.000000e-01 : f32
    %363 = vector.broadcast %cst_137 : f32 to vector<8x1xf32>
    %364 = arith.subf %362, %363 : vector<8x1xf32>
    %365 = vector.broadcast %359 : vector<8x1xf32> to vector<8x16xf32>
    %366 = vector.broadcast %317 : vector<1x16xf32> to vector<8x16xf32>
    %367 = arith.subf %365, %366 : vector<8x16xf32>
    %368 = math.absf %367 : vector<8x16xf32>
    %cst_138 = arith.constant 1.000000e+00 : f32
    %369 = vector.broadcast %cst_138 : f32 to vector<8x16xf32>
    %370 = arith.subf %369, %368 : vector<8x16xf32>
    %cst_139 = arith.constant 0.000000e+00 : f32
    %371 = vector.broadcast %cst_139 : f32 to vector<8x16xf32>
    %372 = arith.maximumf %370, %371 : vector<8x16xf32>
    %373 = vector.broadcast %364 : vector<8x1xf32> to vector<8x16xf32>
    %374 = vector.broadcast %318 : vector<1x16xf32> to vector<8x16xf32>
    %375 = arith.subf %373, %374 : vector<8x16xf32>
    %376 = math.absf %375 : vector<8x16xf32>
    %cst_140 = arith.constant 1.000000e+00 : f32
    %377 = vector.broadcast %cst_140 : f32 to vector<8x16xf32>
    %378 = arith.subf %377, %376 : vector<8x16xf32>
    %cst_141 = arith.constant 0.000000e+00 : f32
    %379 = vector.broadcast %cst_141 : f32 to vector<8x16xf32>
    %380 = arith.maximumf %378, %379 : vector<8x16xf32>
    %381 = arith.mulf %372, %380 : vector<8x16xf32>
    %382 = vector.extract_strided_slice %315 {offsets = [0, 1], sizes = [8, 1], strides = [1, 1]} : vector<8x4xf32> to vector<8x1xf32>
    %383 = vector.broadcast %382 : vector<8x1xf32> to vector<8x16xf32>
    %384 = arith.mulf %383, %381 : vector<8x16xf32>
    %385 = arith.addf %352, %384 : vector<8x16xf32>
    %386 = vector.extract_strided_slice %130 {offsets = [0, 8], sizes = [16, 8], strides = [1, 1]} : vector<24x32xf32> to vector<16x8xf32>
    %cst_142 = arith.constant dense<0.000000e+00> : vector<8x8xf32>
    %387 = tpu.matmul %385, %386, %cst_142 {dimension_numbers = #tpu.dot_dimension_numbers<[1], [0], [0], [1], [0, 0, 1, 1], [], []>} : vector<8x16xf32>, vector<16x8xf32>, vector<8x8xf32> -> vector<8x8xf32>
    %388 = arith.addf %316, %387 : vector<8x8xf32>
    %389 = vector.extract_strided_slice %141 {offsets = [0, 16], sizes = [1, 8], strides = [1, 1]} : vector<1x24xf32> to vector<1x8xf32>
    %390 = vector.extract_strided_slice %142 {offsets = [0, 16], sizes = [1, 8], strides = [1, 1]} : vector<1x24xf32> to vector<1x8xf32>
    %cst_143 = arith.constant 0.000000e+00 : f32
    %391 = vector.broadcast %cst_143 : f32 to vector<8x8xf32>
    %392 = vector.extract_strided_slice %135 {offsets = [0, 12], sizes = [8, 1], strides = [1, 1]} : vector<8x32xf32> to vector<8x1xf32>
    %393 = vector.extract_strided_slice %135 {offsets = [0, 13], sizes = [8, 1], strides = [1, 1]} : vector<8x32xf32> to vector<8x1xf32>
    %cst_144 = arith.constant 4.000000e+00 : f32
    %394 = vector.broadcast %cst_144 : f32 to vector<8x1xf32>
    %395 = arith.mulf %145, %394 : vector<8x1xf32>
    %396 = arith.addf %395, %392 : vector<8x1xf32>
    %cst_145 = arith.constant 5.000000e-01 : f32
    %397 = vector.broadcast %cst_145 : f32 to vector<8x1xf32>
    %398 = arith.subf %396, %397 : vector<8x1xf32>
    %cst_146 = arith.constant 2.000000e+00 : f32
    %399 = vector.broadcast %cst_146 : f32 to vector<8x1xf32>
    %400 = arith.mulf %146, %399 : vector<8x1xf32>
    %401 = arith.addf %400, %393 : vector<8x1xf32>
    %cst_147 = arith.constant 5.000000e-01 : f32
    %402 = vector.broadcast %cst_147 : f32 to vector<8x1xf32>
    %403 = arith.subf %401, %402 : vector<8x1xf32>
    %404 = vector.broadcast %398 : vector<8x1xf32> to vector<8x8xf32>
    %405 = vector.broadcast %389 : vector<1x8xf32> to vector<8x8xf32>
    %406 = arith.subf %404, %405 : vector<8x8xf32>
    %407 = math.absf %406 : vector<8x8xf32>
    %cst_148 = arith.constant 1.000000e+00 : f32
    %408 = vector.broadcast %cst_148 : f32 to vector<8x8xf32>
    %409 = arith.subf %408, %407 : vector<8x8xf32>
    %cst_149 = arith.constant 0.000000e+00 : f32
    %410 = vector.broadcast %cst_149 : f32 to vector<8x8xf32>
    %411 = arith.maximumf %409, %410 : vector<8x8xf32>
    %412 = vector.broadcast %403 : vector<8x1xf32> to vector<8x8xf32>
    %413 = vector.broadcast %390 : vector<1x8xf32> to vector<8x8xf32>
    %414 = arith.subf %412, %413 : vector<8x8xf32>
    %415 = math.absf %414 : vector<8x8xf32>
    %cst_150 = arith.constant 1.000000e+00 : f32
    %416 = vector.broadcast %cst_150 : f32 to vector<8x8xf32>
    %417 = arith.subf %416, %415 : vector<8x8xf32>
    %cst_151 = arith.constant 0.000000e+00 : f32
    %418 = vector.broadcast %cst_151 : f32 to vector<8x8xf32>
    %419 = arith.maximumf %417, %418 : vector<8x8xf32>
    %420 = arith.mulf %411, %419 : vector<8x8xf32>
    %421 = vector.extract_strided_slice %315 {offsets = [0, 2], sizes = [8, 1], strides = [1, 1]} : vector<8x4xf32> to vector<8x1xf32>
    %422 = vector.broadcast %421 : vector<8x1xf32> to vector<8x8xf32>
    %423 = arith.mulf %422, %420 : vector<8x8xf32>
    %424 = arith.addf %391, %423 : vector<8x8xf32>
    %425 = vector.extract_strided_slice %135 {offsets = [0, 14], sizes = [8, 1], strides = [1, 1]} : vector<8x32xf32> to vector<8x1xf32>
    %426 = vector.extract_strided_slice %135 {offsets = [0, 15], sizes = [8, 1], strides = [1, 1]} : vector<8x32xf32> to vector<8x1xf32>
    %cst_152 = arith.constant 4.000000e+00 : f32
    %427 = vector.broadcast %cst_152 : f32 to vector<8x1xf32>
    %428 = arith.mulf %145, %427 : vector<8x1xf32>
    %429 = arith.addf %428, %425 : vector<8x1xf32>
    %cst_153 = arith.constant 5.000000e-01 : f32
    %430 = vector.broadcast %cst_153 : f32 to vector<8x1xf32>
    %431 = arith.subf %429, %430 : vector<8x1xf32>
    %cst_154 = arith.constant 2.000000e+00 : f32
    %432 = vector.broadcast %cst_154 : f32 to vector<8x1xf32>
    %433 = arith.mulf %146, %432 : vector<8x1xf32>
    %434 = arith.addf %433, %426 : vector<8x1xf32>
    %cst_155 = arith.constant 5.000000e-01 : f32
    %435 = vector.broadcast %cst_155 : f32 to vector<8x1xf32>
    %436 = arith.subf %434, %435 : vector<8x1xf32>
    %437 = vector.broadcast %431 : vector<8x1xf32> to vector<8x8xf32>
    %438 = vector.broadcast %389 : vector<1x8xf32> to vector<8x8xf32>
    %439 = arith.subf %437, %438 : vector<8x8xf32>
    %440 = math.absf %439 : vector<8x8xf32>
    %cst_156 = arith.constant 1.000000e+00 : f32
    %441 = vector.broadcast %cst_156 : f32 to vector<8x8xf32>
    %442 = arith.subf %441, %440 : vector<8x8xf32>
    %cst_157 = arith.constant 0.000000e+00 : f32
    %443 = vector.broadcast %cst_157 : f32 to vector<8x8xf32>
    %444 = arith.maximumf %442, %443 : vector<8x8xf32>
    %445 = vector.broadcast %436 : vector<8x1xf32> to vector<8x8xf32>
    %446 = vector.broadcast %390 : vector<1x8xf32> to vector<8x8xf32>
    %447 = arith.subf %445, %446 : vector<8x8xf32>
    %448 = math.absf %447 : vector<8x8xf32>
    %cst_158 = arith.constant 1.000000e+00 : f32
    %449 = vector.broadcast %cst_158 : f32 to vector<8x8xf32>
    %450 = arith.subf %449, %448 : vector<8x8xf32>
    %cst_159 = arith.constant 0.000000e+00 : f32
    %451 = vector.broadcast %cst_159 : f32 to vector<8x8xf32>
    %452 = arith.maximumf %450, %451 : vector<8x8xf32>
    %453 = arith.mulf %444, %452 : vector<8x8xf32>
    %454 = vector.extract_strided_slice %315 {offsets = [0, 3], sizes = [8, 1], strides = [1, 1]} : vector<8x4xf32> to vector<8x1xf32>
    %455 = vector.broadcast %454 : vector<8x1xf32> to vector<8x8xf32>
    %456 = arith.mulf %455, %453 : vector<8x8xf32>
    %457 = arith.addf %424, %456 : vector<8x8xf32>
    %458 = vector.extract_strided_slice %130 {offsets = [16, 8], sizes = [8, 8], strides = [1, 1]} : vector<24x32xf32> to vector<8x8xf32>
    %cst_160 = arith.constant dense<0.000000e+00> : vector<8x8xf32>
    %459 = tpu.matmul %457, %458, %cst_160 {dimension_numbers = #tpu.dot_dimension_numbers<[1], [0], [0], [1], [0, 0, 1, 1], [], []>} : vector<8x8xf32>, vector<8x8xf32>, vector<8x8xf32> -> vector<8x8xf32>
    %460 = arith.addf %388, %459 : vector<8x8xf32>
    %c8_161 = arith.constant 8 : index
    %c0_162 = arith.constant 0 : index
    %461 = vector.load %arg11[%c8_161, %c0_162] : memref<32x32xf32, #tpu.memory_space<vmem>>, vector<8x32xf32>
    %cst_163 = arith.constant dense<0.000000e+00> : vector<8x32xf32>
    %462 = tpu.matmul %460, %461, %cst_163 {dimension_numbers = #tpu.dot_dimension_numbers<[1], [0], [0], [1], [0, 0, 1, 1], [], []>} : vector<8x8xf32>, vector<8x32xf32>, vector<8x32xf32> -> vector<8x32xf32>
    %463 = arith.addf %305, %462 : vector<8x32xf32>
    %464 = vector.extract_strided_slice %140 {offsets = [0, 8], sizes = [8, 4], strides = [1, 1]} : vector<8x16xf32> to vector<8x4xf32>
    %cst_164 = arith.constant dense<0xFF800000> : vector<8xf32>
    %465 = vector.multi_reduction <maximumf>, %464, %cst_164 [1] : vector<8x4xf32> to vector<8xf32>
    %466 = vector.shape_cast %465 : vector<8xf32> to vector<8x1xf32>
    %467 = vector.broadcast %466 : vector<8x1xf32> to vector<8x4xf32>
    %468 = arith.subf %464, %467 : vector<8x4xf32>
    %469 = math.exp %468 : vector<8x4xf32>
    %cst_165 = arith.constant dense<0.000000e+00> : vector<8xf32>
    %470 = vector.multi_reduction <add>, %469, %cst_165 [1] : vector<8x4xf32> to vector<8xf32>
    %471 = vector.shape_cast %470 : vector<8xf32> to vector<8x1xf32>
    %472 = vector.broadcast %471 : vector<8x1xf32> to vector<8x4xf32>
    %473 = arith.divf %469, %472 : vector<8x4xf32>
    %cst_166 = arith.constant 0.000000e+00 : f32
    %474 = vector.broadcast %cst_166 : f32 to vector<8x8xf32>
    %475 = vector.extract_strided_slice %141 {offsets = [0, 0], sizes = [1, 16], strides = [1, 1]} : vector<1x24xf32> to vector<1x16xf32>
    %476 = vector.extract_strided_slice %142 {offsets = [0, 0], sizes = [1, 16], strides = [1, 1]} : vector<1x24xf32> to vector<1x16xf32>
    %cst_167 = arith.constant 0.000000e+00 : f32
    %477 = vector.broadcast %cst_167 : f32 to vector<8x16xf32>
    %478 = vector.extract_strided_slice %135 {offsets = [0, 16], sizes = [8, 1], strides = [1, 1]} : vector<8x32xf32> to vector<8x1xf32>
    %479 = vector.extract_strided_slice %135 {offsets = [0, 17], sizes = [8, 1], strides = [1, 1]} : vector<8x32xf32> to vector<8x1xf32>
    %cst_168 = arith.constant 4.000000e+00 : f32
    %480 = vector.broadcast %cst_168 : f32 to vector<8x1xf32>
    %481 = arith.mulf %143, %480 : vector<8x1xf32>
    %482 = arith.addf %481, %478 : vector<8x1xf32>
    %cst_169 = arith.constant 5.000000e-01 : f32
    %483 = vector.broadcast %cst_169 : f32 to vector<8x1xf32>
    %484 = arith.subf %482, %483 : vector<8x1xf32>
    %cst_170 = arith.constant 4.000000e+00 : f32
    %485 = vector.broadcast %cst_170 : f32 to vector<8x1xf32>
    %486 = arith.mulf %144, %485 : vector<8x1xf32>
    %487 = arith.addf %486, %479 : vector<8x1xf32>
    %cst_171 = arith.constant 5.000000e-01 : f32
    %488 = vector.broadcast %cst_171 : f32 to vector<8x1xf32>
    %489 = arith.subf %487, %488 : vector<8x1xf32>
    %490 = vector.broadcast %484 : vector<8x1xf32> to vector<8x16xf32>
    %491 = vector.broadcast %475 : vector<1x16xf32> to vector<8x16xf32>
    %492 = arith.subf %490, %491 : vector<8x16xf32>
    %493 = math.absf %492 : vector<8x16xf32>
    %cst_172 = arith.constant 1.000000e+00 : f32
    %494 = vector.broadcast %cst_172 : f32 to vector<8x16xf32>
    %495 = arith.subf %494, %493 : vector<8x16xf32>
    %cst_173 = arith.constant 0.000000e+00 : f32
    %496 = vector.broadcast %cst_173 : f32 to vector<8x16xf32>
    %497 = arith.maximumf %495, %496 : vector<8x16xf32>
    %498 = vector.broadcast %489 : vector<8x1xf32> to vector<8x16xf32>
    %499 = vector.broadcast %476 : vector<1x16xf32> to vector<8x16xf32>
    %500 = arith.subf %498, %499 : vector<8x16xf32>
    %501 = math.absf %500 : vector<8x16xf32>
    %cst_174 = arith.constant 1.000000e+00 : f32
    %502 = vector.broadcast %cst_174 : f32 to vector<8x16xf32>
    %503 = arith.subf %502, %501 : vector<8x16xf32>
    %cst_175 = arith.constant 0.000000e+00 : f32
    %504 = vector.broadcast %cst_175 : f32 to vector<8x16xf32>
    %505 = arith.maximumf %503, %504 : vector<8x16xf32>
    %506 = arith.mulf %497, %505 : vector<8x16xf32>
    %507 = vector.extract_strided_slice %473 {offsets = [0, 0], sizes = [8, 1], strides = [1, 1]} : vector<8x4xf32> to vector<8x1xf32>
    %508 = vector.broadcast %507 : vector<8x1xf32> to vector<8x16xf32>
    %509 = arith.mulf %508, %506 : vector<8x16xf32>
    %510 = arith.addf %477, %509 : vector<8x16xf32>
    %511 = vector.extract_strided_slice %135 {offsets = [0, 18], sizes = [8, 1], strides = [1, 1]} : vector<8x32xf32> to vector<8x1xf32>
    %512 = vector.extract_strided_slice %135 {offsets = [0, 19], sizes = [8, 1], strides = [1, 1]} : vector<8x32xf32> to vector<8x1xf32>
    %cst_176 = arith.constant 4.000000e+00 : f32
    %513 = vector.broadcast %cst_176 : f32 to vector<8x1xf32>
    %514 = arith.mulf %143, %513 : vector<8x1xf32>
    %515 = arith.addf %514, %511 : vector<8x1xf32>
    %cst_177 = arith.constant 5.000000e-01 : f32
    %516 = vector.broadcast %cst_177 : f32 to vector<8x1xf32>
    %517 = arith.subf %515, %516 : vector<8x1xf32>
    %cst_178 = arith.constant 4.000000e+00 : f32
    %518 = vector.broadcast %cst_178 : f32 to vector<8x1xf32>
    %519 = arith.mulf %144, %518 : vector<8x1xf32>
    %520 = arith.addf %519, %512 : vector<8x1xf32>
    %cst_179 = arith.constant 5.000000e-01 : f32
    %521 = vector.broadcast %cst_179 : f32 to vector<8x1xf32>
    %522 = arith.subf %520, %521 : vector<8x1xf32>
    %523 = vector.broadcast %517 : vector<8x1xf32> to vector<8x16xf32>
    %524 = vector.broadcast %475 : vector<1x16xf32> to vector<8x16xf32>
    %525 = arith.subf %523, %524 : vector<8x16xf32>
    %526 = math.absf %525 : vector<8x16xf32>
    %cst_180 = arith.constant 1.000000e+00 : f32
    %527 = vector.broadcast %cst_180 : f32 to vector<8x16xf32>
    %528 = arith.subf %527, %526 : vector<8x16xf32>
    %cst_181 = arith.constant 0.000000e+00 : f32
    %529 = vector.broadcast %cst_181 : f32 to vector<8x16xf32>
    %530 = arith.maximumf %528, %529 : vector<8x16xf32>
    %531 = vector.broadcast %522 : vector<8x1xf32> to vector<8x16xf32>
    %532 = vector.broadcast %476 : vector<1x16xf32> to vector<8x16xf32>
    %533 = arith.subf %531, %532 : vector<8x16xf32>
    %534 = math.absf %533 : vector<8x16xf32>
    %cst_182 = arith.constant 1.000000e+00 : f32
    %535 = vector.broadcast %cst_182 : f32 to vector<8x16xf32>
    %536 = arith.subf %535, %534 : vector<8x16xf32>
    %cst_183 = arith.constant 0.000000e+00 : f32
    %537 = vector.broadcast %cst_183 : f32 to vector<8x16xf32>
    %538 = arith.maximumf %536, %537 : vector<8x16xf32>
    %539 = arith.mulf %530, %538 : vector<8x16xf32>
    %540 = vector.extract_strided_slice %473 {offsets = [0, 1], sizes = [8, 1], strides = [1, 1]} : vector<8x4xf32> to vector<8x1xf32>
    %541 = vector.broadcast %540 : vector<8x1xf32> to vector<8x16xf32>
    %542 = arith.mulf %541, %539 : vector<8x16xf32>
    %543 = arith.addf %510, %542 : vector<8x16xf32>
    %544 = vector.extract_strided_slice %130 {offsets = [0, 16], sizes = [16, 8], strides = [1, 1]} : vector<24x32xf32> to vector<16x8xf32>
    %cst_184 = arith.constant dense<0.000000e+00> : vector<8x8xf32>
    %545 = tpu.matmul %543, %544, %cst_184 {dimension_numbers = #tpu.dot_dimension_numbers<[1], [0], [0], [1], [0, 0, 1, 1], [], []>} : vector<8x16xf32>, vector<16x8xf32>, vector<8x8xf32> -> vector<8x8xf32>
    %546 = arith.addf %474, %545 : vector<8x8xf32>
    %547 = vector.extract_strided_slice %141 {offsets = [0, 16], sizes = [1, 8], strides = [1, 1]} : vector<1x24xf32> to vector<1x8xf32>
    %548 = vector.extract_strided_slice %142 {offsets = [0, 16], sizes = [1, 8], strides = [1, 1]} : vector<1x24xf32> to vector<1x8xf32>
    %cst_185 = arith.constant 0.000000e+00 : f32
    %549 = vector.broadcast %cst_185 : f32 to vector<8x8xf32>
    %550 = vector.extract_strided_slice %135 {offsets = [0, 20], sizes = [8, 1], strides = [1, 1]} : vector<8x32xf32> to vector<8x1xf32>
    %551 = vector.extract_strided_slice %135 {offsets = [0, 21], sizes = [8, 1], strides = [1, 1]} : vector<8x32xf32> to vector<8x1xf32>
    %cst_186 = arith.constant 4.000000e+00 : f32
    %552 = vector.broadcast %cst_186 : f32 to vector<8x1xf32>
    %553 = arith.mulf %145, %552 : vector<8x1xf32>
    %554 = arith.addf %553, %550 : vector<8x1xf32>
    %cst_187 = arith.constant 5.000000e-01 : f32
    %555 = vector.broadcast %cst_187 : f32 to vector<8x1xf32>
    %556 = arith.subf %554, %555 : vector<8x1xf32>
    %cst_188 = arith.constant 2.000000e+00 : f32
    %557 = vector.broadcast %cst_188 : f32 to vector<8x1xf32>
    %558 = arith.mulf %146, %557 : vector<8x1xf32>
    %559 = arith.addf %558, %551 : vector<8x1xf32>
    %cst_189 = arith.constant 5.000000e-01 : f32
    %560 = vector.broadcast %cst_189 : f32 to vector<8x1xf32>
    %561 = arith.subf %559, %560 : vector<8x1xf32>
    %562 = vector.broadcast %556 : vector<8x1xf32> to vector<8x8xf32>
    %563 = vector.broadcast %547 : vector<1x8xf32> to vector<8x8xf32>
    %564 = arith.subf %562, %563 : vector<8x8xf32>
    %565 = math.absf %564 : vector<8x8xf32>
    %cst_190 = arith.constant 1.000000e+00 : f32
    %566 = vector.broadcast %cst_190 : f32 to vector<8x8xf32>
    %567 = arith.subf %566, %565 : vector<8x8xf32>
    %cst_191 = arith.constant 0.000000e+00 : f32
    %568 = vector.broadcast %cst_191 : f32 to vector<8x8xf32>
    %569 = arith.maximumf %567, %568 : vector<8x8xf32>
    %570 = vector.broadcast %561 : vector<8x1xf32> to vector<8x8xf32>
    %571 = vector.broadcast %548 : vector<1x8xf32> to vector<8x8xf32>
    %572 = arith.subf %570, %571 : vector<8x8xf32>
    %573 = math.absf %572 : vector<8x8xf32>
    %cst_192 = arith.constant 1.000000e+00 : f32
    %574 = vector.broadcast %cst_192 : f32 to vector<8x8xf32>
    %575 = arith.subf %574, %573 : vector<8x8xf32>
    %cst_193 = arith.constant 0.000000e+00 : f32
    %576 = vector.broadcast %cst_193 : f32 to vector<8x8xf32>
    %577 = arith.maximumf %575, %576 : vector<8x8xf32>
    %578 = arith.mulf %569, %577 : vector<8x8xf32>
    %579 = vector.extract_strided_slice %473 {offsets = [0, 2], sizes = [8, 1], strides = [1, 1]} : vector<8x4xf32> to vector<8x1xf32>
    %580 = vector.broadcast %579 : vector<8x1xf32> to vector<8x8xf32>
    %581 = arith.mulf %580, %578 : vector<8x8xf32>
    %582 = arith.addf %549, %581 : vector<8x8xf32>
    %583 = vector.extract_strided_slice %135 {offsets = [0, 22], sizes = [8, 1], strides = [1, 1]} : vector<8x32xf32> to vector<8x1xf32>
    %584 = vector.extract_strided_slice %135 {offsets = [0, 23], sizes = [8, 1], strides = [1, 1]} : vector<8x32xf32> to vector<8x1xf32>
    %cst_194 = arith.constant 4.000000e+00 : f32
    %585 = vector.broadcast %cst_194 : f32 to vector<8x1xf32>
    %586 = arith.mulf %145, %585 : vector<8x1xf32>
    %587 = arith.addf %586, %583 : vector<8x1xf32>
    %cst_195 = arith.constant 5.000000e-01 : f32
    %588 = vector.broadcast %cst_195 : f32 to vector<8x1xf32>
    %589 = arith.subf %587, %588 : vector<8x1xf32>
    %cst_196 = arith.constant 2.000000e+00 : f32
    %590 = vector.broadcast %cst_196 : f32 to vector<8x1xf32>
    %591 = arith.mulf %146, %590 : vector<8x1xf32>
    %592 = arith.addf %591, %584 : vector<8x1xf32>
    %cst_197 = arith.constant 5.000000e-01 : f32
    %593 = vector.broadcast %cst_197 : f32 to vector<8x1xf32>
    %594 = arith.subf %592, %593 : vector<8x1xf32>
    %595 = vector.broadcast %589 : vector<8x1xf32> to vector<8x8xf32>
    %596 = vector.broadcast %547 : vector<1x8xf32> to vector<8x8xf32>
    %597 = arith.subf %595, %596 : vector<8x8xf32>
    %598 = math.absf %597 : vector<8x8xf32>
    %cst_198 = arith.constant 1.000000e+00 : f32
    %599 = vector.broadcast %cst_198 : f32 to vector<8x8xf32>
    %600 = arith.subf %599, %598 : vector<8x8xf32>
    %cst_199 = arith.constant 0.000000e+00 : f32
    %601 = vector.broadcast %cst_199 : f32 to vector<8x8xf32>
    %602 = arith.maximumf %600, %601 : vector<8x8xf32>
    %603 = vector.broadcast %594 : vector<8x1xf32> to vector<8x8xf32>
    %604 = vector.broadcast %548 : vector<1x8xf32> to vector<8x8xf32>
    %605 = arith.subf %603, %604 : vector<8x8xf32>
    %606 = math.absf %605 : vector<8x8xf32>
    %cst_200 = arith.constant 1.000000e+00 : f32
    %607 = vector.broadcast %cst_200 : f32 to vector<8x8xf32>
    %608 = arith.subf %607, %606 : vector<8x8xf32>
    %cst_201 = arith.constant 0.000000e+00 : f32
    %609 = vector.broadcast %cst_201 : f32 to vector<8x8xf32>
    %610 = arith.maximumf %608, %609 : vector<8x8xf32>
    %611 = arith.mulf %602, %610 : vector<8x8xf32>
    %612 = vector.extract_strided_slice %473 {offsets = [0, 3], sizes = [8, 1], strides = [1, 1]} : vector<8x4xf32> to vector<8x1xf32>
    %613 = vector.broadcast %612 : vector<8x1xf32> to vector<8x8xf32>
    %614 = arith.mulf %613, %611 : vector<8x8xf32>
    %615 = arith.addf %582, %614 : vector<8x8xf32>
    %616 = vector.extract_strided_slice %130 {offsets = [16, 16], sizes = [8, 8], strides = [1, 1]} : vector<24x32xf32> to vector<8x8xf32>
    %cst_202 = arith.constant dense<0.000000e+00> : vector<8x8xf32>
    %617 = tpu.matmul %615, %616, %cst_202 {dimension_numbers = #tpu.dot_dimension_numbers<[1], [0], [0], [1], [0, 0, 1, 1], [], []>} : vector<8x8xf32>, vector<8x8xf32>, vector<8x8xf32> -> vector<8x8xf32>
    %618 = arith.addf %546, %617 : vector<8x8xf32>
    %c16_203 = arith.constant 16 : index
    %c0_204 = arith.constant 0 : index
    %619 = vector.load %arg11[%c16_203, %c0_204] : memref<32x32xf32, #tpu.memory_space<vmem>>, vector<8x32xf32>
    %cst_205 = arith.constant dense<0.000000e+00> : vector<8x32xf32>
    %620 = tpu.matmul %618, %619, %cst_205 {dimension_numbers = #tpu.dot_dimension_numbers<[1], [0], [0], [1], [0, 0, 1, 1], [], []>} : vector<8x8xf32>, vector<8x32xf32>, vector<8x32xf32> -> vector<8x32xf32>
    %621 = arith.addf %463, %620 : vector<8x32xf32>
    %622 = vector.extract_strided_slice %140 {offsets = [0, 12], sizes = [8, 4], strides = [1, 1]} : vector<8x16xf32> to vector<8x4xf32>
    %cst_206 = arith.constant dense<0xFF800000> : vector<8xf32>
    %623 = vector.multi_reduction <maximumf>, %622, %cst_206 [1] : vector<8x4xf32> to vector<8xf32>
    %624 = vector.shape_cast %623 : vector<8xf32> to vector<8x1xf32>
    %625 = vector.broadcast %624 : vector<8x1xf32> to vector<8x4xf32>
    %626 = arith.subf %622, %625 : vector<8x4xf32>
    %627 = math.exp %626 : vector<8x4xf32>
    %cst_207 = arith.constant dense<0.000000e+00> : vector<8xf32>
    %628 = vector.multi_reduction <add>, %627, %cst_207 [1] : vector<8x4xf32> to vector<8xf32>
    %629 = vector.shape_cast %628 : vector<8xf32> to vector<8x1xf32>
    %630 = vector.broadcast %629 : vector<8x1xf32> to vector<8x4xf32>
    %631 = arith.divf %627, %630 : vector<8x4xf32>
    %cst_208 = arith.constant 0.000000e+00 : f32
    %632 = vector.broadcast %cst_208 : f32 to vector<8x8xf32>
    %633 = vector.extract_strided_slice %141 {offsets = [0, 0], sizes = [1, 16], strides = [1, 1]} : vector<1x24xf32> to vector<1x16xf32>
    %634 = vector.extract_strided_slice %142 {offsets = [0, 0], sizes = [1, 16], strides = [1, 1]} : vector<1x24xf32> to vector<1x16xf32>
    %cst_209 = arith.constant 0.000000e+00 : f32
    %635 = vector.broadcast %cst_209 : f32 to vector<8x16xf32>
    %636 = vector.extract_strided_slice %135 {offsets = [0, 24], sizes = [8, 1], strides = [1, 1]} : vector<8x32xf32> to vector<8x1xf32>
    %637 = vector.extract_strided_slice %135 {offsets = [0, 25], sizes = [8, 1], strides = [1, 1]} : vector<8x32xf32> to vector<8x1xf32>
    %cst_210 = arith.constant 4.000000e+00 : f32
    %638 = vector.broadcast %cst_210 : f32 to vector<8x1xf32>
    %639 = arith.mulf %143, %638 : vector<8x1xf32>
    %640 = arith.addf %639, %636 : vector<8x1xf32>
    %cst_211 = arith.constant 5.000000e-01 : f32
    %641 = vector.broadcast %cst_211 : f32 to vector<8x1xf32>
    %642 = arith.subf %640, %641 : vector<8x1xf32>
    %cst_212 = arith.constant 4.000000e+00 : f32
    %643 = vector.broadcast %cst_212 : f32 to vector<8x1xf32>
    %644 = arith.mulf %144, %643 : vector<8x1xf32>
    %645 = arith.addf %644, %637 : vector<8x1xf32>
    %cst_213 = arith.constant 5.000000e-01 : f32
    %646 = vector.broadcast %cst_213 : f32 to vector<8x1xf32>
    %647 = arith.subf %645, %646 : vector<8x1xf32>
    %648 = vector.broadcast %642 : vector<8x1xf32> to vector<8x16xf32>
    %649 = vector.broadcast %633 : vector<1x16xf32> to vector<8x16xf32>
    %650 = arith.subf %648, %649 : vector<8x16xf32>
    %651 = math.absf %650 : vector<8x16xf32>
    %cst_214 = arith.constant 1.000000e+00 : f32
    %652 = vector.broadcast %cst_214 : f32 to vector<8x16xf32>
    %653 = arith.subf %652, %651 : vector<8x16xf32>
    %cst_215 = arith.constant 0.000000e+00 : f32
    %654 = vector.broadcast %cst_215 : f32 to vector<8x16xf32>
    %655 = arith.maximumf %653, %654 : vector<8x16xf32>
    %656 = vector.broadcast %647 : vector<8x1xf32> to vector<8x16xf32>
    %657 = vector.broadcast %634 : vector<1x16xf32> to vector<8x16xf32>
    %658 = arith.subf %656, %657 : vector<8x16xf32>
    %659 = math.absf %658 : vector<8x16xf32>
    %cst_216 = arith.constant 1.000000e+00 : f32
    %660 = vector.broadcast %cst_216 : f32 to vector<8x16xf32>
    %661 = arith.subf %660, %659 : vector<8x16xf32>
    %cst_217 = arith.constant 0.000000e+00 : f32
    %662 = vector.broadcast %cst_217 : f32 to vector<8x16xf32>
    %663 = arith.maximumf %661, %662 : vector<8x16xf32>
    %664 = arith.mulf %655, %663 : vector<8x16xf32>
    %665 = vector.extract_strided_slice %631 {offsets = [0, 0], sizes = [8, 1], strides = [1, 1]} : vector<8x4xf32> to vector<8x1xf32>
    %666 = vector.broadcast %665 : vector<8x1xf32> to vector<8x16xf32>
    %667 = arith.mulf %666, %664 : vector<8x16xf32>
    %668 = arith.addf %635, %667 : vector<8x16xf32>
    %669 = vector.extract_strided_slice %135 {offsets = [0, 26], sizes = [8, 1], strides = [1, 1]} : vector<8x32xf32> to vector<8x1xf32>
    %670 = vector.extract_strided_slice %135 {offsets = [0, 27], sizes = [8, 1], strides = [1, 1]} : vector<8x32xf32> to vector<8x1xf32>
    %cst_218 = arith.constant 4.000000e+00 : f32
    %671 = vector.broadcast %cst_218 : f32 to vector<8x1xf32>
    %672 = arith.mulf %143, %671 : vector<8x1xf32>
    %673 = arith.addf %672, %669 : vector<8x1xf32>
    %cst_219 = arith.constant 5.000000e-01 : f32
    %674 = vector.broadcast %cst_219 : f32 to vector<8x1xf32>
    %675 = arith.subf %673, %674 : vector<8x1xf32>
    %cst_220 = arith.constant 4.000000e+00 : f32
    %676 = vector.broadcast %cst_220 : f32 to vector<8x1xf32>
    %677 = arith.mulf %144, %676 : vector<8x1xf32>
    %678 = arith.addf %677, %670 : vector<8x1xf32>
    %cst_221 = arith.constant 5.000000e-01 : f32
    %679 = vector.broadcast %cst_221 : f32 to vector<8x1xf32>
    %680 = arith.subf %678, %679 : vector<8x1xf32>
    %681 = vector.broadcast %675 : vector<8x1xf32> to vector<8x16xf32>
    %682 = vector.broadcast %633 : vector<1x16xf32> to vector<8x16xf32>
    %683 = arith.subf %681, %682 : vector<8x16xf32>
    %684 = math.absf %683 : vector<8x16xf32>
    %cst_222 = arith.constant 1.000000e+00 : f32
    %685 = vector.broadcast %cst_222 : f32 to vector<8x16xf32>
    %686 = arith.subf %685, %684 : vector<8x16xf32>
    %cst_223 = arith.constant 0.000000e+00 : f32
    %687 = vector.broadcast %cst_223 : f32 to vector<8x16xf32>
    %688 = arith.maximumf %686, %687 : vector<8x16xf32>
    %689 = vector.broadcast %680 : vector<8x1xf32> to vector<8x16xf32>
    %690 = vector.broadcast %634 : vector<1x16xf32> to vector<8x16xf32>
    %691 = arith.subf %689, %690 : vector<8x16xf32>
    %692 = math.absf %691 : vector<8x16xf32>
    %cst_224 = arith.constant 1.000000e+00 : f32
    %693 = vector.broadcast %cst_224 : f32 to vector<8x16xf32>
    %694 = arith.subf %693, %692 : vector<8x16xf32>
    %cst_225 = arith.constant 0.000000e+00 : f32
    %695 = vector.broadcast %cst_225 : f32 to vector<8x16xf32>
    %696 = arith.maximumf %694, %695 : vector<8x16xf32>
    %697 = arith.mulf %688, %696 : vector<8x16xf32>
    %698 = vector.extract_strided_slice %631 {offsets = [0, 1], sizes = [8, 1], strides = [1, 1]} : vector<8x4xf32> to vector<8x1xf32>
    %699 = vector.broadcast %698 : vector<8x1xf32> to vector<8x16xf32>
    %700 = arith.mulf %699, %697 : vector<8x16xf32>
    %701 = arith.addf %668, %700 : vector<8x16xf32>
    %702 = vector.extract_strided_slice %130 {offsets = [0, 24], sizes = [16, 8], strides = [1, 1]} : vector<24x32xf32> to vector<16x8xf32>
    %cst_226 = arith.constant dense<0.000000e+00> : vector<8x8xf32>
    %703 = tpu.matmul %701, %702, %cst_226 {dimension_numbers = #tpu.dot_dimension_numbers<[1], [0], [0], [1], [0, 0, 1, 1], [], []>} : vector<8x16xf32>, vector<16x8xf32>, vector<8x8xf32> -> vector<8x8xf32>
    %704 = arith.addf %632, %703 : vector<8x8xf32>
    %705 = vector.extract_strided_slice %141 {offsets = [0, 16], sizes = [1, 8], strides = [1, 1]} : vector<1x24xf32> to vector<1x8xf32>
    %706 = vector.extract_strided_slice %142 {offsets = [0, 16], sizes = [1, 8], strides = [1, 1]} : vector<1x24xf32> to vector<1x8xf32>
    %cst_227 = arith.constant 0.000000e+00 : f32
    %707 = vector.broadcast %cst_227 : f32 to vector<8x8xf32>
    %708 = vector.extract_strided_slice %135 {offsets = [0, 28], sizes = [8, 1], strides = [1, 1]} : vector<8x32xf32> to vector<8x1xf32>
    %709 = vector.extract_strided_slice %135 {offsets = [0, 29], sizes = [8, 1], strides = [1, 1]} : vector<8x32xf32> to vector<8x1xf32>
    %cst_228 = arith.constant 4.000000e+00 : f32
    %710 = vector.broadcast %cst_228 : f32 to vector<8x1xf32>
    %711 = arith.mulf %145, %710 : vector<8x1xf32>
    %712 = arith.addf %711, %708 : vector<8x1xf32>
    %cst_229 = arith.constant 5.000000e-01 : f32
    %713 = vector.broadcast %cst_229 : f32 to vector<8x1xf32>
    %714 = arith.subf %712, %713 : vector<8x1xf32>
    %cst_230 = arith.constant 2.000000e+00 : f32
    %715 = vector.broadcast %cst_230 : f32 to vector<8x1xf32>
    %716 = arith.mulf %146, %715 : vector<8x1xf32>
    %717 = arith.addf %716, %709 : vector<8x1xf32>
    %cst_231 = arith.constant 5.000000e-01 : f32
    %718 = vector.broadcast %cst_231 : f32 to vector<8x1xf32>
    %719 = arith.subf %717, %718 : vector<8x1xf32>
    %720 = vector.broadcast %714 : vector<8x1xf32> to vector<8x8xf32>
    %721 = vector.broadcast %705 : vector<1x8xf32> to vector<8x8xf32>
    %722 = arith.subf %720, %721 : vector<8x8xf32>
    %723 = math.absf %722 : vector<8x8xf32>
    %cst_232 = arith.constant 1.000000e+00 : f32
    %724 = vector.broadcast %cst_232 : f32 to vector<8x8xf32>
    %725 = arith.subf %724, %723 : vector<8x8xf32>
    %cst_233 = arith.constant 0.000000e+00 : f32
    %726 = vector.broadcast %cst_233 : f32 to vector<8x8xf32>
    %727 = arith.maximumf %725, %726 : vector<8x8xf32>
    %728 = vector.broadcast %719 : vector<8x1xf32> to vector<8x8xf32>
    %729 = vector.broadcast %706 : vector<1x8xf32> to vector<8x8xf32>
    %730 = arith.subf %728, %729 : vector<8x8xf32>
    %731 = math.absf %730 : vector<8x8xf32>
    %cst_234 = arith.constant 1.000000e+00 : f32
    %732 = vector.broadcast %cst_234 : f32 to vector<8x8xf32>
    %733 = arith.subf %732, %731 : vector<8x8xf32>
    %cst_235 = arith.constant 0.000000e+00 : f32
    %734 = vector.broadcast %cst_235 : f32 to vector<8x8xf32>
    %735 = arith.maximumf %733, %734 : vector<8x8xf32>
    %736 = arith.mulf %727, %735 : vector<8x8xf32>
    %737 = vector.extract_strided_slice %631 {offsets = [0, 2], sizes = [8, 1], strides = [1, 1]} : vector<8x4xf32> to vector<8x1xf32>
    %738 = vector.broadcast %737 : vector<8x1xf32> to vector<8x8xf32>
    %739 = arith.mulf %738, %736 : vector<8x8xf32>
    %740 = arith.addf %707, %739 : vector<8x8xf32>
    %741 = vector.extract_strided_slice %135 {offsets = [0, 30], sizes = [8, 1], strides = [1, 1]} : vector<8x32xf32> to vector<8x1xf32>
    %742 = vector.extract_strided_slice %135 {offsets = [0, 31], sizes = [8, 1], strides = [1, 1]} : vector<8x32xf32> to vector<8x1xf32>
    %cst_236 = arith.constant 4.000000e+00 : f32
    %743 = vector.broadcast %cst_236 : f32 to vector<8x1xf32>
    %744 = arith.mulf %145, %743 : vector<8x1xf32>
    %745 = arith.addf %744, %741 : vector<8x1xf32>
    %cst_237 = arith.constant 5.000000e-01 : f32
    %746 = vector.broadcast %cst_237 : f32 to vector<8x1xf32>
    %747 = arith.subf %745, %746 : vector<8x1xf32>
    %cst_238 = arith.constant 2.000000e+00 : f32
    %748 = vector.broadcast %cst_238 : f32 to vector<8x1xf32>
    %749 = arith.mulf %146, %748 : vector<8x1xf32>
    %750 = arith.addf %749, %742 : vector<8x1xf32>
    %cst_239 = arith.constant 5.000000e-01 : f32
    %751 = vector.broadcast %cst_239 : f32 to vector<8x1xf32>
    %752 = arith.subf %750, %751 : vector<8x1xf32>
    %753 = vector.broadcast %747 : vector<8x1xf32> to vector<8x8xf32>
    %754 = vector.broadcast %705 : vector<1x8xf32> to vector<8x8xf32>
    %755 = arith.subf %753, %754 : vector<8x8xf32>
    %756 = math.absf %755 : vector<8x8xf32>
    %cst_240 = arith.constant 1.000000e+00 : f32
    %757 = vector.broadcast %cst_240 : f32 to vector<8x8xf32>
    %758 = arith.subf %757, %756 : vector<8x8xf32>
    %cst_241 = arith.constant 0.000000e+00 : f32
    %759 = vector.broadcast %cst_241 : f32 to vector<8x8xf32>
    %760 = arith.maximumf %758, %759 : vector<8x8xf32>
    %761 = vector.broadcast %752 : vector<8x1xf32> to vector<8x8xf32>
    %762 = vector.broadcast %706 : vector<1x8xf32> to vector<8x8xf32>
    %763 = arith.subf %761, %762 : vector<8x8xf32>
    %764 = math.absf %763 : vector<8x8xf32>
    %cst_242 = arith.constant 1.000000e+00 : f32
    %765 = vector.broadcast %cst_242 : f32 to vector<8x8xf32>
    %766 = arith.subf %765, %764 : vector<8x8xf32>
    %cst_243 = arith.constant 0.000000e+00 : f32
    %767 = vector.broadcast %cst_243 : f32 to vector<8x8xf32>
    %768 = arith.maximumf %766, %767 : vector<8x8xf32>
    %769 = arith.mulf %760, %768 : vector<8x8xf32>
    %770 = vector.extract_strided_slice %631 {offsets = [0, 3], sizes = [8, 1], strides = [1, 1]} : vector<8x4xf32> to vector<8x1xf32>
    %771 = vector.broadcast %770 : vector<8x1xf32> to vector<8x8xf32>
    %772 = arith.mulf %771, %769 : vector<8x8xf32>
    %773 = arith.addf %740, %772 : vector<8x8xf32>
    %774 = vector.extract_strided_slice %130 {offsets = [16, 24], sizes = [8, 8], strides = [1, 1]} : vector<24x32xf32> to vector<8x8xf32>
    %cst_244 = arith.constant dense<0.000000e+00> : vector<8x8xf32>
    %775 = tpu.matmul %773, %774, %cst_244 {dimension_numbers = #tpu.dot_dimension_numbers<[1], [0], [0], [1], [0, 0, 1, 1], [], []>} : vector<8x8xf32>, vector<8x8xf32>, vector<8x8xf32> -> vector<8x8xf32>
    %776 = arith.addf %704, %775 : vector<8x8xf32>
    %c24_245 = arith.constant 24 : index
    %c0_246 = arith.constant 0 : index
    %777 = vector.load %arg11[%c24_245, %c0_246] : memref<32x32xf32, #tpu.memory_space<vmem>>, vector<8x32xf32>
    %cst_247 = arith.constant dense<0.000000e+00> : vector<8x32xf32>
    %778 = tpu.matmul %776, %777, %cst_247 {dimension_numbers = #tpu.dot_dimension_numbers<[1], [0], [0], [1], [0, 0, 1, 1], [], []>} : vector<8x8xf32>, vector<8x32xf32>, vector<8x32xf32> -> vector<8x32xf32>
    %779 = arith.addf %621, %778 : vector<8x32xf32>
    %780 = vector.broadcast %15 : vector<1x32xf32> to vector<8x32xf32>
    %781 = arith.addf %779, %780 : vector<8x32xf32>
    %782 = arith.addf %125, %781 : vector<8x32xf32>
    %cst_248 = arith.constant dense<0.000000e+00> : vector<8xf32>
    %783 = vector.multi_reduction <add>, %782, %cst_248 [1] : vector<8x32xf32> to vector<8xf32>
    %784 = vector.shape_cast %783 : vector<8xf32> to vector<8x1xf32>
    %cst_249 = arith.constant 3.200000e+01 : f32
    %785 = vector.broadcast %cst_249 : f32 to vector<8x1xf32>
    %786 = arith.divf %784, %785 : vector<8x1xf32>
    %787 = vector.broadcast %786 : vector<8x1xf32> to vector<8x32xf32>
    %788 = arith.subf %782, %787 : vector<8x32xf32>
    %789 = arith.mulf %788, %788 : vector<8x32xf32>
    %cst_250 = arith.constant dense<0.000000e+00> : vector<8xf32>
    %790 = vector.multi_reduction <add>, %789, %cst_250 [1] : vector<8x32xf32> to vector<8xf32>
    %791 = vector.shape_cast %790 : vector<8xf32> to vector<8x1xf32>
    %cst_251 = arith.constant 3.200000e+01 : f32
    %792 = vector.broadcast %cst_251 : f32 to vector<8x1xf32>
    %793 = arith.divf %791, %792 : vector<8x1xf32>
    %cst_252 = arith.constant 9.99999974E-6 : f32
    %794 = vector.broadcast %cst_252 : f32 to vector<8x1xf32>
    %795 = arith.addf %793, %794 : vector<8x1xf32>
    %796 = math.rsqrt %795 : vector<8x1xf32>
    %797 = vector.broadcast %796 : vector<8x1xf32> to vector<8x32xf32>
    %798 = arith.mulf %788, %797 : vector<8x32xf32>
    %799 = vector.broadcast %16 : vector<1x32xf32> to vector<8x32xf32>
    %800 = arith.mulf %798, %799 : vector<8x32xf32>
    %801 = vector.broadcast %17 : vector<1x32xf32> to vector<8x32xf32>
    %802 = arith.addf %800, %801 : vector<8x32xf32>
    %c0_253 = arith.constant 0 : index
    %c0_254 = arith.constant 0 : index
    %803 = vector.load %arg12[%c0_253, %c0_254] : memref<32x64xf32, #tpu.memory_space<vmem>>, vector<32x64xf32>
    %cst_255 = arith.constant dense<0.000000e+00> : vector<8x64xf32>
    %804 = tpu.matmul %802, %803, %cst_255 {dimension_numbers = #tpu.dot_dimension_numbers<[1], [0], [0], [1], [0, 0, 1, 1], [], []>} : vector<8x32xf32>, vector<32x64xf32>, vector<8x64xf32> -> vector<8x64xf32>
    %c0_256 = arith.constant 0 : index
    %c0_257 = arith.constant 0 : index
    %805 = vector.load %arg15[%c0_256, %c0_257] : memref<1x64xf32, #tpu.memory_space<vmem>>, vector<1x64xf32>
    %806 = vector.broadcast %805 : vector<1x64xf32> to vector<8x64xf32>
    %807 = arith.addf %804, %806 : vector<8x64xf32>
    %cst_258 = arith.constant 0.000000e+00 : f32
    %808 = vector.broadcast %cst_258 : f32 to vector<8x64xf32>
    %809 = arith.maximumf %807, %808 : vector<8x64xf32>
    %c0_259 = arith.constant 0 : index
    %c0_260 = arith.constant 0 : index
    %810 = vector.load %arg13[%c0_259, %c0_260] : memref<64x32xf32, #tpu.memory_space<vmem>>, vector<64x32xf32>
    %cst_261 = arith.constant dense<0.000000e+00> : vector<8x32xf32>
    %811 = tpu.matmul %809, %810, %cst_261 {dimension_numbers = #tpu.dot_dimension_numbers<[1], [0], [0], [1], [0, 0, 1, 1], [], []>} : vector<8x64xf32>, vector<64x32xf32>, vector<8x32xf32> -> vector<8x32xf32>
    %812 = vector.broadcast %18 : vector<1x32xf32> to vector<8x32xf32>
    %813 = arith.addf %811, %812 : vector<8x32xf32>
    %814 = arith.addf %802, %813 : vector<8x32xf32>
    %cst_262 = arith.constant dense<0.000000e+00> : vector<8xf32>
    %815 = vector.multi_reduction <add>, %814, %cst_262 [1] : vector<8x32xf32> to vector<8xf32>
    %816 = vector.shape_cast %815 : vector<8xf32> to vector<8x1xf32>
    %cst_263 = arith.constant 3.200000e+01 : f32
    %817 = vector.broadcast %cst_263 : f32 to vector<8x1xf32>
    %818 = arith.divf %816, %817 : vector<8x1xf32>
    %819 = vector.broadcast %818 : vector<8x1xf32> to vector<8x32xf32>
    %820 = arith.subf %814, %819 : vector<8x32xf32>
    %821 = arith.mulf %820, %820 : vector<8x32xf32>
    %cst_264 = arith.constant dense<0.000000e+00> : vector<8xf32>
    %822 = vector.multi_reduction <add>, %821, %cst_264 [1] : vector<8x32xf32> to vector<8xf32>
    %823 = vector.shape_cast %822 : vector<8xf32> to vector<8x1xf32>
    %cst_265 = arith.constant 3.200000e+01 : f32
    %824 = vector.broadcast %cst_265 : f32 to vector<8x1xf32>
    %825 = arith.divf %823, %824 : vector<8x1xf32>
    %cst_266 = arith.constant 9.99999974E-6 : f32
    %826 = vector.broadcast %cst_266 : f32 to vector<8x1xf32>
    %827 = arith.addf %825, %826 : vector<8x1xf32>
    %828 = math.rsqrt %827 : vector<8x1xf32>
    %829 = vector.broadcast %828 : vector<8x1xf32> to vector<8x32xf32>
    %830 = arith.mulf %820, %829 : vector<8x32xf32>
    %831 = vector.broadcast %19 : vector<1x32xf32> to vector<8x32xf32>
    %832 = arith.mulf %830, %831 : vector<8x32xf32>
    %833 = vector.broadcast %20 : vector<1x32xf32> to vector<8x32xf32>
    %834 = arith.addf %832, %833 : vector<8x32xf32>
    %c0_267 = arith.constant 0 : index
    %c0_268 = arith.constant 0 : index
    %c0_269 = arith.constant 0 : index
    %835 = vector.load %arg19[%c0_267, %c0_268, %c0_269] : memref<1x8x32xf32, #tpu.memory_space<vmem>>, vector<1x8x32xf32>
    %836 = vector.shape_cast %835 : vector<1x8x32xf32> to vector<8x32xf32>
    %837 = vector.shape_cast %834 : vector<8x32xf32> to vector<1x8x32xf32>
    tpu.vector_store %arg19[%c0_267, %c0_268, %c0_269], %837 {strides = array<i32>} : memref<1x8x32xf32, #tpu.memory_space<vmem>>, vector<1x8x32xf32>,
    return
  }
  func.func @transform_0(%arg0: i32) -> (i32, i32, i32) {
    %c0_i32 = arith.constant 0 : i32
    %c0_i32_0 = arith.constant 0 : i32
    %c0_i32_1 = arith.constant 0 : i32
    return %arg0, %c0_i32, %c0_i32_0 : i32, i32, i32
  }
  func.func @transform_1(%arg0: i32) -> (i32, i32, i32) {
    %c0_i32 = arith.constant 0 : i32
    %c0_i32_0 = arith.constant 0 : i32
    %c0_i32_1 = arith.constant 0 : i32
    return %arg0, %c0_i32, %c0_i32_0 : i32, i32, i32
  }
  func.func @transform_2(%arg0: i32) -> (i32, i32, i32) {
    %c0_i32 = arith.constant 0 : i32
    %c0_i32_0 = arith.constant 0 : i32
    %c0_i32_1 = arith.constant 0 : i32
    return %arg0, %c0_i32, %c0_i32_0 : i32, i32, i32
  }
  func.func @transform_3(%arg0: i32) -> (i32, i32, i32) {
    %c0_i32 = arith.constant 0 : i32
    %c0_i32_0 = arith.constant 0 : i32
    %c0_i32_1 = arith.constant 0 : i32
    return %arg0, %c0_i32, %c0_i32_0 : i32, i32, i32
  }
  func.func @transform_4(%arg0: i32) -> (i32, i32) {
    %c0_i32 = arith.constant 0 : i32
    %c0_i32_0 = arith.constant 0 : i32
    %c0_i32_1 = arith.constant 0 : i32
    return %c0_i32, %c0_i32_0 : i32, i32
  }
  func.func @transform_5(%arg0: i32) -> (i32, i32) {
    %c0_i32 = arith.constant 0 : i32
    %c0_i32_0 = arith.constant 0 : i32
    %c0_i32_1 = arith.constant 0 : i32
    return %c0_i32, %c0_i32_0 : i32, i32
  }
  func.func @transform_6(%arg0: i32) -> (i32, i32) {
    %c0_i32 = arith.constant 0 : i32
    %c0_i32_0 = arith.constant 0 : i32
    %c0_i32_1 = arith.constant 0 : i32
    return %c0_i32, %c0_i32_0 : i32, i32
  }
  func.func @transform_7(%arg0: i32) -> (i32, i32) {
    %c0_i32 = arith.constant 0 : i32
    %c0_i32_0 = arith.constant 0 : i32
    %c0_i32_1 = arith.constant 0 : i32
    return %c0_i32, %c0_i32_0 : i32, i32
  }
  func.func @transform_8(%arg0: i32) -> (i32, i32) {
    %c0_i32 = arith.constant 0 : i32
    %c0_i32_0 = arith.constant 0 : i32
    %c0_i32_1 = arith.constant 0 : i32
    return %c0_i32, %c0_i32_0 : i32, i32
  }
  func.func @transform_9(%arg0: i32) -> (i32, i32) {
    %c0_i32 = arith.constant 0 : i32
    %c0_i32_0 = arith.constant 0 : i32
    %c0_i32_1 = arith.constant 0 : i32
    return %c0_i32, %c0_i32_0 : i32, i32
  }
  func.func @transform_10(%arg0: i32) -> (i32, i32) {
    %c0_i32 = arith.constant 0 : i32
    %c0_i32_0 = arith.constant 0 : i32
    %c0_i32_1 = arith.constant 0 : i32
    return %c0_i32, %c0_i32_0 : i32, i32
  }
  func.func @transform_11(%arg0: i32) -> (i32, i32) {
    %c0_i32 = arith.constant 0 : i32
    %c0_i32_0 = arith.constant 0 : i32
    %c0_i32_1 = arith.constant 0 : i32
    return %c0_i32, %c0_i32_0 : i32, i32
  }
  func.func @transform_12(%arg0: i32) -> (i32, i32) {
    %c0_i32 = arith.constant 0 : i32
    %c0_i32_0 = arith.constant 0 : i32
    %c0_i32_1 = arith.constant 0 : i32
    return %c0_i32, %c0_i32_0 : i32, i32
  }
  func.func @transform_13(%arg0: i32) -> (i32, i32) {
    %c0_i32 = arith.constant 0 : i32
    %c0_i32_0 = arith.constant 0 : i32
    %c0_i32_1 = arith.constant 0 : i32
    return %c0_i32, %c0_i32_0 : i32, i32
  }
  func.func @transform_14(%arg0: i32) -> (i32, i32) {
    %c0_i32 = arith.constant 0 : i32
    %c0_i32_0 = arith.constant 0 : i32
    %c0_i32_1 = arith.constant 0 : i32
    return %c0_i32, %c0_i32_0 : i32, i32
  }
  func.func @transform_15(%arg0: i32) -> (i32, i32) {
    %c0_i32 = arith.constant 0 : i32
    %c0_i32_0 = arith.constant 0 : i32
    %c0_i32_1 = arith.constant 0 : i32
    return %c0_i32, %c0_i32_0 : i32, i32
  }
  func.func @transform_16(%arg0: i32) -> (i32, i32) {
    %c0_i32 = arith.constant 0 : i32
    %c0_i32_0 = arith.constant 0 : i32
    %c0_i32_1 = arith.constant 0 : i32
    return %c0_i32, %c0_i32_0 : i32, i32
  }
  func.func @transform_17(%arg0: i32) -> (i32, i32) {
    %c0_i32 = arith.constant 0 : i32
    %c0_i32_0 = arith.constant 0 : i32
    %c0_i32_1 = arith.constant 0 : i32
    return %c0_i32, %c0_i32_0 : i32, i32
  }
  func.func @transform_18(%arg0: i32) -> (i32, i32, i32) {
    %c0_i32 = arith.constant 0 : i32
    %c0_i32_0 = arith.constant 0 : i32
    %c0_i32_1 = arith.constant 0 : i32
    return %arg0, %c0_i32, %c0_i32_0 : i32, i32, i32
  }
}

</mosaic_0001>

<bundles_post_ra>
// kernel: tpu_custom_call.1
= control target key start
LH: loop header
LB: loop body
LE: loop exit
PB: predicated region body
PF: predicated region fallthrough
CT: control target
= control target key end

     0   :  { %s5871_s0 = inlined_call_operand.hbm [shape: f32[2,8,32], index: 0, kind: input, shape index: {}]   ;;  %s5872_s1 = inlined_call_operand.hbm [shape: f32[2,8,32], index: 1, kind: input, shape index: {}]   ;;  %s5873_s2 = inlined_call_operand.vmem [shape: f32[2,24,32], index: 2, kind: input, shape index: {}]   ;;  %s5874_s3 = inlined_call_operand.vmem [shape: f32[2,8,4], index: 3, kind: input, shape index: {}]   ;;  %s5875_s4 = inlined_call_operand.vmem [shape: f32[32,64], index: 4, kind: input, shape index: {}]   ;;  %s5876_s5 = inlined_call_operand.vmem [shape: f32[32,32], index: 5, kind: input, shape index: {}]   ;;  %s5877_s6 = inlined_call_operand.vmem [shape: f32[32,32], index: 6, kind: input, shape index: {}]   ;;  %s5878_s7 = inlined_call_operand.vmem [shape: f32[32,32], index: 7, kind: input, shape index: {}]   ;;  %s5879_s8 = inlined_call_operand.hbm [shape: f32[32,32], index: 8, kind: input, shape index: {}]   ;;  %s5880_s9 = inlined_call_operand.vmem [shape: f32[32,16], index: 9, kind: input, shape index: {}]   ;;  %s5881_s10 = inlined_call_operand.hbm [shape: f32[32,32], index: 10, kind: input, shape index: {}]   ;;  %s5882_s11 = inlined_call_operand.vmem [shape: f32[32,64], index: 11, kind: input, shape index: {}]   ;;  %s5883_s12 = inlined_call_operand.vmem [shape: f32[64,32], index: 12, kind: input, shape index: {}]   ;;  %s5884_s13 = inlined_call_operand.hbm [shape: f32[16,32], index: 13, kind: input, shape index: {}]   ;;  %s5885_s14 = inlined_call_operand.vmem [shape: f32[1,64], index: 14, kind: input, shape index: {}]   ;;  %s5886_s15 = inlined_call_operand.vmem [shape: f32[1,32], index: 15, kind: input, shape index: {}]   ;;  %s5887_s16 = inlined_call_operand.vmem [shape: f32[1,16], index: 16, kind: input, shape index: {}]   ;;  %s5888_s17 = inlined_call_operand.vmem [shape: f32[2,24], index: 17, kind: input, shape index: {}]   ;;  %s5889_s18 = inlined_call_operand.hbm [shape: f32[2,8,32], index: 18, kind: output, shape index: {}]  }
   0x1   :  { %5906 = sst [smem:[#allocation21_spill]] %s5871_s0 }
   0x2   :  { %5907 = sst [smem:[#allocation22_spill]] %s5872_s1 }
   0x3   :  { %5908 = sst [smem:[#allocation23_spill]] %s5873_s2 }
   0x4   :  { %5909 = sst [smem:[#allocation24_spill]] %s5874_s3 }
   0x5   :  { %5910 = sst [smem:[#allocation25_spill]] %s5878_s7 }
   0x6   :  { %5911 = sst [smem:[#allocation26_spill]] %s5879_s8 }
   0x7   :  { %5912 = sst [smem:[#allocation27_spill]] %s5881_s10 }
   0x8   :  { %5913 = sst [smem:[#allocation28_spill]] %s5882_s11 }
   0x9   :  { %5914 = sst [smem:[#allocation29_spill]] %s5883_s12 }
   0xa   :  { %5915 = sst [smem:[#allocation30_spill]] %s5884_s13 }
   0xb   :  { %5916 = sst [smem:[#allocation31_spill]] %s5885_s14 }
   0xc   :  { %5917 = sst [smem:[#allocation32_spill]] %s5888_s17 }
   0xd   :  { %5918 = sst [smem:[#allocation33_spill]] %s5889_s18 }
   0xe   :  { %23 = vsyncpa [#allocation3], 0 }
   0xf   :  { %25 = vsyncpa [#allocation3 + $0x1], 0 }
  0x10   :  { %26 = vsyncpa [#allocation6], 0 }
  0x11   :  { %28 = vsyncpa [#allocation6 + $0x1], 0 }
  0x12   :  { %29 = vsyncpa [#allocation9], 0 }
  0x13   :  { %30 = vsyncpa [#allocation4], 0 }
  0x14   :  { %32 = vsyncpa [#allocation4 + $0x1], 0  ;;  %s5046_s27 = smov 0   ;;  %s5048_s28 = smov 0  }
  0x15   :  { %s5050_s29 = smov 0   ;;  %s5052_s30 = smov 0  }
  0x16 LB: > { %5919 = sst [smem:[#allocation17_spill]] %s4894_s27  ;;  %s5067_s0 = sadd.s32 4294967295, %s4906_s30   ;;  %s4906_s30 = sphi %s5052_s30, %s5962_s30   ;;  %s4902_s29 = sphi %s5050_s29, %s5959_s29   ;;  %s4898_s28 = sphi %s5048_s28, %s5961_s28   ;;  %s4894_s27 = sphi %s5046_s27, %s5960_s27  }
  0x17   : > { %5920 = sst [smem:[#allocation18_spill]] %s4902_s29  ;;  %s3994_s19 = sadd.s32 4294967294, %s4906_s30  }
  0x18   : > { %p58_p0 = scmp.ne.s32.totalorder %s4898_s28, %s4894_s27  ;;  %p5896_p1 = scmp.eq.s32.totalorder %s5067_s0, 0 }
  0x19   : > { %p460_p3 = scmp.eq.s32.totalorder %s3994_s19, 1  ;;  %p3995_p5 = scmp.ge.s32.totalorder %s4906_s30, 1 }
  0x1a   : > { %p5076_p4 = por %p5896_p1, %p58_p0  ;;  %p467_p7 = scmp.lt.s32.totalorder %s4906_s30, 3 }
  0x1b   : > { %p5081_p6 = por %p460_p3, %p58_p0  ;;  %s4908_s22 = smov [#allocation7]  }
  0x1c   : > { %s5921_s1 = scalar_select %p5076_p4, 1, 0 }
  0x1d   : > { %s5922_s20 = scalar_select %p5081_p6, 1, 0 }
  0x1e   : > { %p5086_p8 = pnand %p3995_p5, %p467_p7  ;;  %s491_s2 = sshll.u32 %s4908_s22, 4  ;;  %s5090_s2 = int_to_ptr.vmem [resolvable:$true] %s491_s2 }
  0x1f   : > { %5923 = sst [smem:[#allocation19_spill]] %s5922_s20  ;;  %s4909_s24 = smov [#allocation8]  }
  0x20   : > { %s5924_s21 = scalar_select %p5086_p8, 1, 0 }
  0x21   : > { %p4491_p9 = pneg %p5086_p8  ;;  %s507_s25 = sshll.u32 %s4909_s24, 4  ;;  %s5101_s25 = int_to_ptr.vmem [resolvable:$true] %s507_s25 }
  0x22   : > { %s4910_s26 = smov [#allocation10]   ;;  %s5926_s8 = sld [smem:[#allocation26_spill]] }
  0x23   : > { %p5097_p11 = pnand %p4491_p9, %p5896_p1  ;;  %s5103_s19 = sshll.u32 %s4910_s26, 4  ;;  %s527_s19 = int_to_ptr.vmem [resolvable:$true] %s5103_s19 }
  0x25   : > { %p5113_p13 = pneg %p5097_p11 }
  0x28   : > { %s4684_s27 = scalar_lea.hbm %s5926_s8, 512 }
  0x29   : > { %p4685_p12 = scmp.ne.s32.totalorder %s5926_s8, %s4684_s27  ;;  %p4691_p5 = scmp.lt.u32.totalorder %s4684_s27, %s5926_s8 }
  0x2b   : > { %p4687_p0 = pnand %p5113_p13, %p4685_p12 }
  0x2d   : > { %p4688_p3 = pneg %p4687_p0 }
  0x2f   : > { %p4693_p7 = pnand %p4691_p5, %p4688_p3 }
  0x31   : > { %4696 = shalt.err (!%p4693_p7)
}
  0x32   : > { %s4697_s14 = scalar_lea.vmem %s5090_s2, 512  ;;  %p4705_p2 = scmp.lt.s32.totalorder %s5090_s2, %s5090_s2 }
  0x33   : > { %p4698_p9 = scmp.ne.s32.totalorder %s5090_s2, %s4697_s14  ;;  %p4706_p6 = scmp.lt.s32.totalorder %s4697_s14, %s4697_s14 }
  0x35   : > { %p4700_p10 = pnand %p4698_p9, %p5113_p13  ;;  %p4707_p12 = por %p4706_p6, %p4705_p2 }
  0x37   : > { %p4701_p1 = pneg %p4700_p10 }
  0x39   : > { %p4708_p0 = pnand %p4707_p12, %p4701_p1 }
  0x3b   : > { %4711 = shalt.err (!%p4708_p0)
}
  0x3c   : > { %s4911_s18 = smov 128   ;;  %s4912_s27 = smov 8  }
  0x3d   : > { %4494 = dma.hbm_to_vmem [thread:$0]  (!%p5097_p11), %s5926_s8, 512, %s5090_s2, [#allocation6], %s4911_s18, %s4911_s18, %s4912_s27  }
  0x3e   : > { %s5928_s10 = sld [smem:[#allocation27_spill]] }
  0x44   : > { %s4712_s14 = scalar_lea.hbm %s5928_s10, 512 }
  0x45   : > { %p4713_p1 = scmp.ne.s32.totalorder %s5928_s10, %s4712_s14  ;;  %p4719_p10 = scmp.lt.u32.totalorder %s4712_s14, %s5928_s10 }
  0x47   : > { %p4715_p2 = pnand %p4713_p1, %p5113_p13 }
  0x49   : > { %p4716_p6 = pneg %p4715_p2 }
  0x4b   : > { %p4721_p3 = pnand %p4719_p10, %p4716_p6 }
  0x4d   : > { %4724 = shalt.err (!%p4721_p3)
}
  0x4e   : > { %s4725_s2 = scalar_lea.vmem %s5101_s25, 512  ;;  %p4733_p12 = scmp.lt.s32.totalorder %s5101_s25, %s5101_s25 }
  0x4f   : > { %p4726_p5 = scmp.ne.s32.totalorder %s5101_s25, %s4725_s2  ;;  %p4734_p0 = scmp.lt.s32.totalorder %s4725_s2, %s4725_s2 }
  0x51   : > { %p4728_p7 = pnand %p4726_p5, %p5113_p13  ;;  %p4735_p1 = por %p4734_p0, %p4733_p12 }
  0x53   : > { %p4729_p9 = pneg %p4728_p7 }
  0x55   : > { %p4736_p2 = pnand %p4735_p1, %p4729_p9 }
  0x57   : > { %4739 = shalt.err (!%p4736_p2)
}
  0x58   : > { %4497 = dma.hbm_to_vmem [thread:$0]  (!%p5097_p11), %s5928_s10, 512, %s5101_s25, [#allocation9], %s4911_s18, %s4911_s18, %s4912_s27  }
  0x59   : > { %s5929_s13 = sld [smem:[#allocation30_spill]] }
  0x5f   : > { %s4740_s20 = scalar_lea.hbm %s5929_s13, 256 }
  0x60   : > { %p4741_p6 = scmp.ne.s32.totalorder %s5929_s13, %s4740_s20  ;;  %p4747_p5 = scmp.lt.u32.totalorder %s4740_s20, %s5929_s13 }
  0x62   : > { %p4743_p10 = pnand %p4741_p6, %p5113_p13 }
  0x64   : > { %p4744_p3 = pneg %p4743_p10 }
  0x66   : > { %p4749_p7 = pnand %p4747_p5, %p4744_p3 }
  0x68   : > { %4752 = shalt.err (!%p4749_p7)
}
  0x69   : > { %s4753_s2 = scalar_lea.vmem %s527_s19, 256  ;;  %p4761_p1 = scmp.lt.s32.totalorder %s527_s19, %s527_s19 }
  0x6a   : > { %p4754_p9 = scmp.ne.s32.totalorder %s527_s19, %s4753_s2  ;;  %p4762_p2 = scmp.lt.s32.totalorder %s4753_s2, %s4753_s2 }
  0x6c   : > { %p4756_p12 = pnand %p4754_p9, %p5113_p13  ;;  %p4763_p4 = por %p4762_p2, %p4761_p1 }
  0x6e   : > { %p4757_p0 = pneg %p4756_p12 }
  0x70   : > { %p4764_p8 = pnand %p4763_p4, %p4757_p0 }
  0x72   : > { %4767 = shalt.err (!%p4764_p8)
}
  0x73   : > { %4500 = dma.hbm_to_vmem [thread:$0]  (!%p5097_p11), %s5929_s13, 256, %s527_s19, [#allocation9], %s4911_s18, %s4911_s18, %s4912_s27  }
  0x74   : > { %s5186_s12 = sadd.s32 1, %s4906_s30   ;;  %s45_s7 = sadd.s32 1, %s4902_s29 }
  0x75   : > { %s42_s23 = ssub.s32 %s4906_s30, %s5186_s12  ;;  %p52_p8 = scmp.ne.s32.totalorder %s4902_s29, %s4898_s28 }
  0x76   : > { %p43_p4 = scmp.eq.s32.totalorder %s42_s23, 0  ;;  %p53_p13 = scmp.eq.s32.totalorder %s4906_s30, 0 }
  0x77   : > { %p4515_p6 = scmp.lt.s32.totalorder %s4906_s30, 2  ;;  %p5931_p3 = scmp.eq.s32.totalorder %s5067_s0, 1 }
  0x78   : > { %s5196_s11 = scalar_select %p43_p4, %s4902_s29, %s45_s7  }
  0x79   : > { %p54_p10 = por %p53_p13, %p52_p8  ;;  %p5200_p5 = por %p5931_p3, %p52_p8 }
  0x7a   : > { %5930 = sst [smem:[#allocation20_spill]] %s5196_s11  ;;  %s552_s20 = sand.u32 1, %s4902_s29  }
  0x7b   : > { %s5932_s17 = scalar_select %p5200_p5, 1, 0 }
  0x7c   : > { %s4001_s22 = sshll.u32 %s4906_s30, 7  ;;  %s5206_s19 = sshll.u32 %s552_s20, 3 }
  0x7d   : > { %s5933_s24 = sld [smem:[#allocation21_spill]]  ;;  %s556_s14 = scalar_lea.vmem [#allocation2], %s5206_s19 }
  0x7e   : > { %s563_s2 = sshll.u32 %s556_s14, 4  ;;  %p5214_p11 = pnand %p4515_p6, %p54_p10  ;;  %s5218_s2 = int_to_ptr.vmem [resolvable:$true] %s563_s2 }
  0x7f   : > { %s5935_s7 = sld [smem:[#allocation22_spill]]  ;;  %s553_s27 = scalar_lea.sflag [#allocation3], %s552_s20 }
  0x80   : > { %p4770_p9 = pneg %p5214_p11 }
  0x83   : > { %s5211_s26 = scalar_lea.hbm %s5933_s24, %s4001_s22  ;;  %s4773_s13 = scalar_lea.hbm %s5933_s24, 256 }
  0x84   : > { %s4768_s8 = scalar_lea.hbm %s5211_s26, 128  ;;  %p4774_p1 = scmp.lt.u32.totalorder %s5211_s26, %s5933_s24 }
  0x85   : > { %s5223_s18 = scalar_lea.hbm %s5935_s7, %s4001_s22  ;;  %p4769_p7 = scmp.ne.s32.totalorder %s5211_s26, %s4768_s8 }
  0x86   : > { %p4775_p2 = scmp.lt.u32.totalorder %s4773_s13, %s4768_s8  ;;  %p4777_p8 = scmp.lt.u32.totalorder %s4768_s8, %s5211_s26 }
  0x87   : > { %p4771_p12 = pnand %p4770_p9, %p4769_p7 }
  0x88   : > { %p4776_p4 = por %p4775_p2, %p4774_p1 }
  0x89   : > { %p4772_p0 = pneg %p4771_p12 }
  0x8a   : > { %p4778_p13 = por %p4777_p8, %p4776_p4 }
  0x8c   : > { %p4779_p6 = pnand %p4778_p13, %p4772_p0 }
  0x8e   : > { %4782 = shalt.err (!%p4779_p6)
}
  0x8f   : > { %s4783_s20 = scalar_lea.vmem %s5218_s2, 128  ;;  %s4913_s10 = smov [#allocation2]  }
  0x90   : > { %p4784_p10 = scmp.ne.s32.totalorder %s5218_s2, %s4783_s20  ;;  %s4788_s22 = sshll.u32 %s4913_s10, 4  ;;  %s4789_s22 = int_to_ptr.vmem [resolvable:$false] %s4788_s22 }
  0x91   : > { %s4790_s29 = scalar_lea.vmem %s4789_s22, 256  ;;  %p4791_p12 = scmp.lt.s32.totalorder %s5218_s2, %s4789_s22 }
  0x92   : > { %p4786_p3 = pnand %p4784_p10, %p4770_p9  ;;  %p4792_p1 = scmp.lt.s32.totalorder %s4790_s29, %s4783_s20 }
  0x94   : > { %p4787_p7 = pneg %p4786_p3  ;;  %p4793_p2 = por %p4792_p1, %p4791_p12 }
  0x96   : > { %p4794_p4 = pnand %p4793_p2, %p4787_p7 }
  0x98   : > { %4797 = shalt.err (!%p4794_p4)
}
  0x99   : > { %4504 = dma.hbm_to_vmem [thread:$0]  (!%p5214_p11), %s5211_s26, 128, %s5218_s2, %s553_s27  }
  0x9a   : > { %s570_s8 = sand.u32 1, %s4906_s30   ;;  %s574_s13 = scalar_lea.vmem [#allocation5], %s5206_s19 }
  0x9b   : > { %s581_s11 = sshll.u32 %s574_s13, 4  ;;  %s571_s3 = scalar_lea.sflag [#allocation6], %s570_s8  ;;  %s582_s11 = int_to_ptr.vmem [resolvable:$true] %s581_s11 }
  0x9c   : > { %s4798_s23 = scalar_lea.hbm %s5223_s18, 128  ;;  %s4803_s10 = scalar_lea.hbm %s5935_s7, 256 }
  0x9d   : > { %p4799_p0 = scmp.ne.s32.totalorder %s5223_s18, %s4798_s23  ;;  %p4804_p6 = scmp.lt.u32.totalorder %s5223_s18, %s5935_s7 }
  0x9e   : > { %p4805_p10 = scmp.lt.u32.totalorder %s4803_s10, %s4798_s23  ;;  %p4807_p7 = scmp.lt.u32.totalorder %s4798_s23, %s5223_s18 }
  0x9f   : > { %p4801_p8 = pnand %p4799_p0, %p4770_p9 }
  0xa0   : > { %p4806_p3 = por %p4805_p10, %p4804_p6 }
  0xa1   : > { %p4802_p13 = pneg %p4801_p8 }
  0xa2   : > { %p4808_p12 = por %p4807_p7, %p4806_p3 }
  0xa4   : > { %p4809_p1 = pnand %p4808_p12, %p4802_p13 }
  0xa6   : > { %4812 = shalt.err (!%p4809_p1)
}
  0xa7   : > { %s4813_s19 = scalar_lea.vmem %s582_s11, 128  ;;  %s4914_s26 = smov [#allocation5]  }
  0xa8   : > { %p4814_p2 = scmp.ne.s32.totalorder %s582_s11, %s4813_s19  ;;  %s4818_s2 = sshll.u32 %s4914_s26, 4  ;;  %s4819_s2 = int_to_ptr.vmem [resolvable:$false] %s4818_s2 }
  0xa9   : > { %s4820_s27 = scalar_lea.vmem %s4819_s2, 256  ;;  %p4821_p8 = scmp.lt.s32.totalorder %s582_s11, %s4819_s2 }
  0xaa   : > { %p4816_p4 = pnand %p4814_p2, %p4770_p9  ;;  %p4822_p5 = scmp.lt.s32.totalorder %s4820_s27, %s4813_s19 }
  0xac   : > { %p4817_p0 = pneg %p4816_p4  ;;  %p4823_p6 = por %p4822_p5, %p4821_p8 }
  0xae   : > { %p4824_p10 = pnand %p4823_p6, %p4817_p0 }
  0xb0   : > { %4827 = shalt.err (!%p4824_p10)
}
  0xb1   : > { %4507 = dma.hbm_to_vmem [thread:$0]  (!%p5214_p11), %s5223_s18, 128, %s582_s11, %s571_s3  }
  0xb2   : > { %p5936_p13 = scmp.ne.s32.totalorder %s5924_s21, 0 }
  0xb3   : > { %s5274_s8 = sand.u32 (!%p5936_p13), 1, %s4898_s28   ;;  %p5937_p5 = scmp.ne.s32.totalorder (!%p5936_p13), %s5921_s1, 0 }
  0xb4   : > { %605 = sbr.rel (%p5936_p13) target bundleno = 6942 (0x1b1e), region = 92  ;;  %s5277_s13 = sshll.u32 (!%p5936_p13), %s5274_s8, 3 }
  0xb5   : > { %s608_s23 = scalar_lea.sflag (!%p5936_p13), [#allocation3], %s5274_s8  ;;  %s611_s14 = scalar_lea.vmem (!%p5936_p13), [#allocation2], %s5277_s13 }
  0xbb   : > { %4873 = dma.done.wait (%p5937_p5), %s608_s23, 128  }
  0xbc   : > { %4875 = vsyncadd (%p5937_p5), %s608_s23, 4294967168  ;;  %s616_s21 = sand.u32 1, %s5067_s0   ;;  %s620_s18 = scalar_lea.vmem [#allocation5], %s5277_s13 }
  0xbd   : > { %s617_s25 = scalar_lea.sflag [#allocation6], %s616_s21 }
  0xbe   : > { %4877 = dma.done.wait (%p5937_p5), %s617_s25, 128  }
  0xbf   : > { %4879 = vsyncadd (%p5937_p5), %s617_s25, 4294967168  ;;  %p5938_p11 = scmp.eq.s32.totalorder %s5067_s0, 0 }
  0xc1   : > { %4881 = dma.done.wait (%p5938_p11), [#allocation6], 512   ;;  %p5939_p9 = pmov %p5938_p11 }
  0xc3   : > { %4883 = vsyncadd (%p5939_p9), [#allocation6], 4294966784  ;;  %p5940_p3 = pmov %p5939_p9 }
  0xc5   : > { %4885 = dma.done.wait (%p5940_p3), [#allocation9], 768   ;;  %p5941_p7 = pmov %p5940_p3 }
  0xc6   : > { %v4915_v0 = vmov 0.0|0.0   ;;  %vm4916_vm0 = vmmov 0   ;;  %v4917_v1 = vmov 0.0   ;;  %v728_v2 = vld [vmem:[%s5875_s4] sm:$0xff]  ;;  %v729_v3 = vld [vmem:[%s5875_s4 + $0x8] sm:$0xff]  ;;  %v730_v4 = vld [vmem:[%s5875_s4 + $0x10] sm:$0xff] }
  0xc7   : > { %4887 = vsyncadd (%p5941_p7), [#allocation9], 4294966528  ;;  %4404 = vmatprep.subr.bf16.mxu0 %v4915_v0  ;;  %4193 = vmatprep.mubr.msk.f32.mxu0 %vm4916_vm0, %v4917_v1  ;;  %v4405_v5 = vpack.c.bf16 %v729_v3, %v728_v2  ;;  %v731_v6 = vld [vmem:[%s5875_s4 + $0x18] sm:$0xff]  ;;  %v4015_v7 = vld [vmem:[#allocation10 + $0x1] ss:$0 sm:$0xff]  ;;  %s4918_s26 = smov 32  }
  0xc8   : > { %4410 = vmatprep.subr.bf16.mxu1 %v4915_v0  ;;  %4204 = vmatprep.mubr.msk.f32.mxu1 %vm4916_vm0, %v4917_v1  ;;  %v4408_v8 = vpack.c.bf16 %v731_v6, %v730_v4  ;;  %v5317_v9 = vld [vmem:[%s611_s14] sm:$0xff]  ;;  %v5319_v10 = vld [vmem:[%s620_s18] sm:$0xff]  ;;  %vm732_vm1 = vcmask 261120   ;;  %s4919_s2 = smov 96   ;;  %s4920_s27 = smov 88   ;;  %vm904_vm2 = vcmask 64512  }
  0xc9   : > { %4406 = vmatpush3.bf16.msra.mxu0 %v4405_v5  ;;  %816 = vrot.lane.b32.xlu0 %v4015_v7, %s4918_s26  ;;  %v727_v11 = vadd.f32 %v5319_v10, %v5317_v9  ;;  %v4014_v16 = vld [vmem:[#allocation10] ss:$0 sm:$0xff]  ;;  %v821_v20 = vld [vmem:[%s5876_s5 + $0x8] sm:$0xff]  ;;  %v822_v21 = vld [vmem:[%s5876_s5 + $0x10] sm:$0xff]  ;;  %s4921_s20 = smov 120   ;;  %s4922_s10 = smov 112  }
  0xca   : > { %4407 = vmatprep.subr.bf16.mxu0 %v4915_v0  ;;  %v820_v19 = vld [vmem:[%s5876_s5] sm:$0xff]  ;;  %v823_v23 = vld [vmem:[%s5876_s5 + $0x18] sm:$0xff]  ;;  %s4923_s22 = smov 80   ;;  %v1231_v53 = vld [vmem:[%s5877_s6 + $0x8] sm:$0xff]  ;;  %s4925_s23 = smov 72   ;;  %vm2440_vm3 = vcmask 64544  }
  0xcb   : > { %v4411_v22 = vpack.c.bf16 %v821_v20, %v820_v19  ;;  %v4414_v24 = vpack.c.bf16 %v823_v23, %v822_v21  ;;  %v4016_v33 = vld [vmem:[#allocation10 + $0x2] ss:$0 sm:$0xff]  ;;  %p699_p12 = scmp.lt.s32.totalorder %s5067_s0, 1  ;;  %s4927_s18 = smov 124   ;;  %vm2153_vm4 = vcmask 31744   ;;  %vm2880_vm5 = vcmask 97344  }
  0xcc   : > { %v1064_v57 = vld [vmem:[%s5877_s6] sm:$0xff]  ;;  %s4928_s11 = smov 118   ;;  %s5942_s29 = sld [smem:[#allocation25_spill]]  ;;  %vm2365_vm6 = vcmask 130048   ;;  %vm3245_vm7 = vcmask 130144   ;;  %vm3736_vm8 = vcmask 523264  }
  0xcd   : > { %4409 = vmatpush3.bf16.msra.mxu0 %v4408_v8  ;;  %4412 = vmatpush3.bf16.msra.mxu1 %v4411_v22  ;;  %s700_s1 = scalar_select %p699_p12, %s5067_s0, 1 }
  0xce   : > { %4207 = vmatprep.subr.mxu0 %v4917_v1  ;;  %4413 = vmatprep.subr.bf16.mxu1 %v4915_v0  ;;  %s5946_s3 = sld [smem:[#allocation32_spill]]  ;;  %s4945_s26 = smov 100  }
  0xcf   : > { %s4472_s21 = smul.u32 24, %s700_s1  ;;  %s4089_s25 = sshll.u32 %s5067_s0, 7 }
  0xd0   : > { %4194 = vmatmul.mubr.msk.f32.vlgmr.msra.gmra.mrb[0].mxu0 %vm732_vm1, %v727_v11  ;;  %p5953_p2 = scmp.ne.s32.totalorder %s5932_s17, 0  ;;  %s4950_s0 = smov [#allocation11]  }
  0xd1   : > { %4209 = vmatprep.mubr.msk.f32.mxu0 %vm4916_vm0, %v4917_v1  ;;  %4415 = vmatpush3.bf16.msra.mxu1 %v4414_v24 }
  0xd2   : > { %4222 = vmatprep.subr.mxu1 %v4917_v1  ;;  %s5943_s19 = smov %s5942_s29 }
  0xd4   : > { %4205 = vmatmul.mubr.msk.f32.vlgmr.msra.gmra.mrb[0].mxu1 %vm732_vm1, %v5317_v9 }
  0xd5   : > { %4224 = vmatprep.mubr.msk.f32.mxu1 %vm4916_vm0, %v4917_v1 }
 0x13b   : > { %v817_v12 = vpop.permute.xlu0 %816 }
 0x1a3   : > { %v802_v13 = vpop.f32.mrb[0].mxu0 }
 0x1a4   : > { %v5328_v14 = vadd.f32 %v817_v12, %v802_v13  ;;  %v4195_v15 = vpop.f32.mrb[1].mxu0  ;;  %v5333_v18 = vadd.f32 %v4014_v16, %v802_v13 }
 0x1a6   : > { %902 = vrot.lane.b32.xlu0 %v5328_v14, %s4919_s2  ;;  %s5947_s2 = smov 104  }
 0x1a7   : > { %v897_v34 = vpop.f32.mrb[0].mxu1 }
 0x1a8   : > { %v5360_v35 = vadd.f32 %v4016_v33, %v897_v34  ;;  %v4206_v36 = vpop.f32.mrb[1].mxu1 }
 0x1aa   : > { %1067 = vrot.lane.b32.xlu0 %v5328_v14, %s4920_s27  ;;  %s5904_s27 = smov 104  }
 0x218   : > { %v903_v17 = vpop.permute.xlu0 %902 }
 0x219   : > { %4208 = vmatpush3.xpose.msk.msra.mxu0 %vm904_vm2, %v903_v17 }
 0x21a   : > { %4212 = vmatprep.subr.mxu0 %v4917_v1 }
 0x21c   : > { %4210 = vmatmul.mubr.msk.f32.vlgmr.msra.gmra.mrb[2].mxu0 %vm904_vm2, %v5333_v18  ;;  %v1068_v40 = vpop.permute.xlu0 %1067 }
 0x21d   : > { %4214 = vmatprep.mubr.msk.f32.mxu0 %vm4916_vm0, %v4917_v1  ;;  %4213 = vmatpush3.msra.mxu0 %v5360_v35 }
 0x21e   : > { %4217 = vmatprep.subr.mxu0 %v4917_v1 }
 0x2ef   : > { %v976_v25 = vpop.f32.mrb[2].mxu0 }
 0x2f0   : > { %v4211_v26 = vpop.f32.mrb[3].mxu0  ;;  %v980_v27 = vsel %vm904_vm2, %v976_v25, -inf }
 0x2f1   : > { %981 = vmax.xlane.f32.xlu1 %v980_v27 }
 0x37e   : > { %v982_v28 = vpop.xlane.xlu1 %981 }
 0x37f   : > { %v983_v29 = vsub.f32 %v976_v25, %v982_v28 }
 0x381   : > { %v984_v30 = vmul.f32 1.442695, %v983_v29 }
 0x383   : > { %4646 = vpow2.f32 %v984_v30 }
 0x38d   : > { %v4647_v31 = vpop.eup %4646 }
 0x38e   : > { %v986_v32 = vsel %vm904_vm2, %v4647_v31, 0.0 }
 0x38f   : > { %987 = vadd.xlane.f32.xlu1 %v986_v32 }
 0x3a0   : > { %1065 = vrot.lane.b32.xlu1 %v5333_v18, %s4921_s20 }
 0x41c   : > { %v988_v37 = vpop.xlane.xlu1 %987 }
 0x41d   : > { %4648 = vrcp.f32 %v988_v37 }
 0x420   : > { %v1066_v41 = vpop.permute.xlu1 %1065 }
 0x427   : > { %v4649_v38 = vpop.eup %4648 }
 0x428   : > { %v990_v39 = vmul.f32 %v4649_v38, %v4647_v31 }
 0x42a   : > { %4215 = vmatmul.mubr.msk.f32.vlgmr.msra.gmra.mrb[4].mxu0 %vm904_vm2, %v990_v39 }
 0x42b   : > { %4218 = vmatpush3.xpose.msk.msra.mxu0 %vm904_vm2, %v1068_v40  ;;  %4219 = vmatprep.mubr.msk.f32.mxu0 %vm4916_vm0, %v4917_v1 }
 0x42c   : > { %4227 = vmatprep.subr.mxu0 %v4917_v1 }
 0x42e   : > { %4220 = vmatmul.mubr.msk.f32.vlgmr.msra.gmra.mrb[6].mxu0 %vm904_vm2, %v1066_v41 }
 0x42f   : > { %4229 = vmatprep.mubr.msk.f32.mxu0 %vm4916_vm0, %v4917_v1  ;;  %4228 = vmatpush3.msra.mxu0 %v1231_v53 }
 0x430   : > { %4237 = vmatprep.subr.mxu0 %v4917_v1 }
 0x4fd   : > { %v1060_v42 = vpop.f32.mrb[4].mxu0 }
 0x4fe   : > { %v4216_v43 = vpop.f32.mrb[5].mxu0 }
 0x501   : > { %v1139_v44 = vpop.f32.mrb[6].mxu0 }
 0x502   : > { %v4221_v45 = vpop.f32.mrb[7].mxu0  ;;  %v1143_v46 = vsel %vm904_vm2, %v1139_v44, -inf }
 0x503   : > { %1144 = vmax.xlane.f32.xlu0 %v1143_v46 }
 0x519   : > { %1155 = vrot.lane.b32.xlu0 %v5360_v35, %s4921_s20 }
 0x51d   : > { %1378 = vrot.lane.b32.xlu0 %v5333_v18, %s4922_s10 }
 0x590   : > { %v1145_v47 = vpop.xlane.xlu0 %1144 }
 0x591   : > { %v1146_v48 = vsub.f32 %v1139_v44, %v1145_v47 }
 0x593   : > { %v1147_v49 = vmul.f32 1.442695, %v1146_v48 }
 0x594   : > { %v1156_v50 = vpop.permute.xlu0 %1155 }
 0x595   : > { %4650 = vpow2.f32 %v1147_v49  ;;  %4223 = vmatpush3.msra.mxu1 %v1156_v50 }
 0x596   : > { %4232 = vmatprep.subr.mxu1 %v4917_v1 }
 0x598   : > { %v1379_v61 = vpop.permute.xlu0 %1378 }
 0x59f   : > { %v4651_v51 = vpop.eup %4650 }
 0x5a0   : > { %v1149_v52 = vsel %vm904_vm2, %v4651_v51, 0.0 }
 0x5a1   : > { %1150 = vadd.xlane.f32.xlu1 %v1149_v52 }
 0x5b2   : > { %1380 = vrot.lane.b32.xlu1 %v5328_v14, %s4923_s22  ;;  %s5944_s22 = sld [smem:[#allocation23_spill]] }
 0x62e   : > { %v1151_v54 = vpop.xlane.xlu1 %1150 }
 0x62f   : > { %4652 = vrcp.f32 %v1151_v54  ;;  %v1986_v54 = vld [vmem:[#allocation7] sm:$0xff] }
 0x632   : > { %v1381_v59 = vpop.permute.xlu1 %1380 }
 0x639   : > { %v4653_v55 = vpop.eup %4652 }
 0x63a   : > { %v1153_v56 = vmul.f32 %v4653_v55, %v4651_v51  ;;  %v1987_v55 = vld [vmem:[#allocation7 + $0x8] sm:$0xff] }
 0x63c   : > { %4225 = vmatmul.mubr.msk.f32.vlgmr.msra.gmra.mrb[2].mxu1 %vm904_vm2, %v1153_v56  ;;  %v4423_v56 = vpack.c.bf16 %v1987_v55, %v1986_v54  ;;  %v4931_v55 = vmov 0  }
 0x63d   : > { %4233 = vmatpush3.msra.mxu1 %v1064_v57  ;;  %4234 = vmatprep.mubr.msk.f32.mxu1 %vm4916_vm0, %v4917_v1  ;;  %v1988_v57 = vld [vmem:[#allocation7 + $0x10] sm:$0xff] }
 0x63e   : > { %4242 = vmatprep.subr.mxu1 %v4917_v1 }
 0x640   : > { %4235 = vmatmul.mubr.msk.f32.vlgmr.msra.gmra.mrb[4].mxu1 %vm904_vm2, %v1060_v42  ;;  %v4034_v42 = vld [vmem:[#allocation10 + $0x3] ss:$0 sm:$0xff] }
 0x641   : > { %4244 = vmatprep.mubr.msk.f32.mxu1 %vm4916_vm0, %v4917_v1 }
 0x70f   : > { %v1227_v58 = vpop.f32.mrb[2].mxu1 }
 0x710   : > { %v4226_v60 = vpop.f32.mrb[3].mxu1  ;;  %4230 = vmatmul.mubr.msk.f32.vlgmr.msra.gmra.mrb[8].mxu0 %vm904_vm2, %v1227_v58  ;;  %v1989_v58 = vld [vmem:[#allocation7 + $0x18] sm:$0xff] }
 0x711   : > { %4238 = vmatpush3.xpose.msk.msra.mxu0 %vm904_vm2, %v1381_v59  ;;  %4239 = vmatprep.mubr.msk.f32.mxu0 %vm4916_vm0, %v4917_v1  ;;  %v4426_v59 = vpack.c.bf16 %v1989_v58, %v1988_v57  ;;  %v4933_v58 = vmov 7  }
 0x712   : > { %4247 = vmatprep.subr.mxu0 %v4917_v1 }
 0x713   : > { %v1374_v62 = vpop.f32.mrb[4].mxu1 }
 0x714   : > { %v4236_v63 = vpop.f32.mrb[5].mxu1  ;;  %4240 = vmatmul.mubr.msk.f32.vlgmr.msra.gmra.mrb[10].mxu0 %vm904_vm2, %v1379_v61 }
 0x715   : > { %4249 = vmatprep.mubr.msk.f32.mxu0 %vm4916_vm0, %v4917_v1  ;;  %v4035_v63 = vld [vmem:[#allocation10 + $0x4] ss:$0 sm:$0xff] }
 0x7e3   : > { %v1301_v2 = vpop.f32.mrb[8].mxu0 }
 0x7e4   : > { %v1375_v3 = vadd.f32 %v1374_v62, %v1301_v2  ;;  %v4231_v4 = vpop.f32.mrb[9].mxu0 }
 0x7e7   : > { %v1452_v5 = vpop.f32.mrb[10].mxu0 }
 0x7e8   : > { %v4241_v6 = vpop.f32.mrb[11].mxu0  ;;  %v1456_v7 = vsel %vm904_vm2, %v1452_v5, -inf }
 0x7e9   : > { %1457 = vmax.xlane.f32.xlu0 %v1456_v7  ;;  %v2071_v6 = vld [vmem:[%s5880_s9 + $0x8] sm:$0xff] }
 0x7ff   : > { %1467 = vrot.lane.b32.xlu0 %v5360_v35, %s4922_s10 }
 0x803   : > { %1618 = vrot.lane.b32.xlu0 %v5333_v18, %s5904_s27 }
 0x876   : > { %v1458_v8 = vpop.xlane.xlu0 %1457 }
 0x877   : > { %v1459_v11 = vsub.f32 %v1452_v5, %v1458_v8  ;;  %v2070_v5 = vld [vmem:[%s5880_s9] sm:$0xff] }
 0x878   : > { %v4429_v8 = vpack.c.bf16 %v2071_v6, %v2070_v5 }
 0x879   : > { %v1460_v12 = vmul.f32 1.442695, %v1459_v11 }
 0x87a   : > { %v1468_v13 = vpop.permute.xlu0 %1467 }
 0x87b   : > { %4654 = vpow2.f32 %v1460_v12  ;;  %4243 = vmatpush3.msra.mxu1 %v1468_v13  ;;  %v2072_v12 = vld [vmem:[%s5880_s9 + $0x10] sm:$0xff]  ;;  %v2073_v13 = vld [vmem:[%s5880_s9 + $0x18] sm:$0xff] }
 0x87c   : > { %4252 = vmatprep.subr.mxu1 %v4917_v1 }
 0x87e   : > { %v1619_v21 = vpop.permute.xlu0 %1618 }
 0x885   : > { %v4655_v15 = vpop.eup %4654 }
 0x886   : > { %v1462_v16 = vsel %vm904_vm2, %v4655_v15, 0.0 }
 0x887   : > { %1463 = vadd.xlane.f32.xlu1 %v1462_v16 }
 0x898   : > { %1620 = vrot.lane.b32.xlu1 %v5328_v14, %s4925_s23  ;;  %v1543_v14 = vld [vmem:[%s5877_s6 + $0x10] sm:$0xff]  ;;  %s5945_s23 = sld [smem:[#allocation24_spill]] }
 0x899   : > { %4248 = vmatpush3.msra.mxu0 %v1543_v14 }
 0x89a   : > { %4257 = vmatprep.subr.mxu0 %v4917_v1 }
 0x914   : > { %v1464_v17 = vpop.xlane.xlu1 %1463 }
 0x915   : > { %4656 = vrcp.f32 %v1464_v17  ;;  %v4043_v17 = vld [vmem:[%s5887_s16] ss:$0 sm:$0xff] }
 0x918   : > { %v1621_v18 = vpop.permute.xlu1 %1620 }
 0x91f   : > { %v4657_v19 = vpop.eup %4656 }
 0x920   : > { %v1466_v20 = vmul.f32 %v4657_v19, %v4655_v15  ;;  %v4432_v15 = vpack.c.bf16 %v2073_v13, %v2072_v12 }
 0x922   : > { %4245 = vmatmul.mubr.msk.f32.vlgmr.msra.gmra.mrb[6].mxu1 %vm904_vm2, %v1466_v20 }
 0x923   : > { %4253 = vmatpush3.xpose.msk.msra.mxu1 %vm904_vm2, %v1621_v18  ;;  %4254 = vmatprep.mubr.msk.f32.mxu1 %vm4916_vm0, %v4917_v1 }
 0x924   : > { %4262 = vmatprep.subr.mxu1 %v4917_v1 }
 0x926   : > { %4255 = vmatmul.mubr.msk.f32.vlgmr.msra.gmra.mrb[8].mxu1 %vm904_vm2, %v1619_v21 }
 0x927   : > { %4264 = vmatprep.mubr.msk.f32.mxu1 %vm4916_vm0, %v4917_v1 }
 0x9f5   : > { %v1539_v22 = vpop.f32.mrb[6].mxu1 }
 0x9f6   : > { %v4246_v23 = vpop.f32.mrb[7].mxu1  ;;  %4250 = vmatmul.mubr.msk.f32.vlgmr.msra.gmra.mrb[12].mxu0 %vm904_vm2, %v1539_v22 }
 0x9f7   : > { %4259 = vmatprep.mubr.msk.f32.mxu0 %vm4916_vm0, %v4917_v1 }
 0x9f9   : > { %v1692_v24 = vpop.f32.mrb[8].mxu1 }
 0x9fa   : > { %v4256_v25 = vpop.f32.mrb[9].mxu1  ;;  %v1696_v26 = vsel %vm904_vm2, %v1692_v24, -inf }
 0x9fb   : > { %1697 = vmax.xlane.f32.xlu0 %v1696_v26  ;;  %v4041_v26 = vld [vmem:[%s5886_s15] ss:$0 sm:$0xff] }
 0xa11   : > { %1707 = vrot.lane.b32.xlu0 %v5360_v35, %s5904_s27  ;;  %v1783_v35 = vld [vmem:[%s5877_s6 + $0x18] sm:$0xff]  ;;  %s4012_s27 = sshll.u32 %s700_s1, 3  ;;  %s4930_s1 = smov 116  }
 0xa12   : > { %4263 = vmatpush3.msra.mxu1 %v1783_v35  ;;  %s707_s14 = scalar_lea.vmem %s5945_s23, %s4012_s27  ;;  %s4944_s27 = smov 102  }
 0xa13   : > { %4422 = vmatprep.subr.bf16.mxu1 %v4915_v0 }
 0xa88   : > { %v1698_v27 = vpop.xlane.xlu0 %1697 }
 0xa89   : > { %v1699_v28 = vsub.f32 %v1692_v24, %v1698_v27  ;;  %v4926_v24 = vmov 2  }
 0xa8a   : > { %4592 = vset.pattern.permute.xlu0 %v4926_v24  ;;  %4594 = vset.pattern.permute.xlu1 %v4926_v24 }
 0xa8b   : > { %v1700_v29 = vmul.f32 1.442695, %v1699_v28  ;;  %v1889_v28 = vld [vmem:[%s5942_s29] sm:$0xff]  ;;  %s703_s29 = scalar_lea.vmem %s5944_s22, %s4472_s21  ;;  %s4934_s21 = smov 126  }
 0xa8c   : > { %v1708_v30 = vpop.permute.xlu0 %1707 }
 0xa8d   : > { %4658 = vpow2.f32 %v1700_v29  ;;  %4258 = vmatpush3.msra.mxu0 %v1708_v30  ;;  %v1890_v29 = vld [vmem:[%s5943_s19 + $0x8] sm:$0xff]  ;;  %v1891_v30 = vld [vmem:[%s5943_s19 + $0x10] sm:$0xff] }
 0xa8e   : > { %4416 = vmatprep.subr.bf16.mxu0 %v4915_v0 }
 0xa97   : > { %v4659_v31 = vpop.eup %4658 }
 0xa98   : > { %v1702_v32 = vsel %vm904_vm2, %v4659_v31, 0.0 }
 0xa99   : > { %1703 = vadd.xlane.f32.xlu1 %v1702_v32  ;;  %v1892_v32 = vld [vmem:[%s5943_s19 + $0x18] sm:$0xff] }
 0xac9   : > { %v1613_v33 = vpop.f32.mrb[12].mxu0 }
 0xaca   : > { %v1617_v34 = vadd.f32 %v1613_v33, %v1375_v3  ;;  %v4251_v36 = vpop.f32.mrb[13].mxu0  ;;  %v4036_v3 = vld [vmem:[#allocation10 + $0x5] ss:$0 sm:$0xff]  ;;  %v4420_v33 = vpack.c.bf16 %v1892_v32, %v1891_v30 }
 0xacb   : > { %v711_v36 = vld [vmem:[%s703_s29 + $0x8] sm:$0xff] }
 0xb26   : > { %v1704_v37 = vpop.xlane.xlu1 %1703 }
 0xb27   : > { %4660 = vrcp.f32 %v1704_v37  ;;  %v712_v37 = vld [vmem:[%s703_s29 + $0x10] sm:$0xff] }
 0xb31   : > { %v4661_v38 = vpop.eup %4660 }
 0xb32   : > { %v1706_v39 = vmul.f32 %v4661_v38, %v4659_v31  ;;  %v4417_v31 = vpack.c.bf16 %v1890_v29, %v1889_v28 }
 0xb34   : > { %4260 = vmatmul.mubr.msk.f32.vlgmr.msra.gmra.mrb[14].mxu0 %vm904_vm2, %v1706_v39  ;;  %v713_v39 = vld [vmem:[%s707_s14] sm:$0xff]  ;;  %s5948_s14 = sld [smem:[#allocation28_spill]] }
 0xb35   : > { %4275 = vmatprep.mubr.msk.f32.mxu0 %vm4916_vm0, %v4917_v1  ;;  %4418 = vmatpush3.bf16.msra.mxu0 %v4417_v31 }
 0xb36   : > { %4419 = vmatprep.subr.bf16.mxu0 %v4915_v0 }
 0xb39   : > { %4421 = vmatpush3.bf16.msra.mxu0 %v4420_v33 }
 0xb3a   : > { %4306 = vmatprep.subr.mxu0 %v4917_v1 }
 0xc07   : > { %v1779_v40 = vpop.f32.mrb[14].mxu0 }
 0xc08   : > { %v4261_v41 = vpop.f32.mrb[15].mxu0  ;;  %4265 = vmatmul.mubr.msk.f32.vlgmr.msra.gmra.mrb[10].mxu1 %vm904_vm2, %v1779_v40  ;;  %v5522_v40 = vmul.f32 4.0, %v713_v39 }
 0xc09   : > { %4292 = vmatprep.mubr.msk.f32.mxu1 %vm4916_vm0, %v4917_v1  ;;  %4424 = vmatpush3.bf16.msra.mxu1 %v4423_v56  ;;  %v5524_v41 = vmul.f32 2.0, %v713_v39  ;;  %v4932_v56 = vmov 6  }
 0xc0a   : > { %4425 = vmatprep.subr.bf16.mxu1 %v4915_v0 }
 0xc0d   : > { %4427 = vmatpush3.bf16.msra.mxu1 %v4426_v59 }
 0xc0e   : > { %4428 = vmatprep.subr.bf16.mxu1 %v4915_v0 }
 0xcdb   : > { %v1853_v43 = vpop.f32.mrb[10].mxu1 }
 0xcdc   : > { %v1857_v44 = vadd.f32 %v1853_v43, %v1617_v34  ;;  %v4266_v45 = vpop.f32.mrb[11].mxu1  ;;  %v710_v34 = vld [vmem:[%s703_s29] sm:$0xff] }
 0xcdd   : > { %4276 = vmatmul.mubr.msk.f32.vlgmr.msra.gmra.mrb[16].mxu0 %vm732_vm1, %v710_v34 }
 0xcde   : > { %v1862_v46 = vadd.f32 %v4034_v42, %v1857_v44  ;;  %4278 = vmatprep.mubr.msk.f32.mxu0 %vm4916_vm0, %v4917_v1 }
 0xce0   : > { %v1863_v47 = vadd.f32 %v1862_v46, %v5317_v9 }
 0xce1   : > { %4279 = vmatmul.mubr.msk.f32.gmra.mrb[18].mxu0 %vm732_vm1, %v711_v36 }
 0xce2   : > { %v1864_v48 = vsel %vm732_vm1, %v1863_v47, 0.0  ;;  %4281 = vmatprep.mubr.msk.f32.mxu0 %vm4916_vm0, %v4917_v1 }
 0xce3   : > { %1865 = vadd.xlane.f32.xlu1 %v1864_v48 }
 0xce5   : > { %4282 = vmatmul.mubr.msk.f32.gmra.mrb[20].mxu0 %vm732_vm1, %v712_v37 }
 0xce6   : > { %4308 = vmatprep.mubr.msk.f32.mxu0 %vm4916_vm0, %v4917_v1 }
 0xd70   : > { %v1866_v49 = vpop.xlane.xlu1 %1865 }
 0xd71   : > { %v1868_v50 = vmul.f32 0.03125, %v1866_v49 }
 0xd73   : > { %v1869_v51 = vsub.f32 %v1863_v47, %v1868_v50  ;;  %v4929_v47 = vmov 3  }
 0xd75   : > { %v1870_v52 = vmul.f32 %v1869_v51, %v1869_v51 }
 0xd77   : > { %v1871_v53 = vsel %vm732_vm1, %v1870_v52, 0.0 }
 0xd78   : > { %1872 = vadd.xlane.f32.xlu1 %v1871_v53 }
 0xdb0   : > { %v1972_v59 = vpop.f32.mrb[16].mxu0 }
 0xe05   : > { %v1873_v9 = vpop.xlane.xlu1 %1872 }
 0xe06   : > { %v1874_v60 = vmul.f32 0.03125, %v1873_v9  ;;  %v4037_v9 = vld [vmem:[#allocation10 + $0x6] ss:$0 sm:$0xff] }
 0xe08   : > { %v1875_v61 = vadd.f32 1e-05, %v1874_v60  ;;  %v4277_v60 = vpop.f32.mrb[17].mxu0 }
 0xe0a   : > { %4662 = vrsqrt.f32 %v1875_v61  ;;  %v5544_v61 = vadd.f32 %v4037_v9, %v1972_v59 }
 0xe14   : > { %v4663_v62 = vpop.eup %4662 }
 0xe15   : > { %v1877_v2 = vmul.f32 %v4663_v62, %v1869_v51  ;;  %v1977_v62 = vpop.f32.mrb[18].mxu0 }
 0xe17   : > { %v1882_v4 = vmul.f32 %v4035_v63, %v1877_v2  ;;  %v5547_v63 = vadd.f32 %v4037_v9, %v1977_v62  ;;  %v4280_v2 = vpop.f32.mrb[19].mxu0 }
 0xe19   : > { %v5453_v7 = vadd.f32 %v4036_v3, %v1882_v4  ;;  %v1982_v3 = vpop.f32.mrb[20].mxu0  ;;  %v5555_v6 = vpack.i.bf16 %v5547_v63, %v5544_v61 }
 0xe1a   : > { %v5549_v4 = vadd.f32 %v4037_v9, %v1982_v3  ;;  %v4283_v5 = vpop.f32.mrb[21].mxu0 }
 0xe1b   : > { %v1888_v11 = vadd.f32 %v5453_v7, %v5319_v10 }
 0xe1c   : > { %4307 = vmatpush3.msra.mxu0 %v5549_v4 }
 0xe1d   : > { %4293 = vmatmul.mubr.msk.f32.vlgmr.msra.gmra.mrb[12].mxu1 %vm732_vm1, %v1888_v11  ;;  %4434 = vmatprep.subr.bf16.mxu0 %v4915_v0 }
 0xe1e   : > { %4430 = vmatpush3.bf16.msra.mxu1 %v4429_v8  ;;  %4303 = vmatprep.mubr.msk.f32.mxu1 %vm4916_vm0, %v4917_v1  ;;  %v4435_v8 = vpack.c.bf16 %v5547_v63, %v5544_v61  ;;  %v2733_v61 = vld [vmem:[#allocation8 + $0x8] sm:$0xff] }
 0xe1f   : > { %4431 = vmatprep.subr.bf16.mxu1 %v4915_v0 }
 0xe22   : > { %4433 = vmatpush3.bf16.msra.mxu1 %v4432_v15 }
 0xe23   : > { %4318 = vmatprep.subr.mxu1 %v4917_v1 }
 0xe25   : > { %4304 = vmatmul.mubr.msk.f32.vlgmr.msra.gmra.mrb[14].mxu1 %vm732_vm1, %v1888_v11 }
 0xe26   : > { %4320 = vmatprep.mubr.msk.f32.mxu1 %vm4916_vm0, %v4917_v1 }
 0xef0   : > { %v2066_v10 = vpop.f32.mrb[12].mxu1 }
 0xef1   : > { %v4294_v16 = vpop.f32.mrb[13].mxu1  ;;  %v5488_v27 = vadd.f32 %v4041_v26, %v2066_v10  ;;  %v4935_v26 = vmov 1  }
 0xef8   : > { %v2147_v19 = vpop.f32.mrb[14].mxu1 }
 0xef9   : > { %v5474_v20 = vadd.f32 %v4043_v17, %v2147_v19  ;;  %v4305_v18 = vpop.f32.mrb[15].mxu1 }
 0xefb   : > { %v2441_v21 = vsel %vm2440_vm3, %v5474_v20, -inf  ;;  %v2881_v11 = vsel %vm2880_vm5, %v5474_v20, -inf  ;;  %v2154_v12 = vsel %vm2153_vm4, %v5474_v20, -inf }
 0xefc   : > { %2442 = vmax.xlane.f32.xlu1 %v2441_v21  ;;  %v5571_v21 = vld [vmem:[%s5946_s3] ss:$0 sm:$0xff] }
 0xf89   : > { %v2443_v14 = vpop.xlane.xlu1 %2442 }
 0xf8a   : > { %v2444_v22 = vsub.f32 %v5474_v20, %v2443_v14  ;;  %v5576_v14 = vld [vmem:[%s5946_s3 + $0x1] ss:$0 sm:$0xff] }
 0xf8c   : > { %v2445_v23 = vmul.f32 1.442695, %v2444_v22 }
 0xf8e   : > { %4664 = vpow2.f32 %v2445_v23 }
 0xf98   : > { %v5480_v25 = vpop.eup %4664 }
 0xf99   : > { %2448 = vrot.lane.b32.xlu0 %v5480_v25, %s4927_s18 }
 0xf9d   : > { %2486 = vrot.lane.b32.xlu0 %v5488_v27, %s4928_s11  ;;  %s698_s11 = scalar_lea.vmem [#allocation11], %s5277_s13  ;;  %s4832_s13 = sshll.u32 %s4950_s0, 4  ;;  %s4833_s13 = int_to_ptr.vmem [resolvable:$false] %s4832_s13 }
 0xf9e   : > { %s3849_s22 = sshll.u32 %s698_s11, 4  ;;  %s4834_s23 = scalar_lea.vmem %s4833_s13, 256  ;;  %s5828_s22 = int_to_ptr.vmem [resolvable:$true] %s3849_s22 }
 0xf9f   : > { %p4835_p8 = scmp.lt.s32.totalorder %s5828_s22, %s4833_s13 }
0x100b   : > { %v2449_v38 = vpop.permute.xlu0 %2448 }
0x100c   : > { %v2451_v35 = vsel %vm2153_vm4, %v2449_v38, 0.0 }
0x100d   : > { %2452 = vadd.xlane.f32.xlu1 %v2451_v35 }
0x100f   : > { %v2487_v42 = vpop.permute.xlu0 %2486 }
0x1010   : > { %v2489_v43 = vadd.f32 %v2487_v42, %v5522_v40  ;;  %v2515_v45 = vadd.f32 %v2487_v42, %v5524_v41  ;;  %v4936_v42 = vmov 4  }
0x1012   : > { %v5527_v44 = vadd.f32 -0.5, %v2489_v43  ;;  %v4056_v46 = vadd.f32 -0.5, %v2515_v45 }
0x1014   : > { %2518 = vperm.xlu0 %4592, %v5527_v44  }
0x1018   : > { %4593 = vset.pattern.permute.xlu0 %v4929_v47 }
0x1019   : > { %2527 = vperm.xlu0 %4593, %v4056_v46  }
0x101e   : > { %2541 = vrot.lane.b32.xlu1 %v5488_v27, %s4930_s1 }
0x1093   : > { %v2519_v13 = vpop.permute.xlu0 %2518 }
0x1094   : > { %v2521_v28 = vsub.f32 %v2519_v13, %v5571_v21 }
0x1096   : > { %v2522_v32 = vand.u32 2147483647, %v2521_v28 }
0x1098   : > { %v2528_v15 = vpop.permute.xlu0 %2527  ;;  %v2523_v38 = vsub.f32 1.0, %v2522_v32 }
0x109a   : > { %v2453_v48 = vpop.xlane.xlu1 %2452  ;;  %v2524_v46 = vmax.f32 %v2523_v38, 0.0 }
0x109b   : > { %4666 = vrcp.f32 %v2453_v48 }
0x109e   : > { %v2542_v49 = vpop.permute.xlu1 %2541 }
0x109f   : > { %v2544_v50 = vadd.f32 %v2542_v49, %v5522_v40  ;;  %v2546_v51 = vadd.f32 %v2542_v49, %v5524_v41 }
0x10a1   : > { %v4057_v52 = vadd.f32 -0.5, %v2544_v50  ;;  %v4058_v53 = vadd.f32 -0.5, %v2546_v51  ;;  %v4937_v50 = vmov 5  }
0x10a3   : > { %2550 = vperm.xlu1 %4594, %v4057_v52   ;;  %2559 = vperm.xlu0 %4593, %v4058_v53  }
0x10a5   : > { %v4667_v54 = vpop.eup %4666 }
0x10a6   : > { %v5540_v57 = vmul.f32 %v4667_v54, %v5480_v25  ;;  %v2530_v25 = vsub.f32 %v2528_v15, %v5576_v14 }
0x10a7   : > { %2456 = vrot.lane.b32.xlu0 %v5488_v27, %s4921_s20  ;;  %4597 = vset.pattern.permute.xlu1 %v4931_v55 }
0x10a8   : > { %4595 = vset.pattern.permute.xlu0 %v4932_v56  ;;  %v2531_v31 = vand.u32 2147483647, %v2530_v25 }
0x10aa   : > { %v2532_v37 = vsub.f32 1.0, %v2531_v31 }
0x10ab   : > { %2536 = vperm.xlu0 %4595, %v5540_v57  }
0x10ac   : > { %v2533_v43 = vmax.f32 %v2532_v37, 0.0 }
0x10af   : > { %4596 = vset.pattern.permute.xlu0 %v4933_v58 }
0x10b0   : > { %2568 = vperm.xlu0 %4596, %v5540_v57  }
0x10b4   : > { %4599 = vset.pattern.permute.xlu0 %v4931_v55 }
0x10c7   : > { %2882 = vmax.xlane.f32.xlu1 %v2881_v11 }
0x10cf   : > { %2155 = vmax.xlane.f32.xlu0 %v2154_v12 }
0x10e5   : > { %2493 = vperm.xlu0 %4599, %v5527_v44  }
0x10e9   : > { %2202 = vrot.lane.b32.xlu0 %v5488_v27, %s4934_s21  ;;  %s5951_s21 = sld [smem:[#allocation31_spill]] }
0x10ea   : > { %4613 = vset.pattern.permute.xlu0 %v4926_v24 }
0x10ed   : > { %2258 = vrot.lane.b32.xlu0 %v5488_v27, %s4927_s18  ;;  %s4938_s18 = smov 110  }
0x1122   : > { %v2560_v10 = vpop.permute.xlu0 %2559  ;;  %v2551_v18 = vpop.permute.xlu1 %2550 }
0x1123   : > { %v2553_v22 = vsub.f32 %v2551_v18, %v5571_v21  ;;  %v2562_v23 = vsub.f32 %v2560_v10, %v5576_v14 }
0x1125   : > { %v2554_v29 = vand.u32 2147483647, %v2553_v22  ;;  %v2563_v30 = vand.u32 2147483647, %v2562_v23 }
0x1126   : > { %v2457_v16 = vpop.permute.xlu0 %2456 }
0x1127   : > { %v2459_v17 = vadd.f32 %v2457_v16, %v5522_v40  ;;  %v2555_v33 = vsub.f32 1.0, %v2554_v29  ;;  %v2564_v34 = vsub.f32 1.0, %v2563_v30 }
0x1129   : > { %v4054_v19 = vadd.f32 -0.5, %v2459_v17  ;;  %v2556_v39 = vmax.f32 %v2555_v33, 0.0  ;;  %v2565_v35 = vmax.f32 %v2564_v34, 0.0 }
0x112a   : > { %v2537_v36 = vpop.permute.xlu0 %2536 }
0x112b   : > { %2463 = vperm.xlu1 %4597, %v4054_v19   ;;  %v2566_v48 = vmul.f32 %v2565_v35, %v2556_v39 }
0x112f   : > { %4598 = vset.pattern.permute.xlu1 %v4935_v26  ;;  %v2569_v45 = vpop.permute.xlu0 %2568 }
0x1130   : > { %2471 = vperm.xlu1 %4598, %v4054_v19   ;;  %v2571_v49 = vmul.f32 %v2569_v45, %v2566_v48 }
0x1134   : > { %2501 = vperm.xlu1 %4598, %v5527_v44   ;;  %v2534_v44 = vmul.f32 %v2533_v43, %v2524_v46 }
0x1136   : > { %v2539_v51 = vmul.f32 %v2537_v36, %v2534_v44 }
0x1138   : > { %2577 = vrot.lane.b32.xlu1 %v5549_v4, %s4921_s20  ;;  %v2572_v52 = vadd.f32 %v2571_v49, %v2539_v51 }
0x1139   : > { %4600 = vset.pattern.permute.xlu1 %v4936_v42 }
0x113c   : > { %2481 = vperm.xlu1 %4600, %v5540_v57  }
0x1140   : > { %4601 = vset.pattern.permute.xlu1 %v4937_v50 }
0x1141   : > { %2510 = vperm.xlu1 %4601, %v5540_v57  }
0x1145   : > { %2574 = vrot.lane.b32.xlu1 %v2572_v52, %s4922_s10 }
0x1146   : > { %4607 = vset.pattern.permute.xlu1 %v4926_v24 }
0x1149   : > { %4603 = vrot.lane.b32.xlu1 %v5555_v6, %s4921_s20 }
0x1154   : > { %v2883_v53 = vpop.xlane.xlu1 %2882 }
0x1155   : > { %v2884_v54 = vsub.f32 %v5474_v20, %v2883_v53 }
0x1157   : > { %v2885_v56 = vmul.f32 1.442695, %v2884_v54 }
0x1159   : > { %4668 = vpow2.f32 %v2885_v56 }
0x115c   : > { %v2156_v59 = vpop.xlane.xlu0 %2155 }
0x115d   : > { %v2157_v57 = vsub.f32 %v5474_v20, %v2156_v59 }
0x115f   : > { %v2158_v9 = vmul.f32 1.442695, %v2157_v57 }
0x1161   : > { %4670 = vpow2.f32 %v2158_v9 }
0x1163   : > { %v5593_v58 = vpop.eup %4668 }
0x1164   : > { %2888 = vrot.lane.b32.xlu1 %v5593_v58, %s4921_s20  ;;  %v2494_v2 = vpop.permute.xlu0 %2493  ;;  %s4939_s20 = smov 108  }
0x1165   : > { %v2496_v29 = vsub.f32 %v2494_v2, %v5571_v21 }
0x1167   : > { %v2497_v34 = vand.u32 2147483647, %v2496_v29  ;;  %v4940_v29 = vmov 10  }
0x1168   : > { %v2203_v3 = vpop.permute.xlu0 %2202 }
0x1169   : > { %v2205_v5 = vadd.f32 %v2203_v3, %v5522_v40  ;;  %v2232_v12 = vadd.f32 %v5524_v41, %v2203_v3  ;;  %v2498_v35 = vsub.f32 1.0, %v2497_v34 }
0x116b   : > { %v5598_v60 = vpop.eup %4670  ;;  %v5604_v11 = vadd.f32 -0.5, %v2205_v5  ;;  %v4049_v15 = vadd.f32 -0.5, %v2232_v12  ;;  %v2499_v48 = vmax.f32 %v2498_v35, 0.0 }
0x116c   : > { %v2160_v62 = vsel %vm2153_vm4, %v5598_v60, 0.0  ;;  %v2259_v13 = vpop.permute.xlu0 %2258 }
0x116d   : > { %v2261_v10 = vadd.f32 %v2259_v13, %v5522_v40  ;;  %v2263_v17 = vadd.f32 %v2259_v13, %v5524_v41 }
0x116f   : > { %v4050_v16 = vadd.f32 -0.5, %v2261_v10  ;;  %v4051_v19 = vadd.f32 -0.5, %v2263_v17 }
0x1188   : > { %2161 = vadd.xlane.f32.xlu1 %v2160_v62 }
0x1199   : > { %2926 = vrot.lane.b32.xlu1 %v5488_v27, %s4938_s18 }
0x119d   : > { %2235 = vperm.xlu1 %4607, %v5604_v11  }
0x11a1   : > { %4608 = vset.pattern.permute.xlu1 %v4929_v47 }
0x11a2   : > { %2244 = vperm.xlu1 %4608, %v4049_v15  }
0x11a6   : > { %4609 = vset.pattern.permute.xlu1 %v4926_v24 }
0x11a7   : > { %2267 = vperm.xlu1 %4609, %v4050_v16  }
0x11aa   : > { %v2464_v18 = vpop.permute.xlu1 %2463 }
0x11ab   : > { %4610 = vset.pattern.permute.xlu1 %v4929_v47  ;;  %v2466_v32 = vsub.f32 %v2464_v18, %v5571_v21 }
0x11ac   : > { %2276 = vperm.xlu1 %4610, %v4051_v19  }
0x11ad   : > { %v2467_v37 = vand.u32 2147483647, %v2466_v32  ;;  %v2166_v32 = vadd.f32 %v5522_v40, %v5488_v27 }
0x11af   : > { %v2472_v22 = vpop.permute.xlu1 %2471  ;;  %v2468_v43 = vsub.f32 1.0, %v2467_v37  ;;  %v3246_v37 = vsel %vm3245_vm7, %v5474_v20, -inf }
0x11b0   : > { %4611 = vset.pattern.permute.xlu1 %v4926_v24  ;;  %v2474_v30 = vsub.f32 %v2472_v22, %v5576_v14 }
0x11b1   : > { %v2469_v49 = vmax.f32 %v2468_v43, 0.0 }
0x11b2   : > { %v2475_v36 = vand.u32 2147483647, %v2474_v30 }
0x11b3   : > { %v2502_v23 = vpop.permute.xlu1 %2501 }
0x11b4   : > { %v2504_v28 = vsub.f32 %v2502_v23, %v5576_v14  ;;  %v2476_v42 = vsub.f32 1.0, %v2475_v36 }
0x11b6   : > { %v2505_v33 = vand.u32 2147483647, %v2504_v28  ;;  %v2477_v44 = vmax.f32 %v2476_v42, 0.0 }
0x11b7   : > { %v2578_v25 = vpop.permute.xlu1 %2577 }
0x11b8   : > { %4319 = vmatpush3.msra.mxu1 %v2578_v25  ;;  %v2506_v38 = vsub.f32 1.0, %v2505_v33  ;;  %v2478_v54 = vmul.f32 %v2477_v44, %v2469_v49  ;;  %v4045_v33 = vadd.f32 -0.5, %v2166_v32 }
0x11b9   : > { %4437 = vmatprep.subr.bf16.mxu1 %v4915_v0 }
0x11ba   : > { %v2507_v45 = vmax.f32 %v2506_v38, 0.0 }
0x11bb   : > { %v2482_v31 = vpop.permute.xlu1 %2481 }
0x11bc   : > { %v2508_v50 = vmul.f32 %v2507_v45, %v2499_v48  ;;  %v2484_v57 = vmul.f32 %v2482_v31, %v2478_v54  ;;  %v4941_v31 = vmov 11  }
0x11c0   : > { %v2511_v39 = vpop.permute.xlu1 %2510 }
0x11c1   : > { %v2513_v56 = vmul.f32 %v2511_v39, %v2508_v50 }
0x11c3   : > { %v2514_v9 = vadd.f32 %v2513_v56, %v2484_v57 }
0x11c4   : > { %v2575_v46 = vpop.permute.xlu1 %2574 }
0x11c5   : > { %4321 = vmatmul.mubr.msk.f32.vlgmr.msra.gmra.mrb[16].mxu1 %vm904_vm2, %v2575_v46 }
0x11c6   : > { %4327 = vmatprep.mubr.msk.f32.mxu1 %vm4916_vm0, %v4917_v1 }
0x11c8   : > { %v4604_v51 = vpop.permute.xlu1 %4603 }
0x11c9   : > { %v4606_v52 = vunpack.i.h.bf16 %v4604_v51  ;;  %v4605_v53 = vunpack.i.l.bf16 %v4604_v51 }
0x11cb   : > { %v4438_v59 = vpack.c.bf16 %v4606_v52, %v4605_v53 }
0x11cd   : > { %4439 = vmatpush3.bf16.msra.mxu1 %v4438_v59 }
0x11ce   : > { %4335 = vmatprep.subr.mxu1 %v4917_v1 }
0x11d0   : > { %4328 = vmatmul.mubr.msk.f32.vlgmr.msra.gmra.mrb[16].mxu1 %vm2365_vm6, %v2514_v9 }
0x11d1   : > { %4337 = vmatprep.mubr.msk.f32.mxu1 %vm4916_vm0, %v4917_v1 }
0x11d6   : > { %v2889_v62 = vpop.permute.xlu1 %2888 }
0x11d7   : > { %v2891_v2 = vsel %vm2153_vm4, %v2889_v62, 0.0 }
0x11d8   : > { %2892 = vadd.xlane.f32.xlu0 %v2891_v2 }
0x11ee   : > { %2981 = vrot.lane.b32.xlu0 %v5488_v27, %s4939_s20  ;;  %s5952_s20 = sld [smem:[#allocation33_spill]] }
0x1215   : > { %v2162_v3 = vpop.xlane.xlu1 %2161 }
0x1216   : > { %4672 = vrcp.f32 %v2162_v3 }
0x1219   : > { %v2927_v5 = vpop.permute.xlu1 %2926 }
0x121a   : > { %v2929_v12 = vadd.f32 %v2927_v5, %v5522_v40  ;;  %v2955_v16 = vadd.f32 %v2927_v5, %v5524_v41 }
0x121c   : > { %v5629_v13 = vadd.f32 -0.5, %v2929_v12  ;;  %v4065_v17 = vadd.f32 -0.5, %v2955_v16 }
0x121d   : > { %v2236_v34 = vpop.permute.xlu1 %2235 }
0x121e   : > { %2958 = vperm.xlu0 %4613, %v5629_v13   ;;  %v2238_v42 = vsub.f32 %v2236_v34, %v5571_v21 }
0x1220   : > { %v4673_v15 = vpop.eup %4672  ;;  %v2239_v48 = vand.u32 2147483647, %v2238_v42 }
0x1221   : > { %v2164_v10 = vmul.f32 %v4673_v15, %v5598_v60  ;;  %v2245_v36 = vpop.permute.xlu1 %2244 }
0x1222   : > { %4615 = vset.pattern.permute.xlu0 %v4929_v47  ;;  %v2247_v39 = vsub.f32 %v2245_v36, %v5576_v14  ;;  %v2240_v51 = vsub.f32 1.0, %v2239_v48  ;;  %v4943_v48 = vmov 8  }
0x1223   : > { %2253 = vperm.xlu1 %4611, %v2164_v10  }
0x1224   : > { %v2248_v45 = vand.u32 2147483647, %v2247_v39  ;;  %v2241_v57 = vmax.f32 %v2240_v51, 0.0 }
0x1226   : > { %v2249_v49 = vsub.f32 1.0, %v2248_v45 }
0x1227   : > { %4612 = vset.pattern.permute.xlu1 %v4929_v47 }
0x1228   : > { %2285 = vperm.xlu1 %4612, %v2164_v10   ;;  %v2250_v53 = vmax.f32 %v2249_v49, 0.0 }
0x122a   : > { %v2251_v2 = vmul.f32 %v2250_v53, %v2241_v57 }
0x122c   : > { %2967 = vperm.xlu1 %4612, %v4065_v17  }
0x1230   : > { %4614 = vset.pattern.permute.xlu1 %v4926_v24 }
0x1265   : > { %v2893_v19 = vpop.xlane.xlu0 %2892 }
0x1266   : > { %4674 = vrcp.f32 %v2893_v19 }
0x1269   : > { %v2982_v18 = vpop.permute.xlu0 %2981 }
0x126a   : > { %v2984_v22 = vadd.f32 %v2982_v18, %v5522_v40  ;;  %v2986_v23 = vadd.f32 %v2982_v18, %v5524_v41 }
0x126c   : > { %v4066_v60 = vadd.f32 -0.5, %v2984_v22  ;;  %v4067_v25 = vadd.f32 -0.5, %v2986_v23 }
0x126e   : > { %2990 = vperm.xlu1 %4614, %v4066_v60   ;;  %2999 = vperm.xlu0 %4615, %v4067_v25  }
0x1270   : > { %v4675_v28 = vpop.eup %4674 }
0x1271   : > { %v5643_v30 = vmul.f32 %v4675_v28, %v5593_v58  ;;  %v2268_v58 = vpop.permute.xlu1 %2267 }
0x1272   : > { %2896 = vrot.lane.b32.xlu0 %v5488_v27, %s4922_s10  ;;  %4619 = vset.pattern.permute.xlu1 %v4931_v55  ;;  %v2270_v43 = vsub.f32 %v2268_v58, %v5571_v21 }
0x1273   : > { %4616 = vset.pattern.permute.xlu0 %v4940_v29 }
0x1274   : > { %v2271_v44 = vand.u32 2147483647, %v2270_v43 }
0x1275   : > { %v2277_v38 = vpop.permute.xlu1 %2276 }
0x1276   : > { %2976 = vperm.xlu0 %4616, %v5643_v30   ;;  %v2279_v35 = vsub.f32 %v2277_v38, %v5576_v14  ;;  %v2272_v52 = vsub.f32 1.0, %v2271_v44 }
0x1278   : > { %v2280_v46 = vand.u32 2147483647, %v2279_v35  ;;  %v2273_v9 = vmax.f32 %v2272_v52, 0.0 }
0x127a   : > { %4617 = vset.pattern.permute.xlu0 %v4941_v31  ;;  %v2281_v50 = vsub.f32 1.0, %v2280_v46  ;;  %v4942_v46 = vmov 9  }
0x127b   : > { %3008 = vperm.xlu0 %4617, %v5643_v30  }
0x127c   : > { %v2282_v54 = vmax.f32 %v2281_v50, 0.0 }
0x127e   : > { %v2283_v3 = vmul.f32 %v2282_v54, %v2273_v9 }
0x127f   : > { %4618 = vset.pattern.permute.xlu0 %v4935_v26 }
0x1280   : > { %2182 = vperm.xlu0 %4618, %v4045_v33  }
0x1284   : > { %2217 = vperm.xlu0 %4618, %v5604_v11  }
0x1288   : > { %4620 = vset.pattern.permute.xlu0 %v4931_v55 }
0x1289   : > { %2170 = vperm.xlu0 %4620, %v4045_v33  }
0x128d   : > { %2196 = vperm.xlu0 %4620, %v2164_v10  }
0x1291   : > { %4621 = vset.pattern.permute.xlu0 %v4935_v26 }
0x1292   : > { %3247 = vmax.xlane.f32.xlu1 %v3246_v37  ;;  %2226 = vperm.xlu0 %4621, %v2164_v10  }
0x129d   : > { %v2959_v16 = vpop.permute.xlu0 %2958 }
0x129e   : > { %v2961_v28 = vsub.f32 %v2959_v16, %v5571_v21 }
0x12a0   : > { %v2962_v34 = vand.u32 2147483647, %v2961_v28 }
0x12a2   : > { %v2254_v56 = vpop.permute.xlu1 %2253  ;;  %v2963_v39 = vsub.f32 1.0, %v2962_v34 }
0x12a3   : > { %2209 = vperm.xlu1 %4619, %v5604_v11   ;;  %v5659_v59 = vpop.f32.mrb[16].mxu1  ;;  %v2256_v12 = vmul.f32 %v2254_v56, %v2251_v2 }
0x12a4   : > { %v4329_v62 = vpop.f32.mrb[17].mxu1  ;;  %v2964_v44 = vmax.f32 %v2963_v39, 0.0 }
0x12a7   : > { %v2286_v5 = vpop.permute.xlu1 %2285 }
0x12a8   : > { %v2288_v15 = vmul.f32 %v2286_v5, %v2283_v3 }
0x12aa   : > { %v2289_v10 = vadd.f32 %v2288_v15, %v2256_v12 }
0x12ab   : > { %v2968_v17 = vpop.permute.xlu1 %2967 }
0x12ac   : > { %2291 = vrot.lane.b32.xlu1 %v2289_v10, %s4922_s10  ;;  %v2970_v23 = vsub.f32 %v2968_v17, %v5576_v14 }
0x12ae   : > { %v2971_v33 = vand.u32 2147483647, %v2970_v23 }
0x12b0   : > { %v2972_v38 = vsub.f32 1.0, %v2971_v33 }
0x12b2   : > { %v2973_v43 = vmax.f32 %v2972_v38, 0.0 }
0x12b4   : > { %v2974_v50 = vmul.f32 %v2973_v43, %v2964_v44 }
0x12ed   : > { %v3000_v19 = vpop.permute.xlu0 %2999  ;;  %v2991_v18 = vpop.permute.xlu1 %2990 }
0x12ee   : > { %v3002_v22 = vsub.f32 %v3000_v19, %v5576_v14  ;;  %v2993_v11 = vsub.f32 %v2991_v18, %v5571_v21 }
0x12f0   : > { %v3003_v29 = vand.u32 2147483647, %v3002_v22  ;;  %v2994_v31 = vand.u32 2147483647, %v2993_v11 }
0x12f1   : > { %v2897_v60 = vpop.permute.xlu0 %2896 }
0x12f2   : > { %v2899_v25 = vadd.f32 %v2897_v60, %v5522_v40  ;;  %v3004_v36 = vsub.f32 1.0, %v3003_v29  ;;  %v2995_v58 = vsub.f32 1.0, %v2994_v31 }
0x12f4   : > { %v4063_v32 = vadd.f32 -0.5, %v2899_v25  ;;  %v3005_v35 = vmax.f32 %v3004_v36, 0.0  ;;  %v2996_v42 = vmax.f32 %v2995_v58, 0.0 }
0x12f5   : > { %v2977_v37 = vpop.permute.xlu0 %2976 }
0x12f6   : > { %2911 = vperm.xlu0 %4621, %v4063_v32   ;;  %2903 = vperm.xlu1 %4619, %v4063_v32   ;;  %v3006_v49 = vmul.f32 %v3005_v35, %v2996_v42  ;;  %v2979_v52 = vmul.f32 %v2977_v37, %v2974_v50 }
0x12fa   : > { %2941 = vperm.xlu0 %4621, %v5629_v13   ;;  %2933 = vperm.xlu1 %4619, %v5629_v13   ;;  %v3009_v45 = vpop.permute.xlu0 %3008 }
0x12fb   : > { %v3011_v51 = vmul.f32 %v3009_v45, %v3006_v49 }
0x12fd   : > { %v3012_v13 = vadd.f32 %v3011_v51, %v2979_v52 }
0x12fe   : > { %4623 = vset.pattern.permute.xlu0 %v4942_v46  ;;  %4622 = vset.pattern.permute.xlu1 %v4943_v48 }
0x12ff   : > { %2950 = vperm.xlu0 %4623, %v5643_v30   ;;  %2921 = vperm.xlu1 %4622, %v5643_v30   ;;  %v2183_v53 = vpop.permute.xlu0 %2182 }
0x1300   : > { %v2189_v30 = vsub.f32 %v2183_v53, %v5576_v14 }
0x1302   : > { %v2190_v3 = vand.u32 2147483647, %v2189_v30 }
0x1303   : > { %4625 = vrot.lane.b32.xlu0 %v5555_v6, %s4922_s10  ;;  %3016 = vrot.lane.b32.xlu1 %v5549_v4, %s4922_s10  ;;  %v2218_v54 = vpop.permute.xlu0 %2217 }
0x1304   : > { %4629 = vset.pattern.permute.xlu1 %v4926_v24  ;;  %v2220_v9 = vsub.f32 %v2218_v54, %v5576_v14  ;;  %v2191_v17 = vsub.f32 1.0, %v2190_v3 }
0x1306   : > { %v2221_v12 = vand.u32 2147483647, %v2220_v9  ;;  %v2192_v25 = vmax.f32 %v2191_v17, 0.0 }
0x1307   : > { %3014 = vrot.lane.b32.xlu1 %v3012_v13, %s4922_s10 }
0x1308   : > { %v2171_v56 = vpop.permute.xlu0 %2170  ;;  %v2222_v18 = vsub.f32 1.0, %v2221_v12 }
0x1309   : > { %v2177_v57 = vsub.f32 %v2171_v56, %v5571_v21 }
0x130b   : > { %v2178_v62 = vand.u32 2147483647, %v2177_v57 }
0x130c   : > { %v2197_v23 = vpop.permute.xlu0 %2196 }
0x130d   : > { %v2179_v15 = vsub.f32 1.0, %v2178_v62 }
0x130f   : > { %v2180_v22 = vmax.f32 %v2179_v15, 0.0  ;;  %v2439_v15 = vld [vmem:[#allocation8] sm:$0xff] }
0x1310   : > { %4336 = vmatpush3.msra.mxu1 %v2439_v15 }
0x1311   : > { %v2193_v29 = vmul.f32 %v2192_v25, %v2180_v22  ;;  %v2227_v33 = vpop.permute.xlu0 %2226  ;;  %4352 = vmatprep.subr.mxu1 %v4917_v1 }
0x1313   : > { %v2199_v36 = vmul.f32 %v2197_v23, %v2193_v29 }
0x131f   : > { %v3248_v2 = vpop.xlane.xlu1 %3247 }
0x1320   : > { %v3249_v5 = vsub.f32 %v5474_v20, %v3248_v2  ;;  %v2223_v20 = vmax.f32 %v2222_v18, 0.0 }
0x1322   : > { %v3250_v10 = vmul.f32 1.442695, %v3249_v5 }
0x1323   : > { %v2210_v16 = vpop.permute.xlu1 %2209 }
0x1324   : > { %4676 = vpow2.f32 %v3250_v10  ;;  %v2212_v19 = vsub.f32 %v2210_v16, %v5571_v21 }
0x1326   : > { %v2213_v11 = vand.u32 2147483647, %v2212_v19 }
0x1327   : > { %v2292_v60 = vpop.permute.xlu1 %2291 }
0x1328   : > { %v2214_v28 = vsub.f32 1.0, %v2213_v11  ;;  %4309 = vmatmul.mubr.msk.f32.vlgmr.msra.gmra.mrb[22].mxu0 %vm904_vm2, %v2292_v60 }
0x1329   : > { %4436 = vmatpush3.bf16.msra.mxu0 %v4435_v8  ;;  %4315 = vmatprep.mubr.msk.f32.mxu0 %vm4916_vm0, %v4917_v1 }
0x132a   : > { %v2215_v31 = vmax.f32 %v2214_v28, 0.0  ;;  %4330 = vmatprep.subr.mxu0 %v4917_v1 }
0x132c   : > { %v2224_v32 = vmul.f32 %v2223_v20, %v2215_v31 }
0x132e   : > { %v5689_v34 = vpop.eup %4676  ;;  %v2229_v58 = vmul.f32 %v2227_v33, %v2224_v32 }
0x132f   : > { %3253 = vrot.lane.b32.xlu1 %v5689_v34, %s4930_s1 }
0x1330   : > { %v2230_v37 = vadd.f32 %v2229_v58, %v2199_v36  ;;  %v4946_v58 = vmov 15  }
0x1331   : > { %4634 = vset.pattern.permute.xlu0 %v4946_v58 }
0x1332   : > { %4316 = vmatmul.mubr.msk.f32.vlgmr.msra.gmra.mrb[22].mxu0 %vm2365_vm6, %v2230_v37  ;;  %v4947_v37 = vmov 14  }
0x1333   : > { %3291 = vrot.lane.b32.xlu1 %v5488_v27, %s4944_s27  ;;  %4331 = vmatpush3.msra.mxu0 %v2733_v61  ;;  %v3170_v61 = vld [vmem:[#allocation8 + $0x10] sm:$0xff]  ;;  %s5949_s27 = sld [smem:[#allocation29_spill]] }
0x1334   : > { %4332 = vmatprep.mubr.msk.f32.mxu0 %vm4916_vm0, %v4917_v1  ;;  %4340 = vmatprep.subr.mxu0 %v4917_v1 }
0x1336   : > { %4333 = vmatmul.mubr.msk.f32.vlgmr.msra.gmra.mrb[24].mxu0 %vm904_vm2, %v5659_v59 }
0x1337   : > { %3346 = vrot.lane.b32.xlu1 %v5488_v27, %s4945_s26  ;;  %4342 = vmatprep.mubr.msk.f32.mxu0 %vm4916_vm0, %v4917_v1 }
0x1339   : > { %s5950_s26 = smov %s5949_s27 }
0x1375   : > { %v2912_v63 = vpop.permute.xlu0 %2911  ;;  %v2904_v8 = vpop.permute.xlu1 %2903 }
0x1376   : > { %v2914_v38 = vsub.f32 %v2912_v63, %v5576_v14  ;;  %v2906_v39 = vsub.f32 %v2904_v8, %v5571_v21 }
0x1378   : > { %v2915_v46 = vand.u32 2147483647, %v2914_v38  ;;  %v2907_v59 = vand.u32 2147483647, %v2906_v39 }
0x1379   : > { %v2942_v35 = vpop.permute.xlu0 %2941  ;;  %v2934_v42 = vpop.permute.xlu1 %2933 }
0x137a   : > { %v2944_v43 = vsub.f32 %v2942_v35, %v5576_v14  ;;  %v2936_v45 = vsub.f32 %v2934_v42, %v5571_v21  ;;  %v2916_v13 = vsub.f32 1.0, %v2915_v46  ;;  %v2908_v53 = vsub.f32 1.0, %v2907_v59 }
0x137c   : > { %v2945_v48 = vand.u32 2147483647, %v2944_v43  ;;  %v2937_v44 = vand.u32 2147483647, %v2936_v45  ;;  %v2917_v9 = vmax.f32 %v2916_v13, 0.0  ;;  %v2909_v62 = vmax.f32 %v2908_v53, 0.0 }
0x137e   : > { %v2946_v49 = vsub.f32 1.0, %v2945_v48  ;;  %v2938_v50 = vsub.f32 1.0, %v2937_v44  ;;  %v2951_v51 = vpop.permute.xlu0 %2950  ;;  %v2922_v52 = vpop.permute.xlu1 %2921  ;;  %v2918_v16 = vmul.f32 %v2917_v9, %v2909_v62 }
0x1380   : > { %v2947_v54 = vmax.f32 %v2946_v49, 0.0  ;;  %v2939_v56 = vmax.f32 %v2938_v50, 0.0  ;;  %v2924_v19 = vmul.f32 %v2922_v52, %v2918_v16 }
0x1382   : > { %v4626_v57 = vpop.permute.xlu0 %4625  ;;  %v3017_v30 = vpop.permute.xlu1 %3016  ;;  %v2948_v5 = vmul.f32 %v2947_v54, %v2939_v56 }
0x1383   : > { %v4628_v2 = vunpack.i.h.bf16 %v4626_v57  ;;  %v4627_v3 = vunpack.i.l.bf16 %v4626_v57  ;;  %4341 = vmatpush3.msra.mxu0 %v3017_v30 }
0x1384   : > { %4440 = vmatprep.subr.bf16.mxu0 %v4915_v0  ;;  %v2953_v17 = vmul.f32 %v2951_v51, %v2948_v5 }
0x1385   : > { %v4441_v12 = vpack.c.bf16 %v4628_v2, %v4627_v3 }
0x1386   : > { %v3015_v10 = vpop.permute.xlu1 %3014  ;;  %v2954_v18 = vadd.f32 %v2953_v17, %v2924_v19 }
0x1387   : > { %4343 = vmatmul.mubr.msk.f32.vlgmr.msra.gmra.mrb[26].mxu0 %vm904_vm2, %v3015_v10 }
0x1388   : > { %4442 = vmatpush3.bf16.msra.mxu0 %v4441_v12  ;;  %4349 = vmatprep.mubr.msk.f32.mxu0 %vm4916_vm0, %v4917_v1 }
0x1389   : > { %4369 = vmatprep.subr.mxu0 %v4917_v1 }
0x138f   : > { %4350 = vmatmul.mubr.msk.f32.vlgmr.msra.gmra.mrb[26].mxu0 %vm2365_vm6, %v2954_v18 }
0x1390   : > { %4371 = vmatprep.mubr.msk.f32.mxu0 %vm4916_vm0, %v4917_v1 }
0x13a1   : > { %v3254_v22 = vpop.permute.xlu1 %3253 }
0x13a2   : > { %v3256_v11 = vsel %vm2153_vm4, %v3254_v22, 0.0 }
0x13a3   : > { %3257 = vadd.xlane.f32.xlu0 %v3256_v11 }
0x13a5   : > { %v3292_v23 = vpop.permute.xlu1 %3291 }
0x13a6   : > { %v3294_v60 = vadd.f32 %v3292_v23, %v5522_v40  ;;  %v3320_v28 = vadd.f32 %v3292_v23, %v5524_v41 }
0x13a8   : > { %v5718_v25 = vadd.f32 -0.5, %v3294_v60  ;;  %v4073_v29 = vadd.f32 -0.5, %v3320_v28 }
0x13a9   : > { %v3347_v20 = vpop.permute.xlu1 %3346 }
0x13aa   : > { %3323 = vperm.xlu1 %4629, %v5718_v25   ;;  %v3349_v31 = vadd.f32 %v3347_v20, %v5522_v40  ;;  %v3351_v33 = vadd.f32 %v3347_v20, %v5524_v41 }
0x13ac   : > { %v4074_v32 = vadd.f32 -0.5, %v3349_v31  ;;  %v4075_v36 = vadd.f32 -0.5, %v3351_v33 }
0x13ae   : > { %4630 = vset.pattern.permute.xlu1 %v4929_v47 }
0x13af   : > { %3332 = vperm.xlu1 %4630, %v4073_v29  }
0x13b3   : > { %4631 = vset.pattern.permute.xlu1 %v4926_v24 }
0x13b4   : > { %3355 = vperm.xlu1 %4631, %v4074_v32  }
0x13b8   : > { %4632 = vset.pattern.permute.xlu1 %v4929_v47 }
0x13b9   : > { %3364 = vperm.xlu1 %4632, %v4075_v36  }
0x13bd   : > { %3261 = vrot.lane.b32.xlu1 %v5488_v27, %s5947_s2 }
0x13be   : > { %4633 = vset.pattern.permute.xlu1 %v4947_v37 }
0x1405   : > { %v2435_v63 = vpop.f32.mrb[22].mxu0 }
0x1406   : > { %v4317_v8 = vpop.f32.mrb[23].mxu0  ;;  %4338 = vmatmul.mubr.msk.f32.vlgmr.msra.gmra.mrb[18].mxu1 %vm904_vm2, %v2435_v63 }
0x1407   : > { %4353 = vmatpush3.msra.mxu1 %v3170_v61  ;;  %4354 = vmatprep.mubr.msk.f32.mxu1 %vm4916_vm0, %v4917_v1 }
0x1408   : > { %4357 = vmatprep.subr.mxu1 %v4917_v1 }
0x1409   : > { %v5733_v24 = vpop.f32.mrb[24].mxu0 }
0x140a   : > { %v4334_v41 = vpop.f32.mrb[25].mxu0 }
0x1429   : > { %v3324_v47 = vpop.permute.xlu1 %3323 }
0x142a   : > { %v3326_v27 = vsub.f32 %v3324_v47, %v5571_v21 }
0x142c   : > { %v3327_v38 = vand.u32 2147483647, %v3326_v27 }
0x142e   : > { %v3333_v39 = vpop.permute.xlu1 %3332  ;;  %v3328_v43 = vsub.f32 1.0, %v3327_v38 }
0x142f   : > { %v3335_v35 = vsub.f32 %v3333_v39, %v5576_v14 }
0x1430   : > { %v3258_v42 = vpop.xlane.xlu0 %3257  ;;  %v3329_v44 = vmax.f32 %v3328_v43, 0.0 }
0x1431   : > { %v3336_v45 = vand.u32 2147483647, %v3335_v35  ;;  %4678 = vrcp.f32 %v3258_v42 }
0x1433   : > { %v3337_v46 = vsub.f32 1.0, %v3336_v45  ;;  %v3356_v59 = vpop.permute.xlu1 %3355 }
0x1434   : > { %v3358_v48 = vsub.f32 %v3356_v59, %v5571_v21 }
0x1435   : > { %v3338_v49 = vmax.f32 %v3337_v46, 0.0 }
0x1436   : > { %v3359_v50 = vand.u32 2147483647, %v3358_v48 }
0x1437   : > { %v3339_v51 = vmul.f32 %v3338_v49, %v3329_v44 }
0x1438   : > { %v3365_v52 = vpop.permute.xlu1 %3364  ;;  %v3360_v54 = vsub.f32 1.0, %v3359_v50 }
0x1439   : > { %v3367_v13 = vsub.f32 %v3365_v52, %v5576_v14  ;;  %v3535_v52 = vld [vmem:[#allocation8 + $0x18] sm:$0xff] }
0x143a   : > { %v3361_v2 = vmax.f32 %v3360_v54, 0.0  ;;  %4370 = vmatpush3.msra.mxu0 %v3535_v52  ;;  %v4079_v54 = vld [vmem:[#allocation10 + $0x7] ss:$0 sm:$0xff]  ;;  %v4087_v52 = vld [vmem:[#allocation10 + $0xc] ss:$0 sm:$0xff] }
0x143b   : > { %v4679_v53 = vpop.eup %4678  ;;  %v3368_v56 = vand.u32 2147483647, %v3367_v13  ;;  %4446 = vmatprep.subr.bf16.mxu0 %v4915_v0 }
0x143c   : > { %v3262_v57 = vpop.permute.xlu1 %3261  ;;  %v3260_v30 = vmul.f32 %v4679_v53, %v5689_v34  ;;  %v4949_v34 = vmov 13  }
0x143d   : > { %v3369_v9 = vsub.f32 1.0, %v3368_v56  ;;  %v3264_v62 = vadd.f32 %v3262_v57, %v5522_v40  ;;  %v4948_v40 = vmov 12  }
0x143e   : > { %3373 = vperm.xlu0 %4634, %v3260_v30   ;;  %3341 = vperm.xlu1 %4633, %v3260_v30  }
0x143f   : > { %v3370_v3 = vmax.f32 %v3369_v9, 0.0  ;;  %v4071_v5 = vadd.f32 -0.5, %v3264_v62 }
0x1441   : > { %v3371_v12 = vmul.f32 %v3370_v3, %v3361_v2 }
0x1442   : > { %4635 = vset.pattern.permute.xlu1 %v4931_v55 }
0x1443   : > { %3268 = vperm.xlu1 %4635, %v4071_v5  }
0x1447   : > { %4636 = vset.pattern.permute.xlu1 %v4935_v26 }
0x1448   : > { %3276 = vperm.xlu1 %4636, %v4071_v5  }
0x144c   : > { %4637 = vset.pattern.permute.xlu1 %v4931_v55 }
0x144d   : > { %3298 = vperm.xlu1 %4637, %v5718_v25  }
0x1451   : > { %4638 = vset.pattern.permute.xlu1 %v4935_v26 }
0x1452   : > { %3306 = vperm.xlu1 %4638, %v5718_v25  }
0x1456   : > { %4639 = vset.pattern.permute.xlu1 %v4948_v40 }
0x1457   : > { %3286 = vperm.xlu1 %4639, %v3260_v30  }
0x145b   : > { %4640 = vset.pattern.permute.xlu1 %v4949_v34 }
0x145c   : > { %3315 = vperm.xlu1 %4640, %v3260_v30  }
0x1460   : > { %3381 = vrot.lane.b32.xlu1 %v5549_v4, %s5947_s2 }
0x1462   : > { %v3166_v15 = vpop.f32.mrb[26].mxu0 }
0x1463   : > { %v4351_v10 = vpop.f32.mrb[27].mxu0  ;;  %4355 = vmatmul.mubr.msk.f32.vlgmr.msra.gmra.mrb[20].mxu1 %vm904_vm2, %v3166_v15  ;;  %v3640_v15 = vld [vmem:[%s5948_s14 + $0x8] sm:$0xff] }
0x1464   : > { %4359 = vmatprep.mubr.msk.f32.mxu1 %vm4916_vm0, %v4917_v1 }
0x14bd   : > { %v3374_v55 = vpop.permute.xlu0 %3373  ;;  %v3342_v26 = vpop.permute.xlu1 %3341 }
0x14be   : > { %v3376_v16 = vmul.f32 %v3374_v55, %v3371_v12  ;;  %v3344_v17 = vmul.f32 %v3342_v26, %v3339_v51  ;;  %v3642_v55 = vld [vmem:[%s5948_s14 + $0x18] sm:$0xff] }
0x14c0   : > { %v3377_v19 = vadd.f32 %v3376_v16, %v3344_v17  ;;  %v3724_v16 = vld [vmem:[%s5949_s27] sm:$0xff]  ;;  %v3725_v17 = vld [vmem:[%s5950_s26 + $0x8] sm:$0xff]  ;;  %s5826_s27 = scalar_lea.hbm %s5952_s20, %s4089_s25 }
0x14c2   : > { %3379 = vrot.lane.b32.xlu1 %v3377_v19, %s4922_s10  ;;  %v3269_v18 = vpop.permute.xlu1 %3268  ;;  %v3726_v19 = vld [vmem:[%s5950_s26 + $0x10] sm:$0xff]  ;;  %s4828_s10 = scalar_lea.vmem %s5828_s22, 128 }
0x14c3   : > { %v3271_v22 = vsub.f32 %v3269_v18, %v5571_v21  ;;  %v4453_v18 = vpack.c.bf16 %v3725_v17, %v3724_v16  ;;  %p4829_p1 = scmp.ne.s32.totalorder %s5828_s22, %s4828_s10  ;;  %p4836_p6 = scmp.lt.s32.totalorder %s4834_s23, %s4828_s10 }
0x14c5   : > { %v3272_v11 = vand.u32 2147483647, %v3271_v22  ;;  %v3727_v22 = vld [vmem:[%s5950_s26 + $0x18] sm:$0xff]  ;;  %p4830_p4 = pnand %p4829_p1, %p5953_p2  ;;  %p4837_p10 = por %p4836_p6, %p4835_p8 }
0x14c6   : > { %4642 = vrot.lane.b32.xlu1 %v5555_v6, %s5947_s2  ;;  %s3836_s2 = scalar_lea.sflag [#allocation4], %s5274_s8 }
0x14c7   : > { %v3277_v4 = vpop.permute.xlu1 %3276  ;;  %v3273_v60 = vsub.f32 1.0, %v3272_v11  ;;  %v4456_v11 = vpack.c.bf16 %v3727_v22, %v3726_v19  ;;  %p4831_p0 = pneg %p4830_p4 }
0x14c8   : > { %v3279_v23 = vsub.f32 %v3277_v4, %v5576_v14  ;;  %v3728_v4 = vld [vmem:[%s5950_s26 + $0x20] sm:$0xff] }
0x14c9   : > { %v3274_v31 = vmax.f32 %v3273_v60, 0.0  ;;  %p4838_p13 = pnand %p4837_p10, %p4831_p0 }
0x14ca   : > { %v3280_v25 = vand.u32 2147483647, %v3279_v23  ;;  %v3729_v23 = vld [vmem:[%s5950_s26 + $0x28] sm:$0xff] }
0x14cb   : > { %v4459_v60 = vpack.c.bf16 %v3729_v23, %v3728_v4 }
0x14cc   : > { %v3281_v28 = vsub.f32 1.0, %v3280_v25  ;;  %v3299_v20 = vpop.permute.xlu1 %3298 }
0x14cd   : > { %v3301_v29 = vsub.f32 %v3299_v20, %v5571_v21 }
0x14ce   : > { %v3282_v32 = vmax.f32 %v3281_v28, 0.0 }
0x14cf   : > { %v3302_v33 = vand.u32 2147483647, %v3301_v29 }
0x14d0   : > { %v3283_v36 = vmul.f32 %v3282_v32, %v3274_v31  ;;  %v4080_v31 = vld [vmem:[#allocation10 + $0x8] ss:$0 sm:$0xff] }
0x14d1   : > { %v3307_v58 = vpop.permute.xlu1 %3306  ;;  %v3303_v61 = vsub.f32 1.0, %v3302_v33  ;;  %v4081_v33 = vld [vmem:[#allocation10 + $0x9] ss:$0 sm:$0xff] }
0x14d2   : > { %v3309_v37 = vsub.f32 %v3307_v58, %v5576_v14 }
0x14d3   : > { %v3304_v47 = vmax.f32 %v3303_v61, 0.0 }
0x14d4   : > { %v3310_v63 = vand.u32 2147483647, %v3309_v37  ;;  %v3730_v37 = vld [vmem:[%s5950_s26 + $0x30] sm:$0xff] }
0x14d6   : > { %v3311_v8 = vsub.f32 1.0, %v3310_v63  ;;  %v3287_v6 = vpop.permute.xlu1 %3286  ;;  %v4082_v63 = vld [vmem:[%s5951_s21] ss:$0 sm:$0xff] }
0x14d7   : > { %v3289_v41 = vmul.f32 %v3287_v6, %v3283_v36 }
0x14d8   : > { %v3312_v27 = vmax.f32 %v3311_v8, 0.0 }
0x14d9   : > { %v2876_v38 = vpop.f32.mrb[18].mxu1 }
0x14da   : > { %v2877_v39 = vadd.f32 %v2876_v38, %v5733_v24  ;;  %v4339_v35 = vpop.f32.mrb[19].mxu1  ;;  %v3313_v42 = vmul.f32 %v3312_v27, %v3304_v47  ;;  %v4084_v27 = vld [vmem:[#allocation10 + $0xa] ss:$0 sm:$0xff] }
0x14db   : > { %v3316_v21 = vpop.permute.xlu1 %3315 }
0x14dc   : > { %v3318_v43 = vmul.f32 %v3316_v21, %v3313_v42 }
0x14de   : > { %v3319_v45 = vadd.f32 %v3318_v43, %v3289_v41 }
0x14df   : > { %v3382_v46 = vpop.permute.xlu1 %3381 }
0x14e0   : > { %4358 = vmatpush3.msra.mxu1 %v3382_v46 }
0x14e1   : > { %4443 = vmatprep.subr.bf16.mxu1 %v4915_v0 }
0x1534   : > { %v3380_v14 = vpop.permute.xlu1 %3379 }
0x1535   : > { %4360 = vmatmul.mubr.msk.f32.vlgmr.msra.gmra.mrb[22].mxu1 %vm904_vm2, %v3380_v14 }
0x1536   : > { %v3240_v59 = vpop.f32.mrb[20].mxu1  ;;  %4366 = vmatprep.mubr.msk.f32.mxu1 %vm4916_vm0, %v4917_v1 }
0x1537   : > { %v3244_v48 = vadd.f32 %v3240_v59, %v2877_v39  ;;  %v4356_v44 = vpop.f32.mrb[21].mxu1 }
0x1538   : > { %v4643_v49 = vpop.permute.xlu1 %4642 }
0x1539   : > { %v4645_v24 = vunpack.i.h.bf16 %v4643_v49  ;;  %v4644_v50 = vunpack.i.l.bf16 %v4643_v49 }
0x153b   : > { %v4444_v51 = vpack.c.bf16 %v4645_v24, %v4644_v50  ;;  %v4086_v50 = vld [vmem:[#allocation10 + $0xb] ss:$0 sm:$0xff] }
0x153d   : > { %4445 = vmatpush3.bf16.msra.mxu1 %v4444_v51 }
0x153e   : > { %4452 = vmatprep.subr.bf16.mxu1 %v4915_v0 }
0x1540   : > { %4367 = vmatmul.mubr.msk.f32.vlgmr.msra.gmra.mrb[22].mxu1 %vm2365_vm6, %v3319_v45 }
0x1541   : > { %4401 = vmatprep.mubr.msk.f32.mxu1 %vm4916_vm0, %v4917_v1  ;;  %4454 = vmatpush3.bf16.msra.mxu1 %v4453_v18 }
0x1542   : > { %4455 = vmatprep.subr.bf16.mxu1 %v4915_v0 }
0x1545   : > { %4457 = vmatpush3.bf16.msra.mxu1 %v4456_v11 }
0x1546   : > { %4458 = vmatprep.subr.bf16.mxu1 %v4915_v0 }
0x1549   : > { %4460 = vmatpush3.bf16.msra.mxu1 %v4459_v60 }
0x154a   : > { %4461 = vmatprep.subr.bf16.mxu1 %v4915_v0 }
0x1613   : > { %v3531_v13 = vpop.f32.mrb[22].mxu1 }
0x1614   : > { %v4368_v53 = vpop.f32.mrb[23].mxu1  ;;  %4372 = vmatmul.mubr.msk.f32.vlgmr.msra.gmra.mrb[28].mxu0 %vm904_vm2, %v3531_v13 }
0x1615   : > { %4382 = vmatprep.mubr.msk.f32.mxu0 %vm4916_vm0, %v4917_v1  ;;  %v3639_v1 = vld [vmem:[%s5948_s14] sm:$0xff] }
0x1616   : > { %v4447_v10 = vpack.c.bf16 %v3640_v15, %v3639_v1 }
0x1618   : > { %4448 = vmatpush3.bf16.msra.mxu0 %v4447_v10 }
0x1619   : > { %4449 = vmatprep.subr.bf16.mxu0 %v4915_v0  ;;  %v3731_v0 = vld [vmem:[%s5950_s26 + $0x38] sm:$0xff] }
0x161a   : > { %v4462_v61 = vpack.c.bf16 %v3731_v0, %v3730_v37 }
0x161c   : > { %4463 = vmatpush3.bf16.msra.mxu1 %v4462_v61 }
0x16e7   : > { %v3605_v56 = vpop.f32.mrb[28].mxu0 }
0x16e8   : > { %v3609_v57 = vadd.f32 %v3605_v56, %v3244_v48  ;;  %v4373_v30 = vpop.f32.mrb[29].mxu0 }
0x16ea   : > { %v3614_v9 = vadd.f32 %v4079_v54, %v3609_v57 }
0x16ec   : > { %v3615_v62 = vadd.f32 %v3614_v9, %v5453_v7  ;;  %v3641_v7 = vld [vmem:[%s5948_s14 + $0x10] sm:$0xff] }
0x16ed   : > { %v4450_v26 = vpack.c.bf16 %v3642_v55, %v3641_v7 }
0x16ee   : > { %v3616_v2 = vsel %vm732_vm1, %v3615_v62, 0.0 }
0x16ef   : > { %3617 = vadd.xlane.f32.xlu1 %v3616_v2  ;;  %4451 = vmatpush3.bf16.msra.mxu0 %v4450_v26 }
0x177c   : > { %v3618_v3 = vpop.xlane.xlu1 %3617 }
0x177d   : > { %v3619_v5 = vmul.f32 0.03125, %v3618_v3 }
0x177f   : > { %v3620_v12 = vsub.f32 %v3615_v62, %v3619_v5 }
0x1781   : > { %v3621_v40 = vmul.f32 %v3620_v12, %v3620_v12 }
0x1783   : > { %v3622_v34 = vsel %vm732_vm1, %v3621_v40, 0.0 }
0x1784   : > { %3623 = vadd.xlane.f32.xlu0 %v3622_v34 }
0x1811   : > { %v3624_v25 = vpop.xlane.xlu0 %3623 }
0x1812   : > { %v3625_v28 = vmul.f32 0.03125, %v3624_v25 }
0x1814   : > { %v3626_v20 = vadd.f32 1e-05, %v3625_v28 }
0x1816   : > { %4680 = vrsqrt.f32 %v3626_v20 }
0x1820   : > { %v4681_v29 = vpop.eup %4680 }
0x1821   : > { %v3628_v32 = vmul.f32 %v4681_v29, %v3620_v12 }
0x1823   : > { %v3633_v36 = vmul.f32 %v4080_v31, %v3628_v32 }
0x1825   : > { %v3638_v58 = vadd.f32 %v4081_v33, %v3633_v36 }
0x1827   : > { %4383 = vmatmul.mubr.msk.f32.vlgmr.msra.gmra.mrb[30].mxu0 %vm732_vm1, %v3638_v58 }
0x18fa   : > { %v3719_v8 = vpop.f32.mrb[30].mxu0 }
0x18fb   : > { %v3720_v6 = vadd.f32 %v4082_v63, %v3719_v8  ;;  %v4384_v41 = vpop.f32.mrb[31].mxu0 }
0x18fd   : > { %v3723_v47 = vmax.f32 %v3720_v6, 0.0 }
0x18ff   : > { %4402 = vmatmul.mubr.msk.f32.vlgmr.msra.gmra.mrb[24].mxu1 %vm3736_vm8, %v3723_v47 }
0x19d2   : > { %v3806_v38 = vpop.f32.mrb[24].mxu1 }
0x19d3   : > { %v3807_v39 = vadd.f32 %v4084_v27, %v3806_v38  ;;  %v4403_v35 = vpop.f32.mrb[25].mxu1 }
0x19d5   : > { %v3810_v42 = vadd.f32 %v3807_v39, %v3638_v58 }
0x19d7   : > { %v3811_v21 = vsel %vm732_vm1, %v3810_v42, 0.0 }
0x19d8   : > { %3812 = vadd.xlane.f32.xlu1 %v3811_v21 }
0x1a65   : > { %v3813_v43 = vpop.xlane.xlu1 %3812 }
0x1a66   : > { %v3814_v45 = vmul.f32 0.03125, %v3813_v43 }
0x1a68   : > { %v3815_v46 = vsub.f32 %v3810_v42, %v3814_v45 }
0x1a6a   : > { %v3816_v14 = vmul.f32 %v3815_v46, %v3815_v46 }
0x1a6c   : > { %v3817_v59 = vsel %vm732_vm1, %v3816_v14, 0.0 }
0x1a6d   : > { %3818 = vadd.xlane.f32.xlu0 %v3817_v59 }
0x1afa   : > { %v3819_v48 = vpop.xlane.xlu0 %3818 }
0x1afb   : > { %v3820_v44 = vmul.f32 0.03125, %v3819_v48 }
0x1afd   : > { %v3821_v49 = vadd.f32 1e-05, %v3820_v44 }
0x1aff   : > { %4682 = vrsqrt.f32 %v3821_v49 }
0x1b09   : > { %v4683_v24 = vpop.eup %4682 }
0x1b0a   : > { %v3823_v51 = vmul.f32 %v4683_v24, %v3815_v46 }
0x1b0c   : > { %v3828_v13 = vmul.f32 %v4086_v50, %v3823_v51 }
0x1b0e   : > { %v3833_v53 = vadd.f32 %v4087_v52, %v3828_v13 }
0x1b10   : > { %3834 = vst.msk [vmem:[%s698_s11] sm:$0xff] %vm732_vm1, %v3833_v53 }
0x1b11   : > { %4841 = shalt.err (!%p4838_p13)
}
0x1b12   : > { %s4842_s8 = scalar_lea.hbm %s5826_s27, 128  ;;  %s4846_s25 = scalar_lea.hbm %s5952_s20, 256 }
0x1b13   : > { %p4843_p5 = scmp.ne.s32.totalorder %s5826_s27, %s4842_s8  ;;  %p4847_p3 = scmp.lt.u32.totalorder %s5826_s27, %s5952_s20 }
0x1b14   : > { %p4848_p7 = scmp.lt.u32.totalorder %s4846_s25, %s4842_s8  ;;  %p4850_p1 = scmp.lt.u32.totalorder %s4842_s8, %s5826_s27 }
0x1b15   : > { %p4844_p11 = pnand %p4843_p5, %p5953_p2 }
0x1b16   : > { %p4849_p12 = por %p4848_p7, %p4847_p3 }
0x1b17   : > { %p4845_p9 = pneg %p4844_p11 }
0x1b18   : > { %p4851_p4 = por %p4850_p1, %p4849_p12 }
0x1b1a   : > { %p4852_p0 = pnand %p4851_p4, %p4845_p9 }
0x1b1c   : > { %4855 = shalt.err (!%p4852_p0)
}
0x1b1d   : > { %4489 = dma.vmem_to_hbm [thread:$0]  (%p5953_p2), %s5828_s22, 128, %s5826_s27, %s3836_s2  }
0x1b1e PF: > { %s5954_s18 = sld [smem:[#allocation17_spill]]  ;;  %s5955_s10 = sld [smem:[#allocation19_spill]] }
0x1b1f   : > { %p5957_p6 = scmp.ge.s32.totalorder %s4906_s30, 2 }
0x1b24   : > { %s3861_s0 = sand.u32 1, %s5954_s18   ;;  %p5956_p8 = scmp.ne.s32.totalorder %s5955_s10, 0 }
0x1b25   : > { %s3862_s13 = scalar_lea.sflag [#allocation4], %s3861_s0 }
0x1b26   : > { %p4509_p10 = pnand %p5957_p6, %p5956_p8 }
0x1b28   : > { %4889 = dma.done.wait (!%p4509_p10), %s3862_s13, 128  }
0x1b29   : > { %4891 = vsyncadd (!%p4509_p10), %s3862_s13, 4294967168  ;;  %s5958_s23 = sld [smem:[#allocation18_spill]]  ;;  %s5959_s29 = sld [smem:[#allocation20_spill]] }
0x1b2a   : > { %p35_p13 = scmp.ge.s32.totalorder %s5186_s12, 4   ;;  %s5960_s27 = smov %s4898_s28 }
0x1b2b   : > { %s5962_s30 = smov %s5186_s12 }
0x1b2c   :  { %37 = sbr.rel (!%p35_p13) target bundleno = 22 (0x16), region = 168 }
0x1b2f   : > { %s5961_s28 = smov %s5958_s23 }
0x1b33   :  { %3867 = vsyncpa [#allocation3], 1 }
0x1b34   :  { %3869 = vsyncpa [#allocation3 + $0x1], 1 }
0x1b35   :  { %3870 = vsyncpa [#allocation6], 1 }
0x1b36   :  { %3872 = vsyncpa [#allocation6 + $0x1], 1 }
0x1b37   :  { %3873 = vsyncpa [#allocation9], 1 }
0x1b38   :  { %3874 = vsyncpa [#allocation4], 1 }
0x1b39   :  { %3876 = vsyncpa [#allocation4 + $0x1], 1 }

</bundles_post_ra>
